<compile_context>
chip_gen: v5e
topology: v5e:2x2
jax: 0.10.0
libtpu: 0.0.40
codegen_flags: <defaults>
</compile_context>

<pallas_src>
import numpy as np
import jax
import jax.numpy as jnp
from jax.experimental import pallas as pl
from jax.experimental.pallas import tpu as pltpu

WIN_SIZE = 11
SIGMA = 1.5
C1 = (0.01 * 255) ** 2
C2 = (0.03 * 255) ** 2


def fspecial_gauss_np(size, sigma, channels):
    """Deterministic 2-D Gaussian window, identical to the PyTorch __init__."""
    x, y = np.mgrid[-size // 2 + 1:size // 2 + 1, -size // 2 + 1:size // 2 + 1]
    g = np.exp(-((x ** 2 + y ** 2) / (2.0 * sigma ** 2)))
    g = (g / g.sum()).astype(np.float32)
    return np.broadcast_to(g[None, None], (channels, 1, size, size)).copy()


def _gauss_taps_1d(size, sigma):
    """1-D taps whose outer product is exactly the fspecial_gauss 2-D window."""
    offs = np.arange(-size // 2 + 1, size // 2 + 1, dtype=np.float64)
    g = np.exp(-(offs ** 2) / (2.0 * sigma ** 2))
    g = (g / g.sum()).astype(np.float32)
    return [float(v) for v in g]


def _toeplitz_np(taps, W, Wo):
    """Banded Toeplitz (W, Wo): tmat[w, w'] = taps[w - w'] if 0<=w-w'<11 else 0."""
    tmat = np.zeros((W, Wo), np.float32)
    for j in range(WIN_SIZE):
        for c in range(Wo):
            tmat[c + j, c] = taps[j]
    return tmat


def _make_ssim_kernel(taps, TB, C, H, W):
    Ho = H - WIN_SIZE + 1
    Wo = W - WIN_SIZE + 1
    inv_count = 1.0 / float(C * Ho * Wo)

    def kernel(x_ref, y_ref, tmat_ref, out_ref):
        x = x_ref[...]                        # (TB, C, H, W) float32
        y = y_ref[...]
        tmat = tmat_ref[...]                  # (W, Wo) float32, VMEM-resident

        def hpass(f):
            # Horizontal taps on the MXU: (TB*C*H, W) @ (W, Wo).
            f2 = f.reshape(TB * C * H, W)
            h2 = jnp.dot(f2, tmat, preferred_element_type=jnp.float32)
            return h2.reshape(TB, C, H, Wo)

        def vpass(f):
            # Vertical taps: 11 sublane-offset shift-MACs (VPU), baked weights.
            acc = taps[0] * f[:, :, 0:Ho, :]
            for i in range(1, WIN_SIZE):
                acc = acc + taps[i] * f[:, :, i:i + Ho, :]
            return acc

        def gfilt(f):
            return vpass(hpass(f))

        mu1 = gfilt(x)
        mu2 = gfilt(y)
        sxx = gfilt(x * x)
        syy = gfilt(y * y)
        sxy = gfilt(x * y)

        mu1_sq = mu1 * mu1
        mu2_sq = mu2 * mu2
        mu1_mu2 = mu1 * mu2
        sigma1_sq = sxx - mu1_sq
        sigma2_sq = syy - mu2_sq
        sigma12 = sxy - mu1_mu2

        cs_map = (2.0 * sigma12 + C2) / (sigma1_sq + sigma2_sq + C2)
        cs_map = jnp.maximum(cs_map, 0.0)                     # F.relu
        ssim_map = (2.0 * mu1_mu2 + C1) / (mu1_sq + mu2_sq + C1) * cs_map

        # Per-batch mean over (C, Ho, Wo), reduced stepwise over the last axis.
        s = jnp.sum(ssim_map, axis=-1)                        # (TB, C, Ho)
        s = jnp.sum(s, axis=-1)                               # (TB, C)
        s = jnp.sum(s, axis=-1, keepdims=True) * inv_count    # (TB, 1)
        out_ref[...] = jnp.broadcast_to(s[:, :, None], out_ref.shape)

    return kernel


def _pick_tb(B, C, H, W, budget_bytes=16 * 1024 * 1024):
    """Largest TB dividing B whose per-step working set fits the VMEM budget."""
    # Rough live set per step: x,y double-buffered (4x image) + ~8x image-sized
    # f32 intermediates.
    per_batch = C * H * W * 4 * 12
    tb = int(max(1, min(B, budget_bytes // max(per_batch, 1))))
    while B % tb:
        tb -= 1
    return tb


def ssim_pallas(X, Y):
    """Per-batch ssim_val, shape (B,), matching ssim(X, Y, win) of the module."""
    assert X.shape == Y.shape
    B, C, H, W = X.shape
    assert H >= WIN_SIZE and W >= WIN_SIZE
    X = X.astype(jnp.float32)
    Y = Y.astype(jnp.float32)

    taps = _gauss_taps_1d(WIN_SIZE, SIGMA)
    Wo = W - WIN_SIZE + 1
    tmat = jnp.asarray(_toeplitz_np(taps, W, Wo))
    TB = _pick_tb(B, C, H, W)
    kernel = _make_ssim_kernel(taps, TB, C, H, W)

    # TODO(synk): for very large single images (e.g. 3x512x512 on v7x) add
    # H-halo tiling (block (TB, C, TH+10, W)) instead of full-image blocks.
    out = pl.pallas_call(
        kernel,
        out_shape=jax.ShapeDtypeStruct((B, 8, 128), jnp.float32),
        grid=(B // TB,),
        in_specs=[
            pl.BlockSpec((TB, C, H, W), lambda b: (b, 0, 0, 0)),
            pl.BlockSpec((TB, C, H, W), lambda b: (b, 0, 0, 0)),
            pl.BlockSpec((W, Wo), lambda b: (0, 0)),   # stays resident in VMEM
        ],
        out_specs=pl.BlockSpec((TB, 8, 128), lambda b: (b, 0, 0)),
        compiler_params=pltpu.CompilerParams(
            dimension_semantics=("parallel",),
            vmem_limit_bytes=32 * 1024 * 1024,
        ),
    )(X, Y, tmat)
    return out[:, 0, 0]


def ssim_loss_pallas(X, Y):
    """SSIM.forward(X, Y, as_loss=True): 1 - mean(per-batch ssim)."""
    return 1.0 - jnp.mean(ssim_pallas(X, Y))


def _ssim_reference_np(X, Y, win):
    """Pure-numpy reference mirroring the PyTorch code (valid depthwise conv)."""
    B, C, H, W = X.shape
    Ho, Wo = H - WIN_SIZE + 1, W - WIN_SIZE + 1
    g = win[0, 0]

    def gfilt(a):
        out = np.zeros((B, C, Ho, Wo), np.float32)
        for i in range(WIN_SIZE):
            for j in range(WIN_SIZE):
                out += g[i, j] * a[:, :, i:i + Ho, j:j + Wo]
        return out

    mu1, mu2 = gfilt(X), gfilt(Y)
    mu1_sq, mu2_sq, mu1_mu2 = mu1 ** 2, mu2 ** 2, mu1 * mu2
    s1 = gfilt(X * X) - mu1_sq
    s2 = gfilt(Y * Y) - mu2_sq
    s12 = gfilt(X * Y) - mu1_mu2
    cs = np.maximum((2 * s12 + C2) / (s1 + s2 + C2), 0.0)
    smap = (2 * mu1_mu2 + C1) / (mu1_sq + mu2_sq + C1) * cs
    return smap.mean(axis=(1, 2, 3))


if __name__ == "__main__":
    B, C, H, W = 2, 3, 16, 16   # channels=3 matches SSIM() default
    key = jax.random.PRNGKey(0)
    kx, ky = jax.random.split(key)
    X = jax.random.uniform(kx, (B, C, H, W), jnp.float32, 0.0, 255.0)
    Y = jax.random.uniform(ky, (B, C, H, W), jnp.float32, 0.0, 255.0)

    score = jax.block_until_ready(ssim_pallas(X, Y))
    loss = jax.block_until_ready(ssim_loss_pallas(X, Y))

    # Cross-check against a pure-numpy reference of the PyTorch semantics
    # (which uses the 2-D window; the kernel uses its exact separable form).
    win = fspecial_gauss_np(WIN_SIZE, SIGMA, C)
    ref_score = _ssim_reference_np(np.asarray(X), np.asarray(Y), win)
    np.testing.assert_allclose(np.asarray(score), ref_score,
                               rtol=2e-4, atol=2e-5)
    np.testing.assert_allclose(float(loss), 1.0 - ref_score.mean(),
                               rtol=2e-4, atol=2e-5)

    print("KERNEL_OK")
</pallas_src>

<mosaic_0001>
module attributes {stable_mosaic.version = 11 : i64} {
  func.func @kernel(%arg0: i32, %arg1: memref<2x3x16x16xf32, #tpu.memory_space<vmem>>, %arg2: memref<2x3x16x16xf32, #tpu.memory_space<vmem>>, %arg3: memref<16x6xf32, #tpu.memory_space<vmem>>, %arg4: memref<2x8x128xf32, #tpu.memory_space<vmem>>) attributes {dimension_semantics = [#tpu.dimension_semantics<parallel>], iteration_bounds = array<i64: 1>, scalar_prefetch = 0 : i64, scratch_operands = 0 : i64, tpu.core_type = #tpu.core_type<tc>, window_params = [{transform_indices = @transform_0, window_bounds = array<i64: 2, 3, 16, 16>}, {transform_indices = @transform_1, window_bounds = array<i64: 2, 3, 16, 16>}, {pipeline_mode = #tpu.pipeline_mode<synchronous>, transform_indices = @transform_2, window_bounds = array<i64: 16, 6>}, {transform_indices = @transform_3, window_bounds = array<i64: 2, 8, 128>}]} {
    %c0 = arith.constant 0 : index
    %c0_0 = arith.constant 0 : index
    %c0_1 = arith.constant 0 : index
    %c0_2 = arith.constant 0 : index
    %0 = vector.load %arg1[%c0, %c0_0, %c0_1, %c0_2] : memref<2x3x16x16xf32, #tpu.memory_space<vmem>>, vector<2x3x16x16xf32>
    %c0_3 = arith.constant 0 : index
    %c0_4 = arith.constant 0 : index
    %c0_5 = arith.constant 0 : index
    %c0_6 = arith.constant 0 : index
    %1 = vector.load %arg2[%c0_3, %c0_4, %c0_5, %c0_6] : memref<2x3x16x16xf32, #tpu.memory_space<vmem>>, vector<2x3x16x16xf32>
    %c0_7 = arith.constant 0 : index
    %c0_8 = arith.constant 0 : index
    %2 = vector.load %arg3[%c0_7, %c0_8] : memref<16x6xf32, #tpu.memory_space<vmem>>, vector<16x6xf32>
    %3 = vector.shape_cast %0 : vector<2x3x16x16xf32> to vector<96x16xf32>
    %cst = arith.constant dense<0.000000e+00> : vector<96x6xf32>
    %4 = tpu.matmul %3, %2, %cst {dimension_numbers = #tpu.dot_dimension_numbers<[1], [0], [0], [1], [0, 0, 1, 1], [], []>} : vector<96x16xf32>, vector<16x6xf32>, vector<96x6xf32> -> vector<96x6xf32>
    %5 = vector.shape_cast %4 : vector<96x6xf32> to vector<2x3x16x6xf32>
    %6 = vector.extract_strided_slice %5 {offsets = [0, 0, 0, 0], sizes = [2, 3, 6, 6], strides = [1, 1, 1, 1]} : vector<2x3x16x6xf32> to vector<2x3x6x6xf32>
    %cst_9 = arith.constant 0.00102838012 : f32
    %7 = vector.broadcast %cst_9 : f32 to vector<2x3x6x6xf32>
    %8 = arith.mulf %7, %6 : vector<2x3x6x6xf32>
    %9 = vector.extract_strided_slice %5 {offsets = [0, 0, 1, 0], sizes = [2, 3, 6, 6], strides = [1, 1, 1, 1]} : vector<2x3x16x6xf32> to vector<2x3x6x6xf32>
    %cst_10 = arith.constant 0.00759875821 : f32
    %10 = vector.broadcast %cst_10 : f32 to vector<2x3x6x6xf32>
    %11 = arith.mulf %10, %9 : vector<2x3x6x6xf32>
    %12 = arith.addf %8, %11 : vector<2x3x6x6xf32>
    %13 = vector.extract_strided_slice %5 {offsets = [0, 0, 2, 0], sizes = [2, 3, 6, 6], strides = [1, 1, 1, 1]} : vector<2x3x16x6xf32> to vector<2x3x6x6xf32>
    %cst_11 = arith.constant 0.0360007733 : f32
    %14 = vector.broadcast %cst_11 : f32 to vector<2x3x6x6xf32>
    %15 = arith.mulf %14, %13 : vector<2x3x6x6xf32>
    %16 = arith.addf %12, %15 : vector<2x3x6x6xf32>
    %17 = vector.extract_strided_slice %5 {offsets = [0, 0, 3, 0], sizes = [2, 3, 6, 6], strides = [1, 1, 1, 1]} : vector<2x3x16x6xf32> to vector<2x3x6x6xf32>
    %cst_12 = arith.constant 0.109360687 : f32
    %18 = vector.broadcast %cst_12 : f32 to vector<2x3x6x6xf32>
    %19 = arith.mulf %18, %17 : vector<2x3x6x6xf32>
    %20 = arith.addf %16, %19 : vector<2x3x6x6xf32>
    %21 = vector.extract_strided_slice %5 {offsets = [0, 0, 4, 0], sizes = [2, 3, 6, 6], strides = [1, 1, 1, 1]} : vector<2x3x16x6xf32> to vector<2x3x6x6xf32>
    %cst_13 = arith.constant 0.213005543 : f32
    %22 = vector.broadcast %cst_13 : f32 to vector<2x3x6x6xf32>
    %23 = arith.mulf %22, %21 : vector<2x3x6x6xf32>
    %24 = arith.addf %20, %23 : vector<2x3x6x6xf32>
    %25 = vector.extract_strided_slice %5 {offsets = [0, 0, 5, 0], sizes = [2, 3, 6, 6], strides = [1, 1, 1, 1]} : vector<2x3x16x6xf32> to vector<2x3x6x6xf32>
    %cst_14 = arith.constant 0.266011715 : f32
    %26 = vector.broadcast %cst_14 : f32 to vector<2x3x6x6xf32>
    %27 = arith.mulf %26, %25 : vector<2x3x6x6xf32>
    %28 = arith.addf %24, %27 : vector<2x3x6x6xf32>
    %29 = vector.extract_strided_slice %5 {offsets = [0, 0, 6, 0], sizes = [2, 3, 6, 6], strides = [1, 1, 1, 1]} : vector<2x3x16x6xf32> to vector<2x3x6x6xf32>
    %cst_15 = arith.constant 0.213005543 : f32
    %30 = vector.broadcast %cst_15 : f32 to vector<2x3x6x6xf32>
    %31 = arith.mulf %30, %29 : vector<2x3x6x6xf32>
    %32 = arith.addf %28, %31 : vector<2x3x6x6xf32>
    %33 = vector.extract_strided_slice %5 {offsets = [0, 0, 7, 0], sizes = [2, 3, 6, 6], strides = [1, 1, 1, 1]} : vector<2x3x16x6xf32> to vector<2x3x6x6xf32>
    %cst_16 = arith.constant 0.109360687 : f32
    %34 = vector.broadcast %cst_16 : f32 to vector<2x3x6x6xf32>
    %35 = arith.mulf %34, %33 : vector<2x3x6x6xf32>
    %36 = arith.addf %32, %35 : vector<2x3x6x6xf32>
    %37 = vector.extract_strided_slice %5 {offsets = [0, 0, 8, 0], sizes = [2, 3, 6, 6], strides = [1, 1, 1, 1]} : vector<2x3x16x6xf32> to vector<2x3x6x6xf32>
    %cst_17 = arith.constant 0.0360007733 : f32
    %38 = vector.broadcast %cst_17 : f32 to vector<2x3x6x6xf32>
    %39 = arith.mulf %38, %37 : vector<2x3x6x6xf32>
    %40 = arith.addf %36, %39 : vector<2x3x6x6xf32>
    %41 = vector.extract_strided_slice %5 {offsets = [0, 0, 9, 0], sizes = [2, 3, 6, 6], strides = [1, 1, 1, 1]} : vector<2x3x16x6xf32> to vector<2x3x6x6xf32>
    %cst_18 = arith.constant 0.00759875821 : f32
    %42 = vector.broadcast %cst_18 : f32 to vector<2x3x6x6xf32>
    %43 = arith.mulf %42, %41 : vector<2x3x6x6xf32>
    %44 = arith.addf %40, %43 : vector<2x3x6x6xf32>
    %45 = vector.extract_strided_slice %5 {offsets = [0, 0, 10, 0], sizes = [2, 3, 6, 6], strides = [1, 1, 1, 1]} : vector<2x3x16x6xf32> to vector<2x3x6x6xf32>
    %cst_19 = arith.constant 0.00102838012 : f32
    %46 = vector.broadcast %cst_19 : f32 to vector<2x3x6x6xf32>
    %47 = arith.mulf %46, %45 : vector<2x3x6x6xf32>
    %48 = arith.addf %44, %47 : vector<2x3x6x6xf32>
    %49 = vector.shape_cast %1 : vector<2x3x16x16xf32> to vector<96x16xf32>
    %cst_20 = arith.constant dense<0.000000e+00> : vector<96x6xf32>
    %50 = tpu.matmul %49, %2, %cst_20 {dimension_numbers = #tpu.dot_dimension_numbers<[1], [0], [0], [1], [0, 0, 1, 1], [], []>} : vector<96x16xf32>, vector<16x6xf32>, vector<96x6xf32> -> vector<96x6xf32>
    %51 = vector.shape_cast %50 : vector<96x6xf32> to vector<2x3x16x6xf32>
    %52 = vector.extract_strided_slice %51 {offsets = [0, 0, 0, 0], sizes = [2, 3, 6, 6], strides = [1, 1, 1, 1]} : vector<2x3x16x6xf32> to vector<2x3x6x6xf32>
    %cst_21 = arith.constant 0.00102838012 : f32
    %53 = vector.broadcast %cst_21 : f32 to vector<2x3x6x6xf32>
    %54 = arith.mulf %53, %52 : vector<2x3x6x6xf32>
    %55 = vector.extract_strided_slice %51 {offsets = [0, 0, 1, 0], sizes = [2, 3, 6, 6], strides = [1, 1, 1, 1]} : vector<2x3x16x6xf32> to vector<2x3x6x6xf32>
    %cst_22 = arith.constant 0.00759875821 : f32
    %56 = vector.broadcast %cst_22 : f32 to vector<2x3x6x6xf32>
    %57 = arith.mulf %56, %55 : vector<2x3x6x6xf32>
    %58 = arith.addf %54, %57 : vector<2x3x6x6xf32>
    %59 = vector.extract_strided_slice %51 {offsets = [0, 0, 2, 0], sizes = [2, 3, 6, 6], strides = [1, 1, 1, 1]} : vector<2x3x16x6xf32> to vector<2x3x6x6xf32>
    %cst_23 = arith.constant 0.0360007733 : f32
    %60 = vector.broadcast %cst_23 : f32 to vector<2x3x6x6xf32>
    %61 = arith.mulf %60, %59 : vector<2x3x6x6xf32>
    %62 = arith.addf %58, %61 : vector<2x3x6x6xf32>
    %63 = vector.extract_strided_slice %51 {offsets = [0, 0, 3, 0], sizes = [2, 3, 6, 6], strides = [1, 1, 1, 1]} : vector<2x3x16x6xf32> to vector<2x3x6x6xf32>
    %cst_24 = arith.constant 0.109360687 : f32
    %64 = vector.broadcast %cst_24 : f32 to vector<2x3x6x6xf32>
    %65 = arith.mulf %64, %63 : vector<2x3x6x6xf32>
    %66 = arith.addf %62, %65 : vector<2x3x6x6xf32>
    %67 = vector.extract_strided_slice %51 {offsets = [0, 0, 4, 0], sizes = [2, 3, 6, 6], strides = [1, 1, 1, 1]} : vector<2x3x16x6xf32> to vector<2x3x6x6xf32>
    %cst_25 = arith.constant 0.213005543 : f32
    %68 = vector.broadcast %cst_25 : f32 to vector<2x3x6x6xf32>
    %69 = arith.mulf %68, %67 : vector<2x3x6x6xf32>
    %70 = arith.addf %66, %69 : vector<2x3x6x6xf32>
    %71 = vector.extract_strided_slice %51 {offsets = [0, 0, 5, 0], sizes = [2, 3, 6, 6], strides = [1, 1, 1, 1]} : vector<2x3x16x6xf32> to vector<2x3x6x6xf32>
    %cst_26 = arith.constant 0.266011715 : f32
    %72 = vector.broadcast %cst_26 : f32 to vector<2x3x6x6xf32>
    %73 = arith.mulf %72, %71 : vector<2x3x6x6xf32>
    %74 = arith.addf %70, %73 : vector<2x3x6x6xf32>
    %75 = vector.extract_strided_slice %51 {offsets = [0, 0, 6, 0], sizes = [2, 3, 6, 6], strides = [1, 1, 1, 1]} : vector<2x3x16x6xf32> to vector<2x3x6x6xf32>
    %cst_27 = arith.constant 0.213005543 : f32
    %76 = vector.broadcast %cst_27 : f32 to vector<2x3x6x6xf32>
    %77 = arith.mulf %76, %75 : vector<2x3x6x6xf32>
    %78 = arith.addf %74, %77 : vector<2x3x6x6xf32>
    %79 = vector.extract_strided_slice %51 {offsets = [0, 0, 7, 0], sizes = [2, 3, 6, 6], strides = [1, 1, 1, 1]} : vector<2x3x16x6xf32> to vector<2x3x6x6xf32>
    %cst_28 = arith.constant 0.109360687 : f32
    %80 = vector.broadcast %cst_28 : f32 to vector<2x3x6x6xf32>
    %81 = arith.mulf %80, %79 : vector<2x3x6x6xf32>
    %82 = arith.addf %78, %81 : vector<2x3x6x6xf32>
    %83 = vector.extract_strided_slice %51 {offsets = [0, 0, 8, 0], sizes = [2, 3, 6, 6], strides = [1, 1, 1, 1]} : vector<2x3x16x6xf32> to vector<2x3x6x6xf32>
    %cst_29 = arith.constant 0.0360007733 : f32
    %84 = vector.broadcast %cst_29 : f32 to vector<2x3x6x6xf32>
    %85 = arith.mulf %84, %83 : vector<2x3x6x6xf32>
    %86 = arith.addf %82, %85 : vector<2x3x6x6xf32>
    %87 = vector.extract_strided_slice %51 {offsets = [0, 0, 9, 0], sizes = [2, 3, 6, 6], strides = [1, 1, 1, 1]} : vector<2x3x16x6xf32> to vector<2x3x6x6xf32>
    %cst_30 = arith.constant 0.00759875821 : f32
    %88 = vector.broadcast %cst_30 : f32 to vector<2x3x6x6xf32>
    %89 = arith.mulf %88, %87 : vector<2x3x6x6xf32>
    %90 = arith.addf %86, %89 : vector<2x3x6x6xf32>
    %91 = vector.extract_strided_slice %51 {offsets = [0, 0, 10, 0], sizes = [2, 3, 6, 6], strides = [1, 1, 1, 1]} : vector<2x3x16x6xf32> to vector<2x3x6x6xf32>
    %cst_31 = arith.constant 0.00102838012 : f32
    %92 = vector.broadcast %cst_31 : f32 to vector<2x3x6x6xf32>
    %93 = arith.mulf %92, %91 : vector<2x3x6x6xf32>
    %94 = arith.addf %90, %93 : vector<2x3x6x6xf32>
    %95 = arith.mulf %0, %0 : vector<2x3x16x16xf32>
    %96 = vector.shape_cast %95 : vector<2x3x16x16xf32> to vector<96x16xf32>
    %cst_32 = arith.constant dense<0.000000e+00> : vector<96x6xf32>
    %97 = tpu.matmul %96, %2, %cst_32 {dimension_numbers = #tpu.dot_dimension_numbers<[1], [0], [0], [1], [0, 0, 1, 1], [], []>} : vector<96x16xf32>, vector<16x6xf32>, vector<96x6xf32> -> vector<96x6xf32>
    %98 = vector.shape_cast %97 : vector<96x6xf32> to vector<2x3x16x6xf32>
    %99 = vector.extract_strided_slice %98 {offsets = [0, 0, 0, 0], sizes = [2, 3, 6, 6], strides = [1, 1, 1, 1]} : vector<2x3x16x6xf32> to vector<2x3x6x6xf32>
    %cst_33 = arith.constant 0.00102838012 : f32
    %100 = vector.broadcast %cst_33 : f32 to vector<2x3x6x6xf32>
    %101 = arith.mulf %100, %99 : vector<2x3x6x6xf32>
    %102 = vector.extract_strided_slice %98 {offsets = [0, 0, 1, 0], sizes = [2, 3, 6, 6], strides = [1, 1, 1, 1]} : vector<2x3x16x6xf32> to vector<2x3x6x6xf32>
    %cst_34 = arith.constant 0.00759875821 : f32
    %103 = vector.broadcast %cst_34 : f32 to vector<2x3x6x6xf32>
    %104 = arith.mulf %103, %102 : vector<2x3x6x6xf32>
    %105 = arith.addf %101, %104 : vector<2x3x6x6xf32>
    %106 = vector.extract_strided_slice %98 {offsets = [0, 0, 2, 0], sizes = [2, 3, 6, 6], strides = [1, 1, 1, 1]} : vector<2x3x16x6xf32> to vector<2x3x6x6xf32>
    %cst_35 = arith.constant 0.0360007733 : f32
    %107 = vector.broadcast %cst_35 : f32 to vector<2x3x6x6xf32>
    %108 = arith.mulf %107, %106 : vector<2x3x6x6xf32>
    %109 = arith.addf %105, %108 : vector<2x3x6x6xf32>
    %110 = vector.extract_strided_slice %98 {offsets = [0, 0, 3, 0], sizes = [2, 3, 6, 6], strides = [1, 1, 1, 1]} : vector<2x3x16x6xf32> to vector<2x3x6x6xf32>
    %cst_36 = arith.constant 0.109360687 : f32
    %111 = vector.broadcast %cst_36 : f32 to vector<2x3x6x6xf32>
    %112 = arith.mulf %111, %110 : vector<2x3x6x6xf32>
    %113 = arith.addf %109, %112 : vector<2x3x6x6xf32>
    %114 = vector.extract_strided_slice %98 {offsets = [0, 0, 4, 0], sizes = [2, 3, 6, 6], strides = [1, 1, 1, 1]} : vector<2x3x16x6xf32> to vector<2x3x6x6xf32>
    %cst_37 = arith.constant 0.213005543 : f32
    %115 = vector.broadcast %cst_37 : f32 to vector<2x3x6x6xf32>
    %116 = arith.mulf %115, %114 : vector<2x3x6x6xf32>
    %117 = arith.addf %113, %116 : vector<2x3x6x6xf32>
    %118 = vector.extract_strided_slice %98 {offsets = [0, 0, 5, 0], sizes = [2, 3, 6, 6], strides = [1, 1, 1, 1]} : vector<2x3x16x6xf32> to vector<2x3x6x6xf32>
    %cst_38 = arith.constant 0.266011715 : f32
    %119 = vector.broadcast %cst_38 : f32 to vector<2x3x6x6xf32>
    %120 = arith.mulf %119, %118 : vector<2x3x6x6xf32>
    %121 = arith.addf %117, %120 : vector<2x3x6x6xf32>
    %122 = vector.extract_strided_slice %98 {offsets = [0, 0, 6, 0], sizes = [2, 3, 6, 6], strides = [1, 1, 1, 1]} : vector<2x3x16x6xf32> to vector<2x3x6x6xf32>
    %cst_39 = arith.constant 0.213005543 : f32
    %123 = vector.broadcast %cst_39 : f32 to vector<2x3x6x6xf32>
    %124 = arith.mulf %123, %122 : vector<2x3x6x6xf32>
    %125 = arith.addf %121, %124 : vector<2x3x6x6xf32>
    %126 = vector.extract_strided_slice %98 {offsets = [0, 0, 7, 0], sizes = [2, 3, 6, 6], strides = [1, 1, 1, 1]} : vector<2x3x16x6xf32> to vector<2x3x6x6xf32>
    %cst_40 = arith.constant 0.109360687 : f32
    %127 = vector.broadcast %cst_40 : f32 to vector<2x3x6x6xf32>
    %128 = arith.mulf %127, %126 : vector<2x3x6x6xf32>
    %129 = arith.addf %125, %128 : vector<2x3x6x6xf32>
    %130 = vector.extract_strided_slice %98 {offsets = [0, 0, 8, 0], sizes = [2, 3, 6, 6], strides = [1, 1, 1, 1]} : vector<2x3x16x6xf32> to vector<2x3x6x6xf32>
    %cst_41 = arith.constant 0.0360007733 : f32
    %131 = vector.broadcast %cst_41 : f32 to vector<2x3x6x6xf32>
    %132 = arith.mulf %131, %130 : vector<2x3x6x6xf32>
    %133 = arith.addf %129, %132 : vector<2x3x6x6xf32>
    %134 = vector.extract_strided_slice %98 {offsets = [0, 0, 9, 0], sizes = [2, 3, 6, 6], strides = [1, 1, 1, 1]} : vector<2x3x16x6xf32> to vector<2x3x6x6xf32>
    %cst_42 = arith.constant 0.00759875821 : f32
    %135 = vector.broadcast %cst_42 : f32 to vector<2x3x6x6xf32>
    %136 = arith.mulf %135, %134 : vector<2x3x6x6xf32>
    %137 = arith.addf %133, %136 : vector<2x3x6x6xf32>
    %138 = vector.extract_strided_slice %98 {offsets = [0, 0, 10, 0], sizes = [2, 3, 6, 6], strides = [1, 1, 1, 1]} : vector<2x3x16x6xf32> to vector<2x3x6x6xf32>
    %cst_43 = arith.constant 0.00102838012 : f32
    %139 = vector.broadcast %cst_43 : f32 to vector<2x3x6x6xf32>
    %140 = arith.mulf %139, %138 : vector<2x3x6x6xf32>
    %141 = arith.addf %137, %140 : vector<2x3x6x6xf32>
    %142 = arith.mulf %1, %1 : vector<2x3x16x16xf32>
    %143 = vector.shape_cast %142 : vector<2x3x16x16xf32> to vector<96x16xf32>
    %cst_44 = arith.constant dense<0.000000e+00> : vector<96x6xf32>
    %144 = tpu.matmul %143, %2, %cst_44 {dimension_numbers = #tpu.dot_dimension_numbers<[1], [0], [0], [1], [0, 0, 1, 1], [], []>} : vector<96x16xf32>, vector<16x6xf32>, vector<96x6xf32> -> vector<96x6xf32>
    %145 = vector.shape_cast %144 : vector<96x6xf32> to vector<2x3x16x6xf32>
    %146 = vector.extract_strided_slice %145 {offsets = [0, 0, 0, 0], sizes = [2, 3, 6, 6], strides = [1, 1, 1, 1]} : vector<2x3x16x6xf32> to vector<2x3x6x6xf32>
    %cst_45 = arith.constant 0.00102838012 : f32
    %147 = vector.broadcast %cst_45 : f32 to vector<2x3x6x6xf32>
    %148 = arith.mulf %147, %146 : vector<2x3x6x6xf32>
    %149 = vector.extract_strided_slice %145 {offsets = [0, 0, 1, 0], sizes = [2, 3, 6, 6], strides = [1, 1, 1, 1]} : vector<2x3x16x6xf32> to vector<2x3x6x6xf32>
    %cst_46 = arith.constant 0.00759875821 : f32
    %150 = vector.broadcast %cst_46 : f32 to vector<2x3x6x6xf32>
    %151 = arith.mulf %150, %149 : vector<2x3x6x6xf32>
    %152 = arith.addf %148, %151 : vector<2x3x6x6xf32>
    %153 = vector.extract_strided_slice %145 {offsets = [0, 0, 2, 0], sizes = [2, 3, 6, 6], strides = [1, 1, 1, 1]} : vector<2x3x16x6xf32> to vector<2x3x6x6xf32>
    %cst_47 = arith.constant 0.0360007733 : f32
    %154 = vector.broadcast %cst_47 : f32 to vector<2x3x6x6xf32>
    %155 = arith.mulf %154, %153 : vector<2x3x6x6xf32>
    %156 = arith.addf %152, %155 : vector<2x3x6x6xf32>
    %157 = vector.extract_strided_slice %145 {offsets = [0, 0, 3, 0], sizes = [2, 3, 6, 6], strides = [1, 1, 1, 1]} : vector<2x3x16x6xf32> to vector<2x3x6x6xf32>
    %cst_48 = arith.constant 0.109360687 : f32
    %158 = vector.broadcast %cst_48 : f32 to vector<2x3x6x6xf32>
    %159 = arith.mulf %158, %157 : vector<2x3x6x6xf32>
    %160 = arith.addf %156, %159 : vector<2x3x6x6xf32>
    %161 = vector.extract_strided_slice %145 {offsets = [0, 0, 4, 0], sizes = [2, 3, 6, 6], strides = [1, 1, 1, 1]} : vector<2x3x16x6xf32> to vector<2x3x6x6xf32>
    %cst_49 = arith.constant 0.213005543 : f32
    %162 = vector.broadcast %cst_49 : f32 to vector<2x3x6x6xf32>
    %163 = arith.mulf %162, %161 : vector<2x3x6x6xf32>
    %164 = arith.addf %160, %163 : vector<2x3x6x6xf32>
    %165 = vector.extract_strided_slice %145 {offsets = [0, 0, 5, 0], sizes = [2, 3, 6, 6], strides = [1, 1, 1, 1]} : vector<2x3x16x6xf32> to vector<2x3x6x6xf32>
    %cst_50 = arith.constant 0.266011715 : f32
    %166 = vector.broadcast %cst_50 : f32 to vector<2x3x6x6xf32>
    %167 = arith.mulf %166, %165 : vector<2x3x6x6xf32>
    %168 = arith.addf %164, %167 : vector<2x3x6x6xf32>
    %169 = vector.extract_strided_slice %145 {offsets = [0, 0, 6, 0], sizes = [2, 3, 6, 6], strides = [1, 1, 1, 1]} : vector<2x3x16x6xf32> to vector<2x3x6x6xf32>
    %cst_51 = arith.constant 0.213005543 : f32
    %170 = vector.broadcast %cst_51 : f32 to vector<2x3x6x6xf32>
    %171 = arith.mulf %170, %169 : vector<2x3x6x6xf32>
    %172 = arith.addf %168, %171 : vector<2x3x6x6xf32>
    %173 = vector.extract_strided_slice %145 {offsets = [0, 0, 7, 0], sizes = [2, 3, 6, 6], strides = [1, 1, 1, 1]} : vector<2x3x16x6xf32> to vector<2x3x6x6xf32>
    %cst_52 = arith.constant 0.109360687 : f32
    %174 = vector.broadcast %cst_52 : f32 to vector<2x3x6x6xf32>
    %175 = arith.mulf %174, %173 : vector<2x3x6x6xf32>
    %176 = arith.addf %172, %175 : vector<2x3x6x6xf32>
    %177 = vector.extract_strided_slice %145 {offsets = [0, 0, 8, 0], sizes = [2, 3, 6, 6], strides = [1, 1, 1, 1]} : vector<2x3x16x6xf32> to vector<2x3x6x6xf32>
    %cst_53 = arith.constant 0.0360007733 : f32
    %178 = vector.broadcast %cst_53 : f32 to vector<2x3x6x6xf32>
    %179 = arith.mulf %178, %177 : vector<2x3x6x6xf32>
    %180 = arith.addf %176, %179 : vector<2x3x6x6xf32>
    %181 = vector.extract_strided_slice %145 {offsets = [0, 0, 9, 0], sizes = [2, 3, 6, 6], strides = [1, 1, 1, 1]} : vector<2x3x16x6xf32> to vector<2x3x6x6xf32>
    %cst_54 = arith.constant 0.00759875821 : f32
    %182 = vector.broadcast %cst_54 : f32 to vector<2x3x6x6xf32>
    %183 = arith.mulf %182, %181 : vector<2x3x6x6xf32>
    %184 = arith.addf %180, %183 : vector<2x3x6x6xf32>
    %185 = vector.extract_strided_slice %145 {offsets = [0, 0, 10, 0], sizes = [2, 3, 6, 6], strides = [1, 1, 1, 1]} : vector<2x3x16x6xf32> to vector<2x3x6x6xf32>
    %cst_55 = arith.constant 0.00102838012 : f32
    %186 = vector.broadcast %cst_55 : f32 to vector<2x3x6x6xf32>
    %187 = arith.mulf %186, %185 : vector<2x3x6x6xf32>
    %188 = arith.addf %184, %187 : vector<2x3x6x6xf32>
    %189 = arith.mulf %0, %1 : vector<2x3x16x16xf32>
    %190 = vector.shape_cast %189 : vector<2x3x16x16xf32> to vector<96x16xf32>
    %cst_56 = arith.constant dense<0.000000e+00> : vector<96x6xf32>
    %191 = tpu.matmul %190, %2, %cst_56 {dimension_numbers = #tpu.dot_dimension_numbers<[1], [0], [0], [1], [0, 0, 1, 1], [], []>} : vector<96x16xf32>, vector<16x6xf32>, vector<96x6xf32> -> vector<96x6xf32>
    %192 = vector.shape_cast %191 : vector<96x6xf32> to vector<2x3x16x6xf32>
    %193 = vector.extract_strided_slice %192 {offsets = [0, 0, 0, 0], sizes = [2, 3, 6, 6], strides = [1, 1, 1, 1]} : vector<2x3x16x6xf32> to vector<2x3x6x6xf32>
    %cst_57 = arith.constant 0.00102838012 : f32
    %194 = vector.broadcast %cst_57 : f32 to vector<2x3x6x6xf32>
    %195 = arith.mulf %194, %193 : vector<2x3x6x6xf32>
    %196 = vector.extract_strided_slice %192 {offsets = [0, 0, 1, 0], sizes = [2, 3, 6, 6], strides = [1, 1, 1, 1]} : vector<2x3x16x6xf32> to vector<2x3x6x6xf32>
    %cst_58 = arith.constant 0.00759875821 : f32
    %197 = vector.broadcast %cst_58 : f32 to vector<2x3x6x6xf32>
    %198 = arith.mulf %197, %196 : vector<2x3x6x6xf32>
    %199 = arith.addf %195, %198 : vector<2x3x6x6xf32>
    %200 = vector.extract_strided_slice %192 {offsets = [0, 0, 2, 0], sizes = [2, 3, 6, 6], strides = [1, 1, 1, 1]} : vector<2x3x16x6xf32> to vector<2x3x6x6xf32>
    %cst_59 = arith.constant 0.0360007733 : f32
    %201 = vector.broadcast %cst_59 : f32 to vector<2x3x6x6xf32>
    %202 = arith.mulf %201, %200 : vector<2x3x6x6xf32>
    %203 = arith.addf %199, %202 : vector<2x3x6x6xf32>
    %204 = vector.extract_strided_slice %192 {offsets = [0, 0, 3, 0], sizes = [2, 3, 6, 6], strides = [1, 1, 1, 1]} : vector<2x3x16x6xf32> to vector<2x3x6x6xf32>
    %cst_60 = arith.constant 0.109360687 : f32
    %205 = vector.broadcast %cst_60 : f32 to vector<2x3x6x6xf32>
    %206 = arith.mulf %205, %204 : vector<2x3x6x6xf32>
    %207 = arith.addf %203, %206 : vector<2x3x6x6xf32>
    %208 = vector.extract_strided_slice %192 {offsets = [0, 0, 4, 0], sizes = [2, 3, 6, 6], strides = [1, 1, 1, 1]} : vector<2x3x16x6xf32> to vector<2x3x6x6xf32>
    %cst_61 = arith.constant 0.213005543 : f32
    %209 = vector.broadcast %cst_61 : f32 to vector<2x3x6x6xf32>
    %210 = arith.mulf %209, %208 : vector<2x3x6x6xf32>
    %211 = arith.addf %207, %210 : vector<2x3x6x6xf32>
    %212 = vector.extract_strided_slice %192 {offsets = [0, 0, 5, 0], sizes = [2, 3, 6, 6], strides = [1, 1, 1, 1]} : vector<2x3x16x6xf32> to vector<2x3x6x6xf32>
    %cst_62 = arith.constant 0.266011715 : f32
    %213 = vector.broadcast %cst_62 : f32 to vector<2x3x6x6xf32>
    %214 = arith.mulf %213, %212 : vector<2x3x6x6xf32>
    %215 = arith.addf %211, %214 : vector<2x3x6x6xf32>
    %216 = vector.extract_strided_slice %192 {offsets = [0, 0, 6, 0], sizes = [2, 3, 6, 6], strides = [1, 1, 1, 1]} : vector<2x3x16x6xf32> to vector<2x3x6x6xf32>
    %cst_63 = arith.constant 0.213005543 : f32
    %217 = vector.broadcast %cst_63 : f32 to vector<2x3x6x6xf32>
    %218 = arith.mulf %217, %216 : vector<2x3x6x6xf32>
    %219 = arith.addf %215, %218 : vector<2x3x6x6xf32>
    %220 = vector.extract_strided_slice %192 {offsets = [0, 0, 7, 0], sizes = [2, 3, 6, 6], strides = [1, 1, 1, 1]} : vector<2x3x16x6xf32> to vector<2x3x6x6xf32>
    %cst_64 = arith.constant 0.109360687 : f32
    %221 = vector.broadcast %cst_64 : f32 to vector<2x3x6x6xf32>
    %222 = arith.mulf %221, %220 : vector<2x3x6x6xf32>
    %223 = arith.addf %219, %222 : vector<2x3x6x6xf32>
    %224 = vector.extract_strided_slice %192 {offsets = [0, 0, 8, 0], sizes = [2, 3, 6, 6], strides = [1, 1, 1, 1]} : vector<2x3x16x6xf32> to vector<2x3x6x6xf32>
    %cst_65 = arith.constant 0.0360007733 : f32
    %225 = vector.broadcast %cst_65 : f32 to vector<2x3x6x6xf32>
    %226 = arith.mulf %225, %224 : vector<2x3x6x6xf32>
    %227 = arith.addf %223, %226 : vector<2x3x6x6xf32>
    %228 = vector.extract_strided_slice %192 {offsets = [0, 0, 9, 0], sizes = [2, 3, 6, 6], strides = [1, 1, 1, 1]} : vector<2x3x16x6xf32> to vector<2x3x6x6xf32>
    %cst_66 = arith.constant 0.00759875821 : f32
    %229 = vector.broadcast %cst_66 : f32 to vector<2x3x6x6xf32>
    %230 = arith.mulf %229, %228 : vector<2x3x6x6xf32>
    %231 = arith.addf %227, %230 : vector<2x3x6x6xf32>
    %232 = vector.extract_strided_slice %192 {offsets = [0, 0, 10, 0], sizes = [2, 3, 6, 6], strides = [1, 1, 1, 1]} : vector<2x3x16x6xf32> to vector<2x3x6x6xf32>
    %cst_67 = arith.constant 0.00102838012 : f32
    %233 = vector.broadcast %cst_67 : f32 to vector<2x3x6x6xf32>
    %234 = arith.mulf %233, %232 : vector<2x3x6x6xf32>
    %235 = arith.addf %231, %234 : vector<2x3x6x6xf32>
    %236 = arith.mulf %48, %48 : vector<2x3x6x6xf32>
    %237 = arith.mulf %94, %94 : vector<2x3x6x6xf32>
    %238 = arith.mulf %48, %94 : vector<2x3x6x6xf32>
    %239 = arith.subf %141, %236 : vector<2x3x6x6xf32>
    %240 = arith.subf %188, %237 : vector<2x3x6x6xf32>
    %241 = arith.subf %235, %238 : vector<2x3x6x6xf32>
    %cst_68 = arith.constant 2.000000e+00 : f32
    %242 = vector.broadcast %cst_68 : f32 to vector<2x3x6x6xf32>
    %243 = arith.mulf %242, %241 : vector<2x3x6x6xf32>
    %cst_69 = arith.constant 5.852250e+01 : f32
    %244 = vector.broadcast %cst_69 : f32 to vector<2x3x6x6xf32>
    %245 = arith.addf %243, %244 : vector<2x3x6x6xf32>
    %246 = arith.addf %239, %240 : vector<2x3x6x6xf32>
    %cst_70 = arith.constant 5.852250e+01 : f32
    %247 = vector.broadcast %cst_70 : f32 to vector<2x3x6x6xf32>
    %248 = arith.addf %246, %247 : vector<2x3x6x6xf32>
    %249 = arith.divf %245, %248 : vector<2x3x6x6xf32>
    %cst_71 = arith.constant 0.000000e+00 : f32
    %250 = vector.broadcast %cst_71 : f32 to vector<2x3x6x6xf32>
    %251 = arith.maximumf %249, %250 : vector<2x3x6x6xf32>
    %cst_72 = arith.constant 2.000000e+00 : f32
    %252 = vector.broadcast %cst_72 : f32 to vector<2x3x6x6xf32>
    %253 = arith.mulf %252, %238 : vector<2x3x6x6xf32>
    %cst_73 = arith.constant 6.502500e+00 : f32
    %254 = vector.broadcast %cst_73 : f32 to vector<2x3x6x6xf32>
    %255 = arith.addf %253, %254 : vector<2x3x6x6xf32>
    %256 = arith.addf %236, %237 : vector<2x3x6x6xf32>
    %cst_74 = arith.constant 6.502500e+00 : f32
    %257 = vector.broadcast %cst_74 : f32 to vector<2x3x6x6xf32>
    %258 = arith.addf %256, %257 : vector<2x3x6x6xf32>
    %259 = arith.divf %255, %258 : vector<2x3x6x6xf32>
    %260 = arith.mulf %259, %251 : vector<2x3x6x6xf32>
    %cst_75 = arith.constant dense<0.000000e+00> : vector<2x3x6xf32>
    %261 = vector.multi_reduction <add>, %260, %cst_75 [3] : vector<2x3x6x6xf32> to vector<2x3x6xf32>
    %cst_76 = arith.constant dense<0.000000e+00> : vector<2x3xf32>
    %262 = vector.multi_reduction <add>, %261, %cst_76 [2] : vector<2x3x6xf32> to vector<2x3xf32>
    %cst_77 = arith.constant dense<0.000000e+00> : vector<2xf32>
    %263 = vector.multi_reduction <add>, %262, %cst_77 [1] : vector<2x3xf32> to vector<2xf32>
    %264 = vector.shape_cast %263 : vector<2xf32> to vector<2x1xf32>
    %cst_78 = arith.constant 0.00925925932 : f32
    %265 = vector.broadcast %cst_78 : f32 to vector<2x1xf32>
    %266 = arith.mulf %264, %265 : vector<2x1xf32>
    %267 = vector.shape_cast %266 : vector<2x1xf32> to vector<2x1x1xf32>
    %268 = vector.shape_cast %267 : vector<2x1x1xf32> to vector<2x1x1xf32>
    %269 = vector.broadcast %268 : vector<2x1x1xf32> to vector<2x8x128xf32>
    %c0_79 = arith.constant 0 : index
    %c0_80 = arith.constant 0 : index
    %c0_81 = arith.constant 0 : index
    %270 = vector.load %arg4[%c0_79, %c0_80, %c0_81] : memref<2x8x128xf32, #tpu.memory_space<vmem>>, vector<2x8x128xf32>
    tpu.vector_store %arg4[%c0_79, %c0_80, %c0_81], %269 {strides = array<i32>} : memref<2x8x128xf32, #tpu.memory_space<vmem>>, vector<2x8x128xf32>,
    return
  }
  func.func @transform_0(%arg0: i32) -> (i32, i32, i32, i32) {
    %c0_i32 = arith.constant 0 : i32
    %c0_i32_0 = arith.constant 0 : i32
    %c0_i32_1 = arith.constant 0 : i32
    %c0_i32_2 = arith.constant 0 : i32
    return %arg0, %c0_i32, %c0_i32_0, %c0_i32_1 : i32, i32, i32, i32
  }
  func.func @transform_1(%arg0: i32) -> (i32, i32, i32, i32) {
    %c0_i32 = arith.constant 0 : i32
    %c0_i32_0 = arith.constant 0 : i32
    %c0_i32_1 = arith.constant 0 : i32
    %c0_i32_2 = arith.constant 0 : i32
    return %arg0, %c0_i32, %c0_i32_0, %c0_i32_1 : i32, i32, i32, i32
  }
  func.func @transform_2(%arg0: i32) -> (i32, i32) {
    %c0_i32 = arith.constant 0 : i32
    %c0_i32_0 = arith.constant 0 : i32
    %c0_i32_1 = arith.constant 0 : i32
    return %c0_i32, %c0_i32_0 : i32, i32
  }
  func.func @transform_3(%arg0: i32) -> (i32, i32, i32) {
    %c0_i32 = arith.constant 0 : i32
    %c0_i32_0 = arith.constant 0 : i32
    %c0_i32_1 = arith.constant 0 : i32
    return %arg0, %c0_i32, %c0_i32_0 : i32, i32, i32
  }
}

</mosaic_0001>

<bundles_post_ra>
// kernel: tpu_custom_call.1
= control target key start
LH: loop header
LB: loop body
LE: loop exit
PB: predicated region body
PF: predicated region fallthrough
CT: control target
= control target key end

     0   :  { %8 = vsyncpa [#allocation3], 0  ;;  %s4556_s0 = inlined_call_operand.hbm [shape: f32[2,3,16,16], index: 0, kind: input, shape index: {}]   ;;  %s4557_s1 = inlined_call_operand.hbm [shape: f32[2,3,16,16], index: 1, kind: input, shape index: {}]   ;;  %s4558_s2 = inlined_call_operand.vmem [shape: f32[16,6], index: 2, kind: input, shape index: {}]   ;;  %s4559_s3 = inlined_call_operand.hbm [shape: f32[2,8,128], index: 3, kind: output, shape index: {}]  }
   0x1   :  { %9 = vsyncpa [#allocation6], 0 }
   0x2   :  { %10 = vsyncpa [#allocation4], 0  ;;  %s15_s14 = sshll.u32 %s4556_s0, 4  ;;  %s2895_s15 = smov [#allocation2]   ;;  %s16_s14 = int_to_ptr.hbm [resolvable:$true] %s15_s14 }
   0x3   :  { %s17_s16 = sshll.u32 %s2895_s15, 4  ;;  %s28_s19 = sshll.u32 %s4557_s1, 4  ;;  %s18_s16 = int_to_ptr.vmem [resolvable:$true] %s17_s16  ;;  %s29_s19 = int_to_ptr.hbm [resolvable:$true] %s28_s19 }
   0x4   :  { %s2896_s20 = smov 128   ;;  %s2897_s21 = smov 8  }
   0x5   :  { %23 = dma.hbm_to_vmem [thread:$0]  %s16_s14, 1536, %s18_s16, [#allocation3], %s2896_s20, %s2896_s20, %s2897_s21  }
   0x6   :  { %s2898_s22 = smov [#allocation5]  }
   0x7   :  { %s30_s23 = sshll.u32 %s2898_s22, 4  ;;  %s31_s23 = int_to_ptr.vmem [resolvable:$true] %s30_s23 }
   0x8   :  { %36 = dma.hbm_to_vmem [thread:$0]  %s29_s19, 1536, %s31_s23, [#allocation6], %s2896_s20, %s2896_s20, %s2897_s21  }
   0x9   :  { %2889 = dma.done.wait [#allocation3], 1536  }
   0xa   :  { %2890 = vsyncadd [#allocation3], 4294965760 }
   0xb   :  { %2891 = dma.done.wait [#allocation6], 1536  }
   0xc   :  { %2892 = vsyncadd [#allocation6], 4294965760  ;;  %v72_v0 = vld [vmem:[%s4558_s2 + $0x8] sm:$0xff]  ;;  %v71_v1 = vld [vmem:[%s4558_s2] sm:$0xff]  ;;  %vm73_vm0 = vcmask 130048   ;;  %vm253_vm1 = vcmask 1044480  }
   0xd   :  { %124 = vmatpush.msra.mxu0 %v72_v0  ;;  %2782 = vmatpush.msra.mxu1 %v72_v0  ;;  %v47_v2 = vld [vmem:[#allocation2] sm:$0xff]  ;;  %v50_v3 = vld [vmem:[#allocation2 + $0x18] sm:$0xff]  ;;  %v2938_v4 = vld [vmem:[#allocation2 + $0x30] sm:$0xff]  ;;  %vm308_vm2 = vcmask 1043456   ;;  %vm425_vm3 = vcmask 1040384   ;;  %vm363_vm4 = vcmask 1042432  }
   0xe   :  { %2783 = vmatpush.msra.mxu2 %v72_v0  ;;  %2784 = vmatpush.msra.mxu3 %v72_v0  ;;  %v2940_v5 = vld [vmem:[#allocation2 + $0x48] sm:$0xff]  ;;  %v51_v7 = vld [vmem:[#allocation2 + $0x20] sm:$0xff]  ;;  %v2948_v8 = vld [vmem:[#allocation2 + $0x38] sm:$0xff]  ;;  %v977_v16 = vmul.f32 %v47_v2, %v47_v2  ;;  %v980_v28 = vmul.f32 %v50_v3, %v50_v3  ;;  %v983_v40 = vmul.f32 %v2938_v4, %v2938_v4  ;;  %vm394_vm5 = vcmask 1041408   ;;  %s2899_s2 = smov [#allocation7]   ;;  %s2708_s29 = sshll.u32 %s4559_s3, 4  ;;  %s2709_s29 = int_to_ptr.hbm [resolvable:$true] %s2708_s29 }
   0xf   :  { %125 = vmatpush.msra.mxu0 %v71_v1  ;;  %2785 = vmatpush.msra.mxu1 %v71_v1  ;;  %v48_v6 = vld [vmem:[#allocation2 + $0x8] sm:$0xff]  ;;  %v2950_v9 = vld [vmem:[#allocation2 + $0x50] sm:$0xff]  ;;  %v2958_v12 = vld [vmem:[#allocation2 + $0x40] sm:$0xff]  ;;  %v981_v32 = vmul.f32 %v51_v7, %v51_v7  ;;  %v984_v44 = vmul.f32 %v2948_v8, %v2948_v8  ;;  %v986_v52 = vmul.f32 %v2940_v5, %v2940_v5  ;;  %vm2636_vm13 = vcmask 46080   ;;  %s2706_s26 = sshll.u32 %s2899_s2, 4  ;;  %s2707_s26 = int_to_ptr.vmem [resolvable:$true] %s2706_s26 }
  0x10   :  { %2786 = vmatpush.msra.mxu2 %v71_v1  ;;  %2787 = vmatpush.msra.mxu3 %v71_v1  ;;  %v49_v10 = vld [vmem:[#allocation2 + $0x10] sm:$0xff]  ;;  %v52_v11 = vld [vmem:[#allocation2 + $0x28] sm:$0xff]  ;;  %v2960_v13 = vld [vmem:[#allocation2 + $0x58] sm:$0xff]  ;;  %v978_v20 = vmul.f32 %v48_v6, %v48_v6  ;;  %v985_v48 = vmul.f32 %v2958_v12, %v2958_v12  ;;  %v987_v56 = vmul.f32 %v2950_v9, %v2950_v9 }
  0x11   :  { %2722 = vmatmul.msk.f32.vlgmr.msra.gmra.mxu0 %vm73_vm0, %v47_v2  ;;  %2725 = vmatmul.msk.f32.vlgmr.msra.gmra.mxu1 %vm73_vm0, %v50_v3  ;;  %v59_v14 = vld [vmem:[#allocation5] sm:$0xff]  ;;  %v60_v18 = vld [vmem:[#allocation5 + $0x8] sm:$0xff]  ;;  %v61_v22 = vld [vmem:[#allocation5 + $0x10] sm:$0xff]  ;;  %v979_v24 = vmul.f32 %v49_v10, %v49_v10  ;;  %v982_v36 = vmul.f32 %v52_v11, %v52_v11  ;;  %v988_v60 = vmul.f32 %v2960_v13, %v2960_v13 }
  0x12   :  { %2728 = vmatmul.msk.f32.vlgmr.msra.gmra.mxu2 %vm73_vm0, %v2938_v4  ;;  %2731 = vmatmul.msk.f32.vlgmr.msra.gmra.mxu3 %vm73_vm0, %v2940_v5  ;;  %v1899_v15 = vmul.f32 %v59_v14, %v47_v2  ;;  %v1438_v17 = vmul.f32 %v59_v14, %v59_v14  ;;  %v1900_v19 = vmul.f32 %v60_v18, %v48_v6  ;;  %v62_v26 = vld [vmem:[#allocation5 + $0x18] sm:$0xff]  ;;  %v63_v30 = vld [vmem:[#allocation5 + $0x20] sm:$0xff]  ;;  %v64_v34 = vld [vmem:[#allocation5 + $0x28] sm:$0xff] }
  0x13   :  { %1039 = vmatpush.msrb.mxu2 %v72_v0  ;;  %1500 = vmatpush.msrb.mxu3 %v72_v0  ;;  %v1439_v21 = vmul.f32 %v60_v18, %v60_v18  ;;  %v1901_v23 = vmul.f32 %v61_v22, %v49_v10  ;;  %v1440_v25 = vmul.f32 %v61_v22, %v61_v22  ;;  %v65_v38 = vld [vmem:[#allocation5 + $0x30] sm:$0xff]  ;;  %v66_v42 = vld [vmem:[#allocation5 + $0x38] sm:$0xff]  ;;  %v67_v46 = vld [vmem:[#allocation5 + $0x40] sm:$0xff] }
  0x14   :  { %578 = vmatpush.msrb.mxu1 %v72_v0  ;;  %1961 = vmatpush.msrb.mxu0 %v72_v0  ;;  %v1902_v27 = vmul.f32 %v62_v26, %v50_v3  ;;  %v1441_v29 = vmul.f32 %v62_v26, %v62_v26  ;;  %v1903_v31 = vmul.f32 %v63_v30, %v51_v7  ;;  %v68_v50 = vld [vmem:[#allocation5 + $0x48] sm:$0xff]  ;;  %v69_v54 = vld [vmem:[#allocation5 + $0x50] sm:$0xff]  ;;  %v70_v58 = vld [vmem:[#allocation5 + $0x58] sm:$0xff] }
  0x15   :  { %1040 = vmatpush.msrb.mxu2 %v71_v1  ;;  %1501 = vmatpush.msrb.mxu3 %v71_v1  ;;  %v1442_v33 = vmul.f32 %v63_v30, %v63_v30  ;;  %v1904_v35 = vmul.f32 %v64_v34, %v52_v11  ;;  %v1443_v37 = vmul.f32 %v64_v34, %v64_v34 }
  0x16   :  { %579 = vmatpush.msrb.mxu1 %v71_v1  ;;  %1962 = vmatpush.msrb.mxu0 %v71_v1  ;;  %v1905_v39 = vmul.f32 %v65_v38, %v2938_v4  ;;  %v1444_v41 = vmul.f32 %v65_v38, %v65_v38  ;;  %v1906_v43 = vmul.f32 %v66_v42, %v2948_v8 }
  0x17   :  { %v1445_v45 = vmul.f32 %v66_v42, %v66_v42  ;;  %v1907_v47 = vmul.f32 %v67_v46, %v2958_v12  ;;  %v1446_v49 = vmul.f32 %v67_v46, %v67_v46  ;;  %v1908_v51 = vmul.f32 %v68_v50, %v2940_v5 }
  0x18   :  { %v1447_v53 = vmul.f32 %v68_v50, %v68_v50  ;;  %v1909_v55 = vmul.f32 %v69_v54, %v2950_v9  ;;  %v1448_v57 = vmul.f32 %v69_v54, %v69_v54  ;;  %v1910_v59 = vmul.f32 %v70_v58, %v2960_v13 }
  0x19   :  { %2723 = vmatmul.msk.f32.gmra.mxu0 %vm73_vm0, %v48_v6  ;;  %2726 = vmatmul.msk.f32.gmra.mxu1 %vm73_vm0, %v51_v7  ;;  %v1449_v61 = vmul.f32 %v70_v58, %v70_v58 }
  0x1a   :  { %2729 = vmatmul.msk.f32.gmra.mxu2 %vm73_vm0, %v2948_v8  ;;  %2732 = vmatmul.msk.f32.gmra.mxu3 %vm73_vm0, %v2950_v9 }
  0x21   :  { %2724 = vmatmul.msk.f32.gmra.mxu0 %vm73_vm0, %v49_v10  ;;  %2727 = vmatmul.msk.f32.gmra.mxu1 %vm73_vm0, %v52_v11 }
  0x22   :  { %2730 = vmatmul.msk.f32.gmra.mxu2 %vm73_vm0, %v2958_v12  ;;  %2733 = vmatmul.msk.f32.gmra.mxu3 %vm73_vm0, %v2960_v13 }
  0x29   :  { %2734 = vmatmul.msk.f32.vlgmr.msrb.gmra.mxu1 %vm73_vm0, %v59_v14  ;;  %2770 = vmatmul.msk.f32.vlgmr.msrb.gmra.mxu0 %vm73_vm0, %v1899_v15 }
  0x2a   :  { %2746 = vmatmul.msk.f32.vlgmr.msrb.gmra.mxu2 %vm73_vm0, %v977_v16  ;;  %2758 = vmatmul.msk.f32.vlgmr.msrb.gmra.mxu3 %vm73_vm0, %v1438_v17 }
  0x31   :  { %2735 = vmatmul.msk.f32.gmra.mxu1 %vm73_vm0, %v60_v18  ;;  %2771 = vmatmul.msk.f32.gmra.mxu0 %vm73_vm0, %v1900_v19 }
  0x32   :  { %2747 = vmatmul.msk.f32.gmra.mxu2 %vm73_vm0, %v978_v20  ;;  %2759 = vmatmul.msk.f32.gmra.mxu3 %vm73_vm0, %v1439_v21 }
  0x39   :  { %2736 = vmatmul.msk.f32.gmra.mxu1 %vm73_vm0, %v61_v22  ;;  %2772 = vmatmul.msk.f32.gmra.mxu0 %vm73_vm0, %v1901_v23 }
  0x3a   :  { %2748 = vmatmul.msk.f32.gmra.mxu2 %vm73_vm0, %v979_v24  ;;  %2760 = vmatmul.msk.f32.gmra.mxu3 %vm73_vm0, %v1440_v25 }
  0x41   :  { %2737 = vmatmul.msk.f32.gmra.mxu1 %vm73_vm0, %v62_v26  ;;  %2773 = vmatmul.msk.f32.gmra.mxu0 %vm73_vm0, %v1902_v27 }
  0x42   :  { %2749 = vmatmul.msk.f32.gmra.mxu2 %vm73_vm0, %v980_v28  ;;  %2761 = vmatmul.msk.f32.gmra.mxu3 %vm73_vm0, %v1441_v29 }
  0x49   :  { %2738 = vmatmul.msk.f32.gmra.mxu1 %vm73_vm0, %v63_v30  ;;  %2774 = vmatmul.msk.f32.gmra.mxu0 %vm73_vm0, %v1903_v31 }
  0x4a   :  { %2750 = vmatmul.msk.f32.gmra.mxu2 %vm73_vm0, %v981_v32  ;;  %2762 = vmatmul.msk.f32.gmra.mxu3 %vm73_vm0, %v1442_v33 }
  0x51   :  { %2739 = vmatmul.msk.f32.gmra.mxu1 %vm73_vm0, %v64_v34  ;;  %2775 = vmatmul.msk.f32.gmra.mxu0 %vm73_vm0, %v1904_v35 }
  0x52   :  { %2751 = vmatmul.msk.f32.gmra.mxu2 %vm73_vm0, %v982_v36  ;;  %2763 = vmatmul.msk.f32.gmra.mxu3 %vm73_vm0, %v1443_v37 }
  0x59   :  { %2740 = vmatmul.msk.f32.gmra.mxu1 %vm73_vm0, %v65_v38  ;;  %2776 = vmatmul.msk.f32.gmra.mxu0 %vm73_vm0, %v1905_v39 }
  0x5a   :  { %2752 = vmatmul.msk.f32.gmra.mxu2 %vm73_vm0, %v983_v40  ;;  %2764 = vmatmul.msk.f32.gmra.mxu3 %vm73_vm0, %v1444_v41 }
  0x61   :  { %2741 = vmatmul.msk.f32.gmra.mxu1 %vm73_vm0, %v66_v42  ;;  %2777 = vmatmul.msk.f32.gmra.mxu0 %vm73_vm0, %v1906_v43 }
  0x62   :  { %2753 = vmatmul.msk.f32.gmra.mxu2 %vm73_vm0, %v984_v44  ;;  %2765 = vmatmul.msk.f32.gmra.mxu3 %vm73_vm0, %v1445_v45 }
  0x69   :  { %2742 = vmatmul.msk.f32.gmra.mxu1 %vm73_vm0, %v67_v46  ;;  %2778 = vmatmul.msk.f32.gmra.mxu0 %vm73_vm0, %v1907_v47 }
  0x6a   :  { %2754 = vmatmul.msk.f32.gmra.mxu2 %vm73_vm0, %v985_v48  ;;  %2766 = vmatmul.msk.f32.gmra.mxu3 %vm73_vm0, %v1446_v49 }
  0x71   :  { %2743 = vmatmul.msk.f32.gmra.mxu1 %vm73_vm0, %v68_v50  ;;  %2779 = vmatmul.msk.f32.gmra.mxu0 %vm73_vm0, %v1908_v51 }
  0x72   :  { %2755 = vmatmul.msk.f32.gmra.mxu2 %vm73_vm0, %v986_v52  ;;  %2767 = vmatmul.msk.f32.gmra.mxu3 %vm73_vm0, %v1447_v53 }
  0x79   :  { %2744 = vmatmul.msk.f32.gmra.mxu1 %vm73_vm0, %v69_v54  ;;  %2780 = vmatmul.msk.f32.gmra.mxu0 %vm73_vm0, %v1909_v55 }
  0x7a   :  { %2756 = vmatmul.msk.f32.gmra.mxu2 %vm73_vm0, %v987_v56  ;;  %2768 = vmatmul.msk.f32.gmra.mxu3 %vm73_vm0, %v1448_v57 }
  0x81   :  { %2745 = vmatmul.msk.f32.gmra.mxu1 %vm73_vm0, %v70_v58  ;;  %2781 = vmatmul.msk.f32.gmra.mxu0 %vm73_vm0, %v1910_v59 }
  0x82   :  { %2757 = vmatmul.msk.f32.gmra.mxu2 %vm73_vm0, %v988_v60  ;;  %2769 = vmatmul.msk.f32.gmra.mxu3 %vm73_vm0, %v1449_v61 }
  0x8e   :  { %v127_v62 = vpop.f32.mrf.mxu0  ;;  %v136_v6 = vpop.f32.mrf.mxu1 }
  0x8f   :  { %v169_v63 = vmul.f32 0.007598758, %v127_v62  ;;  %v199_v0 = vmul.f32 0.036000773, %v127_v62  ;;  %v3034_v1 = vmul.f32 0.10936069, %v127_v62 }
  0x90   :  { %v3036_v2 = vmul.f32 0.21300554, %v127_v62  ;;  %v163_v3 = vmul.f32 0.0010283801, %v127_v62  ;;  %v3038_v5 = vmul.f32 0.26601171, %v127_v62 }
  0x91   :  { %v181_v4 = vrot.slane %v169_v63, 1  ;;  %v3040_v8 = vmul.f32 0.10936069, %v136_v6  ;;  %v3042_v9 = vmul.f32 0.21300554, %v136_v6  ;;  %v211_v10 = vrot.slane %v199_v0, 2 }
  0x92   :  { %v254_v11 = vrot.slane %v3034_v1, 3  ;;  %v309_v12 = vrot.slane %v3036_v2, 4  ;;  %v364_v15 = vrot.slane %v3038_v5, 5  ;;  %v395_v16 = vrot.slane %v3036_v2, 6 }
  0x93   :  { %4582 = vst [vmem:[#allocation11_spill] sm:$0xff] %v3040_v8  ;;  %v193_v14 = vadd.f32 %v181_v4, %v163_v3  ;;  %v426_v17 = vrot.slane %v3034_v1, 7  ;;  %v258_v18 = vrot.slane %v3040_v8, 3  ;;  %v313_v19 = vrot.slane %v3042_v9, 4 }
  0x94   :  { %v3051_v20 = vmul.f32 0.26601171, %v136_v6  ;;  %v3056_v23 = vmul.f32 0.007598758, %v136_v6  ;;  %v3058_v24 = vmul.f32 0.0010283801, %v136_v6 }
  0x95   :  { %v145_v7 = vpop.f32.mrf.mxu2  ;;  %v3064_v30 = vpop.f32.mrf.mxu3  ;;  %v3066_v31 = vmul.f32 0.036000773, %v136_v6  ;;  %v223_v34 = vadd.f32 %v211_v10, %v193_v14 }
  0x96   :  { %v172_v13 = vmul.f32 0.007598758, %v145_v7  ;;  %v3054_v22 = vpop.f32.mrf.mxu0  ;;  %4583 = vst [vmem:[#allocation12_spill] sm:$0xff] %v3056_v23  ;;  %v202_v28 = vmul.f32 0.036000773, %v145_v7  ;;  %v368_v38 = vrot.slane %v3051_v20, 5  ;;  %v139_v59 = vpop.f32.mrf.mxu1 }
  0x97   :  { %4584 = vst [vmem:[#allocation13_spill] sm:$0xff] %v3058_v24  ;;  %v3061_v25 = vmul.f32 0.10936069, %v3054_v22  ;;  %v235_v29 = vmul.f32 0.10936069, %v145_v7 }
  0x98   :  { %v184_v27 = vrot.slane %v172_v13, 1  ;;  %4585 = vst [vmem:[#allocation14_spill] sm:$0xff] %v3066_v31  ;;  %v290_v32 = vmul.f32 0.21300554, %v145_v7  ;;  %v345_v33 = vmul.f32 0.26601171, %v145_v7 }
  0x99   :  { %v166_v35 = vmul.f32 0.0010283801, %v145_v7  ;;  %v255_v36 = vrot.slane %v3061_v25, 3  ;;  %v285_v37 = vmul.f32 0.21300554, %v3054_v22  ;;  %v214_v44 = vrot.slane %v202_v28, 2 }
  0x9a   :  { %v3074_v41 = vmul.f32 0.10936069, %v3064_v30  ;;  %v263_v45 = vrot.slane %v235_v29, 3  ;;  %v340_v46 = vmul.f32 0.26601171, %v3054_v22  ;;  %v318_v47 = vrot.slane %v290_v32, 4 }
  0x9b   :  { %v196_v43 = vadd.f32 %v184_v27, %v166_v35  ;;  %v373_v48 = vrot.slane %v345_v33, 5  ;;  %v404_v49 = vrot.slane %v290_v32, 6  ;;  %v435_v50 = vrot.slane %v235_v29, 7 }
  0x9c   :  { %4586 = vst [vmem:[#allocation15_spill] sm:$0xff] %v3074_v41  ;;  %v3080_v51 = vmul.f32 0.21300554, %v3064_v30  ;;  %v256_v52 = vsel %vm253_vm1, %v254_v11, %v255_v36  ;;  %v310_v53 = vrot.slane %v285_v37, 4  ;;  %v267_v55 = vrot.slane %v3074_v41, 3 }
  0x9d   :  { %v3076_v42 = vpop.f32.mrf.mxu2  ;;  %v3086_v56 = vmul.f32 0.26601171, %v3064_v30  ;;  %v3090_v58 = vmul.f32 0.007598758, %v3064_v30  ;;  %v226_v60 = vadd.f32 %v214_v44, %v196_v43  ;;  %v3093_v61 = vmul.f32 0.0010283801, %v3064_v30 }
  0x9e   :  { %v236_v54 = vmul.f32 0.10936069, %v3076_v42  ;;  %v365_v62 = vrot.slane %v340_v46, 5  ;;  %v171_v63 = vmul.f32 0.007598758, %v139_v59  ;;  %v278_v0 = vadd.f32 %v256_v52, %v223_v34 }
  0x9f   :  { %4587 = vst [vmem:[#allocation16_spill] sm:$0xff] %v3090_v58  ;;  %v291_v4 = vmul.f32 0.21300554, %v3076_v42  ;;  %v346_v6 = vmul.f32 0.26601171, %v3076_v42  ;;  %v311_v7 = vsel %vm308_vm2, %v309_v12, %v310_v53  ;;  %v396_v10 = vrot.slane %v285_v37, 6  ;;  %v157_v37 = vpop.f32.mrf.mxu3 }
  0xa0   :  { %4588 = vst [vmem:[#allocation17_spill] sm:$0xff] %v3093_v61  ;;  %v264_v3 = vrot.slane %v236_v54, 3  ;;  %v165_v11 = vmul.f32 0.0010283801, %v139_v59  ;;  %v436_v13 = vrot.slane %v236_v54, 7  ;;  %v333_v36 = vadd.f32 %v311_v7, %v278_v0 }
  0xa1   :  { %v201_v14 = vmul.f32 0.036000773, %v139_v59  ;;  %v319_v28 = vrot.slane %v291_v4, 4  ;;  %v374_v29 = vrot.slane %v346_v6, 5  ;;  %v3099_v32 = vmul.f32 0.10936069, %v139_v59 }
  0xa2   :  { %v265_v27 = vsel %vm253_vm1, %v263_v45, %v264_v3  ;;  %v405_v35 = vrot.slane %v291_v4, 6  ;;  %v437_v34 = vsel %vm425_vm3, %v435_v50, %v436_v13  ;;  %v183_v43 = vrot.slane %v171_v63, 1  ;;  %v3118_v4 = vpop.f32.mrf.mxu1 }
  0xa3   :  { %v281_v33 = vadd.f32 %v265_v27, %v226_v60  ;;  %v320_v44 = vsel %vm308_vm2, %v318_v47, %v319_v28  ;;  %v375_v12 = vsel %vm363_vm4, %v373_v48, %v374_v29  ;;  %v366_v46 = vsel %vm363_vm4, %v364_v15, %v365_v62 }
  0xa4   :  { %v3107_v45 = vmul.f32 0.21300554, %v139_v59  ;;  %v406_v53 = vsel %vm394_vm5, %v404_v49, %v405_v35  ;;  %v322_v54 = vrot.slane %v3080_v51, 4  ;;  %v377_v50 = vrot.slane %v3086_v56, 5 }
  0xa5   :  { %v336_v52 = vadd.f32 %v320_v44, %v281_v33  ;;  %v408_v60 = vrot.slane %v3080_v51, 6  ;;  %v427_v47 = vrot.slane %v3061_v25, 7  ;;  %v397_v48 = vsel %vm394_vm5, %v395_v16, %v396_v10 }
  0xa6   :  { %v343_v5 = vmul.f32 0.26601171, %v139_v59  ;;  %v174_v15 = vmul.f32 0.007598758, %v157_v37  ;;  %v388_v62 = vadd.f32 %v366_v46, %v333_v36  ;;  %v195_v0 = vadd.f32 %v183_v43, %v165_v11  ;;  %v133_v11 = vpop.f32.mrf.mxu0 }
  0xa7   :  { %v391_v63 = vadd.f32 %v375_v12, %v336_v52  ;;  %v213_v3 = vrot.slane %v201_v14, 2  ;;  %v260_v49 = vrot.slane %v3099_v32, 3  ;;  %v315_v6 = vrot.slane %v3107_v45, 4  ;;  %v3161_v21 = vpop.f32.mrf.mxu3 }
  0xa8   :  { %v432_v7 = vrot.slane %v3099_v32, 7  ;;  %v459_v25 = vmul.f32 0.036000773, %v3076_v42  ;;  %v3126_v2 = vsel %vm425_vm3, %v426_v17, %v427_v47  ;;  %v204_v16 = vmul.f32 0.036000773, %v157_v37 }
  0xa9   :  { %v422_v13 = vadd.f32 %v406_v53, %v391_v63  ;;  %v3128_v59 = vmul.f32 0.10936069, %v157_v37  ;;  %v3130_v10 = vmul.f32 0.21300554, %v157_v37  ;;  %v186_v27 = vrot.slane %v174_v15, 1 }
  0xaa   :  { %v3132_v28 = vmul.f32 0.26601171, %v157_v37  ;;  %v234_v29 = vmul.f32 0.10936069, %v3118_v4  ;;  %v3135_v32 = vadd.f32 %v397_v48, %v388_v62  ;;  %v225_v33 = vadd.f32 %v213_v3, %v195_v0 }
  0xab   :  { %v453_v14 = vadd.f32 %v437_v34, %v422_v13  ;;  %v370_v35 = vrot.slane %v343_v5, 5  ;;  %v401_v1 = vrot.slane %v3107_v45, 6  ;;  %v168_v36 = vmul.f32 0.0010283801, %v157_v37 }
  0xac   :  { %v164_v43 = vmul.f32 0.0010283801, %v133_v11  ;;  %v170_v44 = vmul.f32 0.007598758, %v133_v11  ;;  %v216_v12 = vrot.slane %v204_v16, 2  ;;  %v269_v46 = vrot.slane %v3128_v59, 3 }
  0xad   :  { %v3138_v17 = vadd.f32 %v459_v25, %v453_v14  ;;  %v441_v34 = vrot.slane %v3128_v59, 7  ;;  %v261_v52 = vrot.slane %v234_v29, 3  ;;  %v198_v53 = vadd.f32 %v186_v27, %v168_v36  ;;  %v151_v36 = vpop.f32.mrf.mxu2 }
  0xae   :  { %v324_v47 = vrot.slane %v3130_v10, 4  ;;  %v379_v48 = vrot.slane %v3132_v28, 5  ;;  %v289_v5 = vmul.f32 0.21300554, %v3118_v4  ;;  %v200_v63 = vmul.f32 0.036000773, %v133_v11 }
  0xaf   :  { %4589 = vst [vmem:[#allocation18_spill] sm:$0xff] %v3138_v17  ;;  %v262_v45 = vsel %vm253_vm1, %v260_v49, %v261_v52  ;;  %v344_v37 = vmul.f32 0.26601171, %v3118_v4  ;;  %v433_v15 = vrot.slane %v234_v29, 7  ;;  %v182_v62 = vrot.slane %v170_v44, 1 }
  0xb0   :  { %v280_v0 = vadd.f32 %v262_v45, %v225_v33  ;;  %v316_v3 = vrot.slane %v289_v5, 4  ;;  %v402_v13 = vrot.slane %v289_v5, 6  ;;  %v410_v25 = vrot.slane %v3130_v10, 6 }
  0xb1   :  { %v3148_v16 = vmul.f32 0.10936069, %v133_v11  ;;  %v371_v14 = vrot.slane %v344_v37, 5  ;;  %v434_v27 = vsel %vm425_vm3, %v432_v7, %v433_v15  ;;  %v3151_v57 = vmul.f32 0.21300554, %v133_v11 }
  0xb2   :  { %v3153_v40 = vmul.f32 0.26601171, %v133_v11  ;;  %v317_v49 = vsel %vm308_vm2, %v315_v6, %v316_v3  ;;  %v403_v29 = vsel %vm394_vm5, %v401_v1, %v402_v13  ;;  %v228_v44 = vadd.f32 %v216_v12, %v198_v53 }
  0xb3   :  { %4590 = vst [vmem:[#allocation19_spill] sm:$0xff] %v3148_v16  ;;  %v212_v33 = vrot.slane %v200_v63, 2  ;;  %v335_v52 = vadd.f32 %v317_v49, %v280_v0  ;;  %v372_v5 = vsel %vm363_vm4, %v370_v35, %v371_v14  ;;  %v194_v10 = vadd.f32 %v182_v62, %v164_v43 }
  0xb4   :  { %v173_v45 = vmul.f32 0.007598758, %v151_v36  ;;  %v203_v39 = vmul.f32 0.036000773, %v151_v36  ;;  %v3158_v37 = vmul.f32 0.10936069, %v151_v36 }
  0xb5   :  { %v390_v7 = vadd.f32 %v372_v5, %v335_v52  ;;  %v458_v15 = vmul.f32 0.036000773, %v3118_v4  ;;  %v292_v26 = vmul.f32 0.21300554, %v151_v36  ;;  %v347_v11 = vmul.f32 0.26601171, %v151_v36 }
  0xb6   :  { %4591 = vst [vmem:[#allocation20_spill] sm:$0xff] %v3158_v37  ;;  %v167_v6 = vmul.f32 0.0010283801, %v151_v36  ;;  %v185_v3 = vrot.slane %v173_v45, 1  ;;  %v215_v1 = vrot.slane %v203_v39, 2  ;;  %v266_v12 = vrot.slane %v3158_v37, 3 }
  0xb7   :  { %v421_v53 = vadd.f32 %v403_v29, %v390_v7  ;;  %v321_v63 = vrot.slane %v292_v26, 4  ;;  %v376_v35 = vrot.slane %v347_v11, 5  ;;  %v407_v43 = vrot.slane %v292_v26, 6 }
  0xb8   :  { %v197_v62 = vadd.f32 %v185_v3, %v167_v6  ;;  %v268_v0 = vsel %vm253_vm1, %v266_v12, %v267_v55  ;;  %v240_v13 = vmul.f32 0.10936069, %v3161_v21  ;;  %v295_v14 = vmul.f32 0.21300554, %v3161_v21 }
  0xb9   :  { %v452_v49 = vadd.f32 %v434_v27, %v421_v53  ;;  %v323_v39 = vsel %vm308_vm2, %v321_v63, %v322_v54  ;;  %v378_v36 = vsel %vm363_vm4, %v376_v35, %v377_v50  ;;  %v3178_v26 = vsel %vm394_vm5, %v407_v43, %v408_v60  ;;  %v581_v63 = vpop.f32.mrf.mxu1 }
  0xba   :  { %4592 = vst [vmem:[#allocation21_spill] sm:$0xff] %v3178_v26  ;;  %v227_v29 = vadd.f32 %v215_v1, %v197_v62  ;;  %v270_v55 = vrot.slane %v240_v13, 3  ;;  %v325_v52 = vrot.slane %v295_v14, 4  ;;  %v350_v5 = vmul.f32 0.26601171, %v3161_v21 }
  0xbb   :  { %v257_v27 = vrot.slane %v3148_v16, 3  ;;  %v3182_v45 = vadd.f32 %v458_v15, %v452_v49  ;;  %v411_v7 = vrot.slane %v295_v14, 6  ;;  %v442_v54 = vrot.slane %v240_v13, 7 }
  0xbc   :  { %v282_v11 = vadd.f32 %v268_v0, %v227_v29  ;;  %v271_v56 = vsel %vm253_vm1, %v269_v46, %v270_v55  ;;  %v326_v51 = vsel %vm308_vm2, %v324_v47, %v325_v52  ;;  %v380_v50 = vrot.slane %v350_v5, 5 }
  0xbd   :  { %4593 = vst [vmem:[#allocation22_spill] sm:$0xff] %v3182_v45  ;;  %v224_v60 = vadd.f32 %v212_v33, %v194_v10  ;;  %v283_v6 = vadd.f32 %v271_v56, %v228_v44  ;;  %v412_v3 = vsel %vm394_vm5, %v410_v25, %v411_v7  ;;  %v443_v1 = vsel %vm425_vm3, %v441_v34, %v442_v54  ;;  %v1042_v56 = vpop.f32.mrf.mxu2 }
  0xbe   :  { %v3193_v15 = vmul.f32 0.036000773, %v3064_v30  ;;  %v3196_v12 = vmul.f32 0.007598758, %v3054_v22  ;;  %v337_v53 = vadd.f32 %v323_v39, %v282_v11  ;;  %v381_v46 = vsel %vm363_vm4, %v379_v48, %v380_v50 }
  0xbf   :  { %v450_v47 = vadd.f32 %v3126_v2, %v3135_v32  ;;  %v456_v25 = vmul.f32 0.036000773, %v3054_v22  ;;  %v3205_v59 = vmul.f32 0.007598758, %v3076_v42  ;;  %v338_v34 = vadd.f32 %v326_v51, %v283_v6 }
  0xc0   :  { %4594 = vst [vmem:[#allocation23_spill] sm:$0xff] %v3193_v15  ;;  %v259_v30 = vsel %vm253_vm1, %v257_v27, %v258_v18  ;;  %v312_v44 = vrot.slane %v3151_v57, 4  ;;  %v367_v33 = vrot.slane %v3153_v40, 5  ;;  %v3212_v28 = vadd.f32 %v378_v36, %v337_v53  ;;  %v1964_v27 = vpop.f32.mrf.mxu0 }
  0xc1   :  { %4595 = vst [vmem:[#allocation24_spill] sm:$0xff] %v3205_v59  ;;  %v279_v32 = vadd.f32 %v259_v30, %v224_v60  ;;  %v393_v10 = vadd.f32 %v381_v46, %v338_v34  ;;  %v3218_v43 = vmul.f32 0.0010283801, %v3054_v22  ;;  %v398_v18 = vrot.slane %v3151_v57, 6 }
  0xc2   :  { %4596 = vst [vmem:[#allocation25_spill] sm:$0xff] %v3212_v28  ;;  %v3222_v62 = vmul.f32 0.007598758, %v3118_v4  ;;  %v3224_v40 = vadd.f32 %v456_v25, %v450_v47  ;;  %v3228_v13 = vmul.f32 0.0010283801, %v3076_v42  ;;  %v314_v49 = vsel %vm308_vm2, %v312_v44, %v313_v19 }
  0xc3   :  { %v424_v14 = vadd.f32 %v412_v3, %v393_v10  ;;  %v369_v22 = vsel %vm363_vm4, %v367_v33, %v368_v38  ;;  %v623_v39 = vmul.f32 0.007598758, %v581_v63  ;;  %v334_v36 = vadd.f32 %v314_v49, %v279_v32  ;;  %v3272_v32 = vpop.f32.mrf.mxu1 }
  0xc4   :  { %4597 = vst [vmem:[#allocation26_spill] sm:$0xff] %v3222_v62  ;;  %v3238_v29 = vmul.f32 0.0010283801, %v3118_v4  ;;  %v461_v42 = vmul.f32 0.036000773, %v3161_v21  ;;  %v4600_v52 = vrot.slane %v3042_v9, 6 }
  0xc5   :  { %4598 = vst [vmem:[#allocation27_spill] sm:$0xff] %v3228_v13  ;;  %v455_v55 = vadd.f32 %v443_v1, %v424_v14  ;;  %v3248_v20 = vmul.f32 0.007598758, %v3161_v21  ;;  %v3251_v38 = vmul.f32 0.0010283801, %v3161_v21  ;;  %v635_v51 = vrot.slane %v623_v39, 1 }
  0xc6   :  { %4599 = vst [vmem:[#allocation28_spill] sm:$0xff] %v3238_v29  ;;  %v3244_v5 = vsel %vm394_vm5, %v398_v18, %v4600_v52  ;;  %v617_v4 = vmul.f32 0.0010283801, %v581_v63  ;;  %v653_v54 = vmul.f32 0.036000773, %v581_v63  ;;  %v3260_v6 = vadd.f32 %v369_v22, %v334_v36 }
  0xc7   :  { %4601 = vst [vmem:[#allocation29_spill] sm:$0xff] %v3244_v5  ;;  %v3253_v7 = vadd.f32 %v461_v42, %v455_v55  ;;  %v2006_v11 = vmul.f32 0.007598758, %v1964_v27  ;;  %v3256_v50 = vmul.f32 0.10936069, %v581_v63 }
  0xc8   :  { %4602 = vst [vmem:[#allocation30_spill] sm:$0xff] %v3248_v20  ;;  %v3258_v60 = vmul.f32 0.21300554, %v581_v63  ;;  %v3262_v3 = vmul.f32 0.26601171, %v581_v63  ;;  %v665_v34 = vrot.slane %v653_v54, 2  ;;  %v647_v49 = vadd.f32 %v635_v51, %v617_v4 }
  0xc9   :  { %4603 = vst [vmem:[#allocation31_spill] sm:$0xff] %v3251_v38  ;;  %v2036_v21 = vmul.f32 0.036000773, %v1964_v27  ;;  %v3264_v1 = vmul.f32 0.10936069, %v1964_v27  ;;  %v2018_v44 = vrot.slane %v2006_v11, 1 }
  0xca   :  { %4604 = vst [vmem:[#allocation32_spill] sm:$0xff] %v3253_v7  ;;  %v3268_v47 = vmul.f32 0.21300554, %v1964_v27  ;;  %v1084_v25 = vmul.f32 0.007598758, %v1042_v56  ;;  %v707_v10 = vrot.slane %v3256_v50, 3  ;;  %v677_v48 = vadd.f32 %v665_v34, %v647_v49 }
  0xcb   :  { %v2000_v30 = vmul.f32 0.0010283801, %v1964_v27  ;;  %v3270_v33 = vmul.f32 0.26601171, %v1964_v27  ;;  %v761_v63 = vrot.slane %v3258_v60, 4  ;;  %v815_v22 = vrot.slane %v3262_v3, 5  ;;  %v1503_v27 = vpop.f32.mrf.mxu3 }
  0xcc   :  { %v2048_v39 = vrot.slane %v2036_v21, 2  ;;  %v1096_v52 = vrot.slane %v1084_v25, 1  ;;  %v3283_v54 = vmul.f32 0.10936069, %v3272_v32  ;;  %v1078_v53 = vmul.f32 0.0010283801, %v1042_v56 }
  0xcd   :  { %v2030_v11 = vadd.f32 %v2018_v44, %v2000_v30  ;;  %v1114_v2 = vmul.f32 0.036000773, %v1042_v56  ;;  %v3287_v51 = vmul.f32 0.10936069, %v1042_v56  ;;  %v738_v21 = vmul.f32 0.21300554, %v3272_v32 }
  0xce   :  { %v708_v3 = vrot.slane %v3283_v54, 3  ;;  %v3291_v9 = vmul.f32 0.21300554, %v1042_v56  ;;  %v3293_v25 = vmul.f32 0.26601171, %v1042_v56  ;;  %v1108_v19 = vadd.f32 %v1096_v52, %v1078_v53 }
  0xcf   :  { %v1545_v0 = vmul.f32 0.007598758, %v1503_v27  ;;  %v1575_v30 = vmul.f32 0.036000773, %v1503_v27  ;;  %v3295_v44 = vmul.f32 0.10936069, %v1503_v27  ;;  %v3298_v42 = vadd.f32 %v2048_v39, %v2030_v11  ;;  %v3310_v39 = vpop.f32.mrf.mxu2 }
  0xd0   :  { %v709_v57 = vsel %vm253_vm1, %v707_v10, %v708_v3  ;;  %v3300_v4 = vmul.f32 0.21300554, %v1503_v27  ;;  %v762_v35 = vrot.slane %v738_v21, 4  ;;  %v792_v46 = vmul.f32 0.26601171, %v3272_v32  ;;  %v3308_v10 = vpop.f32.mrf.mxu0 }
  0xd1   :  { %v1126_v55 = vrot.slane %v1114_v2, 2  ;;  %v1168_v34 = vrot.slane %v3287_v51, 3  ;;  %v1539_v49 = vmul.f32 0.0010283801, %v1503_v27  ;;  %v731_v56 = vadd.f32 %v709_v57, %v677_v48 }
  0xd2   :  { %v1222_v36 = vrot.slane %v3291_v9, 4  ;;  %v1276_v53 = vrot.slane %v3293_v25, 5  ;;  %v1557_v52 = vrot.slane %v1545_v0, 1  ;;  %v3306_v18 = vmul.f32 0.26601171, %v1503_v27 }
  0xd3   :  { %v1138_v11 = vadd.f32 %v1126_v55, %v1108_v19  ;;  %v1306_v3 = vrot.slane %v3291_v9, 6  ;;  %v1336_v2 = vrot.slane %v3287_v51, 7  ;;  %v1587_v14 = vrot.slane %v1575_v30, 2 }
  0xd4   :  { %v1629_v38 = vrot.slane %v3295_v44, 3  ;;  %v1683_v48 = vrot.slane %v3300_v4, 4  ;;  %v763_v57 = vsel %vm308_vm2, %v761_v63, %v762_v35  ;;  %v816_v25 = vrot.slane %v792_v46, 5 }
  0xd5   :  { %v785_v0 = vadd.f32 %v763_v57, %v731_v56  ;;  %v3318_v27 = vmul.f32 0.10936069, %v3308_v10  ;;  %v1145_v20 = vmul.f32 0.10936069, %v3310_v39  ;;  %v1199_v19 = vmul.f32 0.21300554, %v3310_v39 }
  0xd6   :  { %v1569_v55 = vadd.f32 %v1557_v52, %v1539_v49  ;;  %v1737_v9 = vrot.slane %v3306_v18, 5  ;;  %v876_v30 = vrot.slane %v3283_v54, 7  ;;  %v846_v7 = vrot.slane %v738_v21, 6  ;;  %v3334_v21 = vpop.f32.mrf.mxu3 }
  0xd7   :  { %v1169_v61 = vrot.slane %v1145_v20, 3  ;;  %v1223_v58 = vrot.slane %v1199_v19, 4  ;;  %v1253_v35 = vmul.f32 0.26601171, %v3310_v39  ;;  %v817_v63 = vsel %vm363_vm4, %v815_v22, %v816_v25 }
  0xd8   :  { %v905_v56 = vmul.f32 0.036000773, %v3272_v32  ;;  %v3330_v57 = vmul.f32 0.21300554, %v3308_v10  ;;  %v839_v49 = vadd.f32 %v817_v63, %v785_v0  ;;  %v2091_v18 = vrot.slane %v3318_v27, 3 }
  0xd9   :  { %v1170_v52 = vsel %vm253_vm1, %v1168_v34, %v1169_v61  ;;  %v1277_v54 = vrot.slane %v1253_v35, 5  ;;  %v1599_v51 = vadd.f32 %v1587_v14, %v1569_v55  ;;  %v4605_v15 = vrot.slane %v3256_v50, 7 }
  0xda   :  { %v3340_v22 = vmul.f32 0.007598758, %v3272_v32  ;;  %v1192_v25 = vadd.f32 %v1170_v52, %v1138_v11  ;;  %v4606_v37 = vrot.slane %v3258_v60, 6  ;;  %v2175_v63 = vmul.f32 0.26601171, %v3308_v10 }
  0xdb   :  { %v877_v46 = vsel %vm425_vm3, %v4605_v15, %v876_v30  ;;  %v1224_v61 = vsel %vm308_vm2, %v1222_v36, %v1223_v58  ;;  %v1307_v34 = vrot.slane %v1199_v19, 6  ;;  %v1606_v14 = vmul.f32 0.10936069, %v3334_v21 }
  0xdc   :  { %v847_v0 = vsel %vm394_vm5, %v4606_v37, %v846_v7  ;;  %v1246_v35 = vadd.f32 %v1224_v61, %v1192_v25  ;;  %v1660_v50 = vmul.f32 0.21300554, %v3334_v21  ;;  %v1714_v15 = vmul.f32 0.26601171, %v3334_v21 }
  0xdd   :  { %v869_v55 = vadd.f32 %v847_v0, %v839_v49  ;;  %v4607_v30 = vrot.slane %v3264_v1, 3  ;;  %v2145_v60 = vrot.slane %v3330_v57, 4  ;;  %v1278_v37 = vsel %vm363_vm4, %v1276_v53, %v1277_v54 }
  0xde   :  { %v1300_v7 = vadd.f32 %v1278_v37, %v1246_v35  ;;  %v1337_v52 = vrot.slane %v1145_v20, 7  ;;  %v1630_v58 = vrot.slane %v1606_v14, 3  ;;  %v1684_v36 = vrot.slane %v1660_v50, 4 }
  0xdf   :  { %v2092_v11 = vsel %vm253_vm1, %v4607_v30, %v2091_v18  ;;  %v3357_v25 = vmul.f32 0.0010283801, %v3272_v32  ;;  %v2199_v61 = vrot.slane %v2175_v63, 5  ;;  %v1308_v49 = vsel %vm394_vm5, %v1306_v3, %v1307_v34 }
  0xe0   :  { %v2114_v0 = vadd.f32 %v2092_v11, %v3298_v42  ;;  %v1330_v41 = vadd.f32 %v1308_v49, %v1300_v7  ;;  %v1631_v18 = vsel %vm253_vm1, %v1629_v38, %v1630_v58  ;;  %v1738_v30 = vrot.slane %v1714_v15, 5 }
  0xe1   :  { %v4608_v53 = vrot.slane %v3268_v47, 4  ;;  %v3367_v35 = vmul.f32 0.007598758, %v3308_v10  ;;  %v1653_v32 = vadd.f32 %v1631_v18, %v1599_v51  ;;  %v899_v37 = vadd.f32 %v877_v46, %v869_v55 }
  0xe2   :  { %v1338_v63 = vsel %vm425_vm3, %v1336_v2, %v1337_v52  ;;  %v1685_v3 = vsel %vm308_vm2, %v1683_v48, %v1684_v36  ;;  %v1768_v42 = vrot.slane %v1660_v50, 6  ;;  %v3373_v38 = vmul.f32 0.036000773, %v3308_v10 }
  0xe3   :  { %v2146_v20 = vsel %vm308_vm2, %v4608_v53, %v2145_v60  ;;  %v1360_v15 = vadd.f32 %v1338_v63, %v1330_v41  ;;  %v1707_v11 = vadd.f32 %v1685_v3, %v1653_v32  ;;  %v587_v60 = vpop.f32.mrf.mxu1  ;;  %v4609_v58 = vrot.slane %v3270_v33, 5  ;;  %v1970_v53 = vpop.f32.mrf.mxu0 }
  0xe4   :  { %v2168_v7 = vadd.f32 %v2146_v20, %v2114_v0  ;;  %v1739_v51 = vsel %vm363_vm4, %v1737_v9, %v1738_v30  ;;  %v624_v46 = vmul.f32 0.007598758, %v587_v60  ;;  %v1366_v2 = vmul.f32 0.036000773, %v3310_v39 }
  0xe5   :  { %v2200_v49 = vsel %vm363_vm4, %v4609_v58, %v2199_v61  ;;  %v1378_v48 = vmul.f32 0.007598758, %v3310_v39  ;;  %v1408_v50 = vmul.f32 0.0010283801, %v3310_v39  ;;  %v1761_v55 = vadd.f32 %v1739_v51, %v1707_v11 }
  0xe6   :  { %v3382_v52 = vadd.f32 %v905_v56, %v899_v37  ;;  %v4610_v36 = vrot.slane %v3300_v4, 6  ;;  %v1798_v0 = vrot.slane %v1606_v14, 7  ;;  %v1372_v61 = vadd.f32 %v1366_v2, %v1360_v15  ;;  %v1048_v2 = vpop.f32.mrf.mxu2 }
  0xe7   :  { %v1839_v9 = vmul.f32 0.007598758, %v3334_v21  ;;  %v654_v30 = vmul.f32 0.036000773, %v587_v60  ;;  %v3389_v20 = vadd.f32 %v2200_v49, %v2168_v7  ;;  %v618_v32 = vmul.f32 0.0010283801, %v587_v60 }
  0xe8   :  { %v1769_v33 = vsel %vm394_vm5, %v4610_v36, %v1768_v42  ;;  %v636_v39 = vrot.slane %v624_v46, 1  ;;  %v2007_v63 = vmul.f32 0.007598758, %v1970_v53  ;;  %v1390_v56 = vrot.slane %v1378_v48, 1 }
  0xe9   :  { %v1791_v18 = vadd.f32 %v1769_v33, %v1761_v55  ;;  %v1420_v37 = vrot.slane %v1408_v50, 2  ;;  %v1869_v3 = vmul.f32 0.0010283801, %v3334_v21  ;;  %v3392_v11 = vmul.f32 0.10936069, %v587_v60 }
  0xea   :  { %v4611_v4 = vrot.slane %v3295_v44, 7  ;;  %v1827_v42 = vmul.f32 0.036000773, %v3334_v21  ;;  %v3398_v15 = vmul.f32 0.21300554, %v587_v60  ;;  %v1402_v7 = vadd.f32 %v1390_v56, %v1372_v61 }
  0xeb   :  { %v3400_v58 = vmul.f32 0.26601171, %v587_v60  ;;  %v1851_v51 = vrot.slane %v1839_v9, 1  ;;  %v666_v46 = vrot.slane %v654_v30, 2  ;;  %v648_v48 = vadd.f32 %v636_v39, %v618_v32  ;;  %v3436_v13 = vpop.f32.mrf.mxu0 }
  0xec   :  { %v1799_v14 = vsel %vm425_vm3, %v4611_v4, %v1798_v0  ;;  %v2001_v50 = vmul.f32 0.0010283801, %v1970_v53  ;;  %v2019_v55 = vrot.slane %v2007_v63, 1  ;;  %v2037_v36 = vmul.f32 0.036000773, %v1970_v53  ;;  %v3415_v63 = vpop.f32.mrf.mxu1 }
  0xed   :  { %v1821_v49 = vadd.f32 %v1799_v14, %v1791_v18  ;;  %v1881_v33 = vrot.slane %v1869_v3, 2  ;;  %v710_v44 = vrot.slane %v3392_v11, 3  ;;  %v3403_v41 = vmul.f32 0.10936069, %v1970_v53 }
  0xee   :  { %v3405_v0 = vmul.f32 0.21300554, %v1970_v53  ;;  %v764_v21 = vrot.slane %v3398_v15, 4  ;;  %v3409_v61 = vmul.f32 0.26601171, %v1970_v53  ;;  %v3411_v9 = vadd.f32 %v1420_v37, %v1402_v7  ;;  %v3459_v31 = vpop.f32.mrf.mxu2 }
  0xef   :  { %v1085_v18 = vmul.f32 0.007598758, %v1048_v2  ;;  %v1833_v30 = vadd.f32 %v1827_v42, %v1821_v49  ;;  %v678_v56 = vadd.f32 %v666_v46, %v648_v48  ;;  %v2031_v3 = vadd.f32 %v2019_v55, %v2001_v50  ;;  %v1509_v49 = vpop.f32.mrf.mxu3 }
  0xf0   :  { %v2049_v4 = vrot.slane %v2037_v36, 2  ;;  %v1115_v14 = vmul.f32 0.036000773, %v1048_v2  ;;  %v2093_v54 = vrot.slane %v3403_v41, 3  ;;  %v2147_v34 = vrot.slane %v3405_v0, 4 }
  0xf1   :  { %v3419_v53 = vmul.f32 0.10936069, %v1048_v2  ;;  %v3421_v19 = vmul.f32 0.21300554, %v1048_v2  ;;  %v1097_v7 = vrot.slane %v1085_v18, 1  ;;  %v1863_v46 = vadd.f32 %v1851_v51, %v1833_v30 }
  0xf2   :  { %v3426_v39 = vmul.f32 0.10936069, %v3415_v63  ;;  %v1079_v50 = vmul.f32 0.0010283801, %v1048_v2  ;;  %v3429_v55 = vmul.f32 0.26601171, %v1048_v2  ;;  %v2061_v36 = vadd.f32 %v2049_v4, %v2031_v3 }
  0xf3   :  { %v1127_v32 = vrot.slane %v1115_v14, 2  ;;  %v740_v26 = vmul.f32 0.21300554, %v3415_v63  ;;  %v1171_v37 = vrot.slane %v3419_v53, 3  ;;  %v1546_v28 = vmul.f32 0.007598758, %v1509_v49 }
  0xf4   :  { %v711_v60 = vrot.slane %v3426_v39, 3  ;;  %v1109_v51 = vadd.f32 %v1097_v7, %v1079_v50  ;;  %v1576_v30 = vmul.f32 0.036000773, %v1509_v49  ;;  %v3438_v48 = vmul.f32 0.10936069, %v1509_v49 }
  0xf5   :  { %v3441_v3 = vadd.f32 %v1881_v33, %v1863_v46  ;;  %v3444_v14 = vmul.f32 0.21300554, %v1509_v49  ;;  %v3446_v59 = vmul.f32 0.26601171, %v1509_v49  ;;  %v765_v42 = vrot.slane %v740_v26, 4 }
  0xf6   :  { %v712_v2 = vsel %vm253_vm1, %v710_v44, %v711_v60  ;;  %v794_v17 = vmul.f32 0.26601171, %v3415_v63  ;;  %v3451_v7 = vmul.f32 0.10936069, %v3436_v13  ;;  %v1540_v50 = vmul.f32 0.0010283801, %v1509_v49 }
  0xf7   :  { %v1558_v29 = vrot.slane %v1546_v28, 1  ;;  %v732_v62 = vadd.f32 %v712_v2, %v678_v56  ;;  %v2123_v33 = vmul.f32 0.21300554, %v3436_v13  ;;  %v1139_v44 = vadd.f32 %v1127_v32, %v1109_v51 }
  0xf8   :  { %v1588_v60 = vrot.slane %v1576_v30, 2  ;;  %v1632_v46 = vrot.slane %v3438_v48, 3  ;;  %v2094_v4 = vrot.slane %v3451_v7, 3  ;;  %v2177_v23 = vmul.f32 0.26601171, %v3436_v13 }
  0xf9   :  { %v2148_v24 = vrot.slane %v2123_v33, 4  ;;  %v766_v56 = vsel %vm308_vm2, %v764_v21, %v765_v42  ;;  %v819_v49 = vrot.slane %v794_v17, 5  ;;  %v1570_v51 = vadd.f32 %v1558_v29, %v1540_v50 }
  0xfa   :  { %v2095_v32 = vsel %vm253_vm1, %v2093_v54, %v2094_v4  ;;  %v786_v30 = vadd.f32 %v766_v56, %v732_v62  ;;  %v849_v2 = vrot.slane %v740_v26, 6  ;;  %v879_v16 = vrot.slane %v3426_v39, 7 }
  0xfb   :  { %v3466_v45 = vmul.f32 0.007598758, %v3415_v63  ;;  %v2115_v18 = vadd.f32 %v2095_v32, %v2061_v36  ;;  %v1147_v8 = vmul.f32 0.10936069, %v3459_v31  ;;  %v1201_v5 = vmul.f32 0.21300554, %v3459_v31 }
  0xfc   :  { %v2149_v21 = vsel %vm308_vm2, %v2147_v34, %v2148_v24  ;;  %v2202_v17 = vrot.slane %v2177_v23, 5  ;;  %v1255_v54 = vmul.f32 0.26601171, %v3459_v31  ;;  %v4612_v62 = vrot.slane %v3400_v58, 5  ;;  %v3483_v24 = vpop.f32.mrf.mxu3 }
  0xfd   :  { %v906_v29 = vmul.f32 0.036000773, %v3415_v63  ;;  %v1172_v39 = vrot.slane %v1147_v8, 3  ;;  %v1226_v42 = vrot.slane %v1201_v5, 4  ;;  %v1600_v36 = vadd.f32 %v1588_v60, %v1570_v51 }
  0xfe   :  { %v820_v26 = vsel %vm363_vm4, %v4612_v62, %v819_v49  ;;  %v4613_v50 = vrot.slane %v3398_v15, 6  ;;  %v4614_v32 = vrot.slane %v3392_v11, 7  ;;  %v2169_v58 = vadd.f32 %v2149_v21, %v2115_v18 }
  0xff   :  { %v840_v4 = vadd.f32 %v820_v26, %v786_v30  ;;  %v1173_v49 = vsel %vm253_vm1, %v1171_v37, %v1172_v39  ;;  %v1280_v62 = vrot.slane %v1255_v54, 5  ;;  %v3488_v28 = vmul.f32 0.0010283801, %v3415_v63 }
 0x100   :  { %v850_v56 = vsel %vm394_vm5, %v4613_v50, %v849_v2  ;;  %v880_v23 = vsel %vm425_vm3, %v4614_v32, %v879_v16  ;;  %v4616_v60 = vrot.slane %v3409_v61, 5  ;;  %v2232_v51 = vrot.slane %v2123_v33, 6 }
 0x101   :  { %4615 = vst [vmem:[#allocation33_spill] sm:$0xff] %v3488_v28  ;;  %v1193_v30 = vadd.f32 %v1173_v49, %v1139_v44  ;;  %v4617_v11 = vrot.slane %v3421_v19, 4  ;;  %v1310_v2 = vrot.slane %v1201_v5, 6  ;;  %v1608_v26 = vmul.f32 0.10936069, %v3483_v24 }
 0x102   :  { %v2203_v15 = vsel %vm363_vm4, %v4616_v60, %v2202_v17  ;;  %v1662_v18 = vmul.f32 0.21300554, %v3483_v24  ;;  %v870_v37 = vadd.f32 %v850_v56, %v840_v4  ;;  %v2262_v21 = vrot.slane %v3451_v7, 7 }
 0x103   :  { %v1227_v16 = vsel %vm308_vm2, %v4617_v11, %v1226_v42  ;;  %v1716_v54 = vmul.f32 0.26601171, %v3483_v24  ;;  %v2223_v61 = vadd.f32 %v2203_v15, %v2169_v58  ;;  %v4618_v17 = vrot.slane %v3429_v55, 5 }
 0x104   :  { %v1247_v63 = vadd.f32 %v1227_v16, %v1193_v30  ;;  %v1633_v44 = vrot.slane %v1608_v26, 3  ;;  %v1687_v39 = vrot.slane %v1662_v18, 4  ;;  %v4619_v5 = vrot.slane %v3405_v0, 6 }
 0x105   :  { %v1281_v33 = vsel %vm363_vm4, %v4618_v17, %v1280_v62  ;;  %v1340_v4 = vrot.slane %v1147_v8, 7  ;;  %v3508_v7 = vmul.f32 0.007598758, %v3436_v13  ;;  %v4620_v56 = vrot.slane %v3421_v19, 6 }
 0x106   :  { %v2233_v50 = vsel %vm394_vm5, %v4619_v5, %v2232_v51  ;;  %v1301_v32 = vadd.f32 %v1281_v33, %v1247_v63  ;;  %v1634_v55 = vsel %vm253_vm1, %v1632_v46, %v1633_v44  ;;  %v1741_v49 = vrot.slane %v1716_v54, 5 }
 0x107   :  { %v1311_v58 = vsel %vm394_vm5, %v4620_v56, %v1310_v2  ;;  %v900_v62 = vadd.f32 %v880_v23, %v870_v37  ;;  %v2289_v60 = vmul.f32 0.036000773, %v3436_v13  ;;  %v1654_v30 = vadd.f32 %v1634_v55, %v1600_v36  ;;  %v593_v36 = vpop.f32.mrf.mxu1 }
 0x108   :  { %v1331_v15 = vadd.f32 %v1311_v58, %v1301_v32  ;;  %v2253_v0 = vadd.f32 %v2233_v50, %v2223_v61  ;;  %v4621_v51 = vrot.slane %v3403_v41, 7  ;;  %v4622_v11 = vrot.slane %v3444_v14, 4 }
 0x109   :  { %v1771_v19 = vrot.slane %v1662_v18, 6  ;;  %v3522_v2 = vmul.f32 0.0010283801, %v3436_v13  ;;  %v4624_v46 = vrot.slane %v3419_v53, 7  ;;  %v1801_v63 = vrot.slane %v1608_v26, 7 }
 0x10a   :  { %v2263_v8 = vsel %vm425_vm3, %v4621_v51, %v2262_v21  ;;  %v1688_v16 = vsel %vm308_vm2, %v4622_v11, %v1687_v39  ;;  %v4625_v21 = vrot.slane %v3446_v59, 5  ;;  %v625_v17 = vmul.f32 0.007598758, %v593_v36 }
 0x10b   :  { %4623 = vst [vmem:[#allocation34_spill] sm:$0xff] %v3522_v2  ;;  %v1341_v23 = vsel %vm425_vm3, %v4624_v46, %v1340_v4  ;;  %v1708_v37 = vadd.f32 %v1688_v16, %v1654_v30  ;;  %v3531_v33 = vadd.f32 %v906_v29, %v900_v62  ;;  %v1367_v13 = vmul.f32 0.036000773, %v3459_v31 }
 0x10c   :  { %v1361_v41 = vadd.f32 %v1341_v23, %v1331_v15  ;;  %v1742_v61 = vsel %vm363_vm4, %v4625_v21, %v1741_v49  ;;  %v1379_v18 = vmul.f32 0.007598758, %v3459_v31  ;;  %v2283_v44 = vadd.f32 %v2263_v8, %v2253_v0 }
 0x10d   :  { %v1762_v53 = vadd.f32 %v1742_v61, %v1708_v37  ;;  %v1409_v39 = vmul.f32 0.0010283801, %v3459_v31  ;;  %v4626_v26 = vrot.slane %v3444_v14, 6  ;;  %v1840_v50 = vmul.f32 0.007598758, %v3483_v24  ;;  %v1976_v31 = vpop.f32.mrf.mxu0 }
 0x10e   :  { %v4627_v32 = vrot.slane %v3438_v48, 7  ;;  %v1870_v4 = vmul.f32 0.0010283801, %v3483_v24  ;;  %v655_v56 = vmul.f32 0.036000773, %v593_v36  ;;  %v1373_v58 = vadd.f32 %v1367_v13, %v1361_v41 }
 0x10f   :  { %v1772_v5 = vsel %vm394_vm5, %v4626_v26, %v1771_v19  ;;  %v619_v55 = vmul.f32 0.0010283801, %v593_v36  ;;  %v637_v49 = vrot.slane %v625_v17, 1  ;;  %v3544_v62 = vmul.f32 0.10936069, %v593_v36 }
 0x110   :  { %v1792_v59 = vadd.f32 %v1772_v5, %v1762_v53  ;;  %v1802_v29 = vsel %vm425_vm3, %v4627_v32, %v1801_v63  ;;  %v1391_v15 = vrot.slane %v1379_v18, 1  ;;  %v2008_v30 = vmul.f32 0.007598758, %v1976_v31  ;;  %v1054_v63 = vpop.f32.mrf.mxu2  ;;  %v3572_v32 = vpop.f32.mrf.mxu1 }
 0x111   :  { %v4628_v0 = vrot.slane %v3196_v12, 1  ;;  %v3549_v8 = vadd.f32 %v2289_v60, %v2283_v44  ;;  %v1421_v48 = vrot.slane %v1409_v39, 2  ;;  %v1828_v11 = vmul.f32 0.036000773, %v3483_v24 }
 0x112   :  { %v1822_v14 = vadd.f32 %v1802_v29, %v1792_v59  ;;  %v510_v16 = vrot.slane %v3218_v43, 2  ;;  %v1852_v19 = vrot.slane %v1840_v50, 1  ;;  %v1882_v46 = vrot.slane %v1870_v4, 2 }
 0x113   :  { %v492_v51 = vadd.f32 %v4628_v0, %v3224_v40  ;;  %v667_v23 = vrot.slane %v655_v56, 2  ;;  %v3553_v37 = vmul.f32 0.21300554, %v593_v36  ;;  %v1403_v41 = vadd.f32 %v1391_v15, %v1373_v58 }
 0x114   :  { %v649_v21 = vadd.f32 %v637_v49, %v619_v55  ;;  %v713_v61 = vrot.slane %v3544_v62, 3  ;;  %v3556_v17 = vmul.f32 0.26601171, %v593_v36  ;;  %v1834_v12 = vadd.f32 %v1828_v11, %v1822_v14  ;;  %v1515_v49 = vpop.f32.mrf.mxu3 }
 0x115   :  { %v2002_v40 = vmul.f32 0.0010283801, %v1976_v31  ;;  %v2020_v60 = vrot.slane %v2008_v30, 1  ;;  %v2038_v13 = vmul.f32 0.036000773, %v1976_v31  ;;  %v3562_v53 = vadd.f32 %v510_v16, %v492_v51 }
 0x116   :  { %v3558_v18 = vmul.f32 0.10936069, %v1976_v31  ;;  %v3560_v24 = vmul.f32 0.21300554, %v1976_v31  ;;  %v1086_v43 = vmul.f32 0.007598758, %v1054_v63  ;;  %v3569_v36 = vadd.f32 %v1421_v48, %v1403_v41 }
 0x117   :  { %v767_v44 = vrot.slane %v3553_v37, 4  ;;  %v3567_v5 = vmul.f32 0.26601171, %v1976_v31  ;;  %v679_v50 = vadd.f32 %v667_v23, %v649_v21  ;;  %v959_v29 = vrot.slane %v3357_v25, 2 }
 0x118   :  { %4629 = vst [vmem:[#allocation35_spill] sm:$0xff] %v3558_v18  ;;  %v1864_v4 = vadd.f32 %v1852_v19, %v1834_v12  ;;  %v2032_v56 = vadd.f32 %v2020_v60, %v2002_v40  ;;  %v2050_v58 = vrot.slane %v2038_v13, 2  ;;  %v1080_v55 = vmul.f32 0.0010283801, %v1054_v63 }
 0x119   :  { %4630 = vst [vmem:[#allocation36_spill] sm:$0xff] %v3560_v24  ;;  %v1098_v31 = vrot.slane %v1086_v43, 1  ;;  %v1116_v30 = vmul.f32 0.036000773, %v1054_v63  ;;  %v3581_v11 = vmul.f32 0.10936069, %v3572_v32 }
 0x11a   :  { %4631 = vst [vmem:[#allocation37_spill] sm:$0xff] %v3569_v36  ;;  %v3583_v25 = vmul.f32 0.10936069, %v1054_v63  ;;  %v3585_v16 = vmul.f32 0.21300554, %v1054_v63  ;;  %v4632_v23 = vrot.slane %v3340_v22, 1  ;;  %v3590_v21 = vadd.f32 %v1882_v46, %v1864_v4 }
 0x11b   :  { %v1547_v19 = vmul.f32 0.007598758, %v1515_v49  ;;  %v3592_v12 = vadd.f32 %v2050_v58, %v2032_v56  ;;  %v3594_v40 = vmul.f32 0.26601171, %v1054_v63  ;;  %v714_v60 = vrot.slane %v3581_v11, 3 }
 0x11c   :  { %v941_v41 = vadd.f32 %v4632_v23, %v3382_v52  ;;  %4633 = vst [vmem:[#allocation38_spill] sm:$0xff] %v3590_v21  ;;  %v1110_v13 = vadd.f32 %v1098_v31, %v1080_v55  ;;  %v1128_v43 = vrot.slane %v1116_v30, 2  ;;  %v1541_v48 = vmul.f32 0.0010283801, %v1515_v49  ;;  %v3603_v52 = vpop.f32.mrf.mxu0 }
 0x11d   :  { %v742_v51 = vmul.f32 0.21300554, %v3572_v32  ;;  %v1577_v42 = vmul.f32 0.036000773, %v1515_v49  ;;  %v3598_v54 = vmul.f32 0.10936069, %v1515_v49  ;;  %v715_v22 = vsel %vm253_vm1, %v713_v61, %v714_v60  ;;  %v3616_v60 = vpop.f32.mrf.mxu2 }
 0x11e   :  { %v3600_v34 = vmul.f32 0.21300554, %v1515_v49  ;;  %4634 = vst [vmem:[#allocation39_spill] sm:$0xff] %v3603_v52  ;;  %v1174_v46 = vrot.slane %v3583_v25, 3  ;;  %v1228_v63 = vrot.slane %v3585_v16, 4  ;;  %v1559_v4 = vrot.slane %v1547_v19, 1 }
 0x11f   :  { %v3607_v56 = vmul.f32 0.26601171, %v1515_v49  ;;  %v1282_v58 = vrot.slane %v3594_v40, 5  ;;  %v1312_v55 = vrot.slane %v3585_v16, 6  ;;  %v768_v31 = vrot.slane %v742_v51, 4 }
 0x120   :  { %v796_v30 = vmul.f32 0.26601171, %v3572_v32  ;;  %v733_v0 = vadd.f32 %v715_v22, %v679_v50  ;;  %v3614_v61 = vmul.f32 0.10936069, %v3603_v52  ;;  %v3618_v14 = vadd.f32 %v959_v29, %v941_v41 }
 0x121   :  { %v1140_v19 = vadd.f32 %v1128_v43, %v1110_v13  ;;  %v1589_v49 = vrot.slane %v1577_v42, 2  ;;  %v1635_v39 = vrot.slane %v3598_v54, 3  ;;  %v1689_v40 = vrot.slane %v3600_v34, 4 }
 0x122   :  { %4635 = vst [vmem:[#allocation40_spill] sm:$0xff] %v3614_v61  ;;  %v1571_v16 = vadd.f32 %v1559_v4, %v1541_v48  ;;  %v769_v22 = vsel %vm308_vm2, %v767_v44, %v768_v31  ;;  %v822_v23 = vrot.slane %v796_v30, 5  ;;  %v3627_v59 = vmul.f32 0.21300554, %v3603_v52 }
 0x123   :  { %v1149_v29 = vmul.f32 0.10936069, %v3616_v60  ;;  %v787_v42 = vadd.f32 %v769_v22, %v733_v0  ;;  %v882_v41 = vrot.slane %v3581_v11, 7  ;;  %v2097_v13 = vrot.slane %v3614_v61, 3 }
 0x124   :  { %4636 = vst [vmem:[#allocation41_spill] sm:$0xff] %v3627_v59  ;;  %v1203_v48 = vmul.f32 0.21300554, %v3616_v60  ;;  %v3634_v43 = vmul.f32 0.007598758, %v3572_v32  ;;  %v4637_v44 = vrot.slane %v3330_v57, 6  ;;  %v1601_v0 = vadd.f32 %v1589_v49, %v1571_v16  ;;  %v3650_v57 = vpop.f32.mrf.mxu3 }
 0x125   :  { %v1175_v4 = vrot.slane %v1149_v29, 3  ;;  %v1257_v50 = vmul.f32 0.26601171, %v3616_v60  ;;  %v4638_v31 = vrot.slane %v3268_v47, 6  ;;  %v852_v22 = vrot.slane %v742_v51, 6 }
 0x126   :  { %v907_v11 = vmul.f32 0.036000773, %v3572_v32  ;;  %v1229_v26 = vrot.slane %v1203_v48, 4  ;;  %v4639_v15 = vrot.slane %v3556_v17, 5  ;;  %v2151_v36 = vrot.slane %v3627_v59, 4 }
 0x127   :  { %v3642_v30 = vsel %vm394_vm5, %v4638_v31, %v4637_v44  ;;  %v1176_v28 = vsel %vm253_vm1, %v1174_v46, %v1175_v4  ;;  %v1283_v2 = vrot.slane %v1257_v50, 5  ;;  %v4640_v44 = vrot.slane %v3544_v62, 7 }
 0x128   :  { %v823_v21 = vsel %vm363_vm4, %v4639_v15, %v822_v23  ;;  %v4641_v51 = vrot.slane %v3558_v18, 3  ;;  %v1194_v31 = vadd.f32 %v1176_v28, %v1140_v19  ;;  %v2179_v15 = vmul.f32 0.26601171, %v3603_v52 }
 0x129   :  { %v841_v47 = vadd.f32 %v823_v21, %v787_v42  ;;  %v883_v49 = vsel %vm425_vm3, %v4640_v44, %v882_v41  ;;  %v1230_v23 = vsel %vm308_vm2, %v1228_v63, %v1229_v26  ;;  %v1313_v46 = vrot.slane %v1203_v48, 6 }
 0x12a   :  { %v2098_v16 = vsel %vm253_vm1, %v4641_v51, %v2097_v13  ;;  %v4642_v50 = vrot.slane %v3553_v37, 6  ;;  %v1248_v42 = vadd.f32 %v1230_v23, %v1194_v31  ;;  %v1610_v62 = vmul.f32 0.10936069, %v3650_v57 }
 0x12b   :  { %v1664_v41 = vmul.f32 0.21300554, %v3650_v57  ;;  %v2116_v4 = vadd.f32 %v2098_v16, %v3592_v12  ;;  %v4643_v28 = vrot.slane %v3560_v24, 4  ;;  %v1284_v13 = vsel %vm363_vm4, %v1282_v58, %v1283_v2 }
 0x12c   :  { %v853_v21 = vsel %vm394_vm5, %v4642_v50, %v852_v22  ;;  %v1718_v26 = vmul.f32 0.26601171, %v3650_v57  ;;  %v1302_v48 = vadd.f32 %v1284_v13, %v1248_v42  ;;  %v1636_v37 = vrot.slane %v1610_v62, 3  ;;  %v599_v13 = vpop.f32.mrf.mxu1 }
 0x12d   :  { %v2152_v19 = vsel %vm308_vm2, %v4643_v28, %v2151_v36  ;;  %v871_v63 = vadd.f32 %v853_v21, %v841_v47  ;;  %v1690_v44 = vrot.slane %v1664_v41, 4  ;;  %v3673_v22 = vmul.f32 0.0010283801, %v3572_v32 }
 0x12e   :  { %v2205_v51 = vrot.slane %v2179_v15, 5  ;;  %v1314_v31 = vsel %vm394_vm5, %v1312_v55, %v1313_v46  ;;  %v1343_v23 = vrot.slane %v1149_v29, 7  ;;  %v1637_v36 = vsel %vm253_vm1, %v1635_v39, %v1636_v37 }
 0x12f   :  { %v1332_v16 = vadd.f32 %v1314_v31, %v1302_v48  ;;  %v1744_v50 = vrot.slane %v1718_v26, 5  ;;  %v2170_v2 = vadd.f32 %v2152_v19, %v2116_v4  ;;  %v3680_v47 = vmul.f32 0.007598758, %v3603_v52 }
 0x130   :  { %v1655_v21 = vadd.f32 %v1637_v36, %v1601_v0  ;;  %v901_v42 = vadd.f32 %v883_v49, %v871_v63  ;;  %v1380_v32 = vmul.f32 0.007598758, %v3616_v60  ;;  %v1691_v15 = vsel %vm308_vm2, %v1689_v40, %v1690_v44 }
 0x131   :  { %4644 = vst [vmem:[#allocation42_spill] sm:$0xff] %v3680_v47  ;;  %v1774_v55 = vrot.slane %v1664_v41, 6  ;;  %v4645_v29 = vrot.slane %v3567_v5, 5  ;;  %v4646_v39 = vrot.slane %v3583_v25, 7  ;;  %v1804_v19 = vrot.slane %v1610_v62, 7 }
 0x132   :  { %v1709_v28 = vadd.f32 %v1691_v15, %v1655_v21  ;;  %v3691_v26 = vmul.f32 0.036000773, %v3603_v52  ;;  %v4648_v49 = vrot.slane %v3607_v56, 5  ;;  %v626_v41 = vmul.f32 0.007598758, %v599_v13  ;;  %v1982_v56 = vpop.f32.mrf.mxu0 }
 0x133   :  { %v2206_v46 = vsel %vm363_vm4, %v4645_v29, %v2205_v51  ;;  %v1344_v4 = vsel %vm425_vm3, %v4646_v39, %v1343_v23  ;;  %v1368_v63 = vmul.f32 0.036000773, %v3616_v60  ;;  %v1410_v25 = vmul.f32 0.0010283801, %v3616_v60  ;;  %v1060_v39 = vpop.f32.mrf.mxu2 }
 0x134   :  { %4647 = vst [vmem:[#allocation43_spill] sm:$0xff] %v3691_v26  ;;  %v1362_v0 = vadd.f32 %v1344_v4, %v1332_v16  ;;  %v1745_v40 = vsel %vm363_vm4, %v4648_v49, %v1744_v50  ;;  %v3699_v37 = vadd.f32 %v907_v11, %v901_v42  ;;  %v3701_v62 = vadd.f32 %v2206_v46, %v2170_v2 }
 0x135   :  { %v1763_v48 = vadd.f32 %v1745_v40, %v1709_v28  ;;  %v1392_v44 = vrot.slane %v1380_v32, 1  ;;  %v4650_v51 = vrot.slane %v3600_v34, 6  ;;  %v4651_v16 = vrot.slane %v3598_v54, 7 }
 0x136   :  { %4649 = vst [vmem:[#allocation44_spill] sm:$0xff] %v3701_v62  ;;  %v1841_v50 = vmul.f32 0.007598758, %v3650_v57  ;;  %v2009_v21 = vmul.f32 0.007598758, %v1982_v56  ;;  %v1374_v60 = vadd.f32 %v1368_v63, %v1362_v0  ;;  %v638_v11 = vrot.slane %v626_v41, 1 }
 0x137   :  { %v1775_v31 = vsel %vm394_vm5, %v4650_v51, %v1774_v55  ;;  %v1805_v36 = vsel %vm425_vm3, %v4651_v16, %v1804_v19  ;;  %v620_v15 = vmul.f32 0.0010283801, %v599_v13  ;;  %v656_v42 = vmul.f32 0.036000773, %v599_v13 }
 0x138   :  { %v1793_v23 = vadd.f32 %v1775_v31, %v1763_v48  ;;  %v1422_v2 = vrot.slane %v1410_v25, 2  ;;  %v1829_v32 = vmul.f32 0.036000773, %v3650_v57  ;;  %v1871_v34 = vmul.f32 0.0010283801, %v3650_v57 }
 0x139   :  { %v3712_v55 = vmul.f32 0.10936069, %v599_v13  ;;  %v3714_v46 = vmul.f32 0.21300554, %v599_v13  ;;  %v3716_v54 = vmul.f32 0.26601171, %v599_v13  ;;  %v3720_v4 = vadd.f32 %v3642_v30, %v3389_v20 }
 0x13a   :  { %v1823_v29 = vadd.f32 %v1805_v36, %v1793_v23  ;;  %v1853_v28 = vrot.slane %v1841_v50, 1  ;;  %v2003_v19 = vmul.f32 0.0010283801, %v1982_v56  ;;  %v2021_v0 = vrot.slane %v2009_v21, 1  ;;  %v3733_v21 = vpop.f32.mrf.mxu1 }
 0x13b   :  { %v2039_v49 = vmul.f32 0.036000773, %v1982_v56  ;;  %v1404_v40 = vadd.f32 %v1392_v44, %v1374_v60  ;;  %v650_v41 = vadd.f32 %v638_v11, %v620_v15  ;;  %v668_v63 = vrot.slane %v656_v42, 2 }
 0x13c   :  { %v3722_v25 = vmul.f32 0.10936069, %v1982_v56  ;;  %v1835_v57 = vadd.f32 %v1829_v32, %v1823_v29  ;;  %v1883_v48 = vrot.slane %v1871_v34, 2  ;;  %v3724_v51 = vmul.f32 0.21300554, %v1982_v56  ;;  %v1521_v29 = vpop.f32.mrf.mxu3 }
 0x13d   :  { %v1087_v13 = vmul.f32 0.007598758, %v1060_v39  ;;  %v716_v31 = vrot.slane %v3712_v55, 3  ;;  %v770_v23 = vrot.slane %v3714_v46, 4  ;;  %v3729_v30 = vmul.f32 0.26601171, %v1982_v56 }
 0x13e   :  { %v2033_v36 = vadd.f32 %v2021_v0, %v2003_v19  ;;  %v2051_v50 = vrot.slane %v2039_v49, 2  ;;  %v3735_v60 = vadd.f32 %v1422_v2, %v1404_v40  ;;  %v680_v15 = vadd.f32 %v668_v63, %v650_v41 }
 0x13f   :  { %v1117_v42 = vmul.f32 0.036000773, %v1060_v39  ;;  %v1865_v32 = vadd.f32 %v1853_v28, %v1835_v57  ;;  %v1099_v5 = vrot.slane %v1087_v13, 1  ;;  %v1081_v0 = vmul.f32 0.0010283801, %v1060_v39 }
 0x140   :  { %4652 = vst [vmem:[#allocation45_spill] sm:$0xff] %v3735_v60  ;;  %v3743_v49 = vmul.f32 0.10936069, %v3733_v21  ;;  %v3745_v2 = vadd.f32 %v2051_v50, %v2033_v36  ;;  %v3747_v40 = vmul.f32 0.10936069, %v1060_v39  ;;  %v4653_v28 = vrot.slane %v3318_v27, 7 }
 0x141   :  { %v1548_v41 = vmul.f32 0.007598758, %v1521_v29  ;;  %v4654_v63 = vrot.slane %v3264_v1, 7  ;;  %v1129_v13 = vrot.slane %v1117_v42, 2  ;;  %v3754_v56 = vmul.f32 0.21300554, %v1060_v39  ;;  %v3767_v42 = vpop.f32.mrf.mxu0 }
 0x142   :  { %v3756_v58 = vmul.f32 0.26601171, %v1060_v39  ;;  %v717_v19 = vrot.slane %v3743_v49, 3  ;;  %v3759_v17 = vadd.f32 %v1883_v48, %v1865_v32  ;;  %v1111_v36 = vadd.f32 %v1099_v5, %v1081_v0 }
 0x143   :  { %v2260_v57 = vsel %vm425_vm3, %v4654_v63, %v4653_v28  ;;  %v1542_v50 = vmul.f32 0.0010283801, %v1521_v29  ;;  %v744_v12 = vmul.f32 0.21300554, %v3733_v21  ;;  %v1578_v34 = vmul.f32 0.036000773, %v1521_v29 }
 0x144   :  { %4655 = vst [vmem:[#allocation46_spill] sm:$0xff] %v3759_v17  ;;  %v3762_v44 = vmul.f32 0.10936069, %v1521_v29  ;;  %v3764_v27 = vmul.f32 0.21300554, %v1521_v29  ;;  %v718_v1 = vsel %vm253_vm1, %v716_v31, %v717_v19  ;;  %v1177_v39 = vrot.slane %v3747_v40, 3  ;;  %v3780_v19 = vpop.f32.mrf.mxu2  ;;  %v3810_v61 = vpop.f32.mrf.mxu3 }
 0x145   :  { %v1560_v28 = vrot.slane %v1548_v41, 1  ;;  %v771_v63 = vrot.slane %v744_v12, 4  ;;  %v798_v48 = vmul.f32 0.26601171, %v3733_v21  ;;  %v1231_v5 = vrot.slane %v3754_v56, 4 }
 0x146   :  { %v3773_v0 = vmul.f32 0.26601171, %v1521_v29  ;;  %v734_v16 = vadd.f32 %v718_v1, %v680_v15  ;;  %v1285_v11 = vrot.slane %v3756_v58, 5  ;;  %v3778_v31 = vmul.f32 0.10936069, %v3767_v42 }
 0x147   :  { %v2282_v41 = vadd.f32 %v2260_v57, %v3720_v4  ;;  %v1141_v47 = vadd.f32 %v1129_v13, %v1111_v36  ;;  %v1590_v17 = vrot.slane %v1578_v34, 2  ;;  %v1638_v52 = vrot.slane %v3762_v44, 3 }
 0x148   :  { %v1692_v32 = vrot.slane %v3764_v27, 4  ;;  %v1572_v29 = vadd.f32 %v1560_v28, %v1542_v50  ;;  %v772_v58 = vsel %vm308_vm2, %v770_v23, %v771_v63  ;;  %v825_v1 = vrot.slane %v798_v48, 5 }
 0x149   :  { %v788_v26 = vadd.f32 %v772_v58, %v734_v16  ;;  %v3789_v60 = vmul.f32 0.21300554, %v3767_v42  ;;  %v3792_v4 = vmul.f32 0.10936069, %v3780_v19  ;;  %v885_v57 = vrot.slane %v3743_v49, 7 }
 0x14a   :  { %v2100_v13 = vrot.slane %v3778_v31, 3  ;;  %v1205_v36 = vmul.f32 0.21300554, %v3780_v19  ;;  %v855_v50 = vrot.slane %v744_v12, 6  ;;  %v3799_v23 = vmul.f32 0.007598758, %v3733_v21 }
 0x14b   :  { %v1178_v16 = vrot.slane %v3792_v4, 3  ;;  %v1259_v28 = vmul.f32 0.26601171, %v3780_v19  ;;  %v4656_v63 = vrot.slane %v3716_v54, 5  ;;  %v2181_v58 = vmul.f32 0.26601171, %v3767_v42 }
 0x14c   :  { %v1232_v34 = vrot.slane %v1205_v36, 4  ;;  %v2294_v49 = vadd.f32 %v3373_v38, %v2282_v41  ;;  %v1602_v15 = vadd.f32 %v1590_v17, %v1572_v29  ;;  %v2154_v12 = vrot.slane %v3789_v60, 4 }
 0x14d   :  { %v826_v48 = vsel %vm363_vm4, %v4656_v63, %v825_v1  ;;  %v1179_v18 = vsel %vm253_vm1, %v1177_v39, %v1178_v16  ;;  %v908_v62 = vmul.f32 0.036000773, %v3733_v21  ;;  %v4657_v24 = vrot.slane %v3722_v25, 3  ;;  %v1527_v39 = vpop.f32.mrf.mxu3 }
 0x14e   :  { %v842_v20 = vadd.f32 %v826_v48, %v788_v26  ;;  %v1195_v1 = vadd.f32 %v1179_v18, %v1141_v47  ;;  %v1286_v63 = vrot.slane %v1259_v28, 5  ;;  %v4658_v59 = vrot.slane %v3714_v46, 6 }
 0x14f   :  { %v2101_v54 = vsel %vm253_vm1, %v4657_v24, %v2100_v13  ;;  %v4659_v17 = vrot.slane %v3712_v55, 7  ;;  %v1233_v41 = vsel %vm308_vm2, %v1231_v5, %v1232_v34  ;;  %v2208_v29 = vrot.slane %v2181_v58, 5 }
 0x150   :  { %v856_v38 = vsel %vm394_vm5, %v4658_v59, %v855_v50  ;;  %v1249_v16 = vadd.f32 %v1233_v41, %v1195_v1  ;;  %v1612_v48 = vmul.f32 0.10936069, %v3810_v61  ;;  %v1666_v24 = vmul.f32 0.21300554, %v3810_v61 }
 0x151   :  { %v886_v26 = vsel %vm425_vm3, %v4659_v17, %v885_v57  ;;  %v872_v18 = vadd.f32 %v856_v38, %v842_v20  ;;  %v2117_v47 = vadd.f32 %v2101_v54, %v3745_v2  ;;  %v4660_v46 = vrot.slane %v3724_v51, 4 }
 0x152   :  { %v1720_v55 = vmul.f32 0.26601171, %v3810_v61  ;;  %v1287_v57 = vsel %vm363_vm4, %v1285_v11, %v1286_v63  ;;  %v1316_v13 = vrot.slane %v1205_v36, 6  ;;  %v1639_v50 = vrot.slane %v1612_v48, 3 }
 0x153   :  { %v2155_v59 = vsel %vm308_vm2, %v4660_v46, %v2154_v12  ;;  %v1693_v5 = vrot.slane %v1666_v24, 4  ;;  %v3833_v34 = vmul.f32 0.0010283801, %v3733_v21  ;;  %v3837_v20 = vmul.f32 0.007598758, %v3767_v42 }
 0x154   :  { %v1303_v2 = vadd.f32 %v1287_v57, %v1249_v16  ;;  %v4661_v58 = vrot.slane %v3729_v30, 5  ;;  %v1640_v11 = vsel %vm253_vm1, %v1638_v52, %v1639_v50  ;;  %v1747_v36 = vrot.slane %v1720_v55, 5 }
 0x155   :  { %v902_v1 = vadd.f32 %v886_v26, %v872_v18  ;;  %v2171_v63 = vadd.f32 %v2155_v59, %v2117_v47  ;;  %v1346_v21 = vrot.slane %v3792_v4, 7  ;;  %v1656_v38 = vadd.f32 %v1640_v11, %v1602_v15  ;;  %v605_v11 = vpop.f32.mrf.mxu1 }
 0x156   :  { %v2209_v12 = vsel %vm363_vm4, %v4661_v58, %v2208_v29  ;;  %v4662_v17 = vrot.slane %v3754_v56, 6  ;;  %v1381_v16 = vmul.f32 0.007598758, %v3780_v19  ;;  %v1694_v30 = vsel %vm308_vm2, %v1692_v32, %v1693_v5 }
 0x157   :  { %v1777_v46 = vrot.slane %v1666_v24, 6  ;;  %v3851_v29 = vmul.f32 0.036000773, %v3767_v42  ;;  %v1710_v26 = vadd.f32 %v1694_v30, %v1656_v38  ;;  %v1369_v18 = vmul.f32 0.036000773, %v3780_v19 }
 0x158   :  { %v1317_v41 = vsel %vm394_vm5, %v4662_v17, %v1316_v13  ;;  %v4663_v15 = vrot.slane %v3773_v0, 5  ;;  %v1807_v4 = vrot.slane %v1612_v48, 7  ;;  %v2330_v47 = vmul.f32 0.0010283801, %v3308_v10 }
 0x159   :  { %v1333_v55 = vadd.f32 %v1317_v41, %v1303_v2  ;;  %v3859_v59 = vadd.f32 %v908_v62, %v902_v1  ;;  %v3861_v32 = vadd.f32 %v2209_v12, %v2171_v63  ;;  %v4664_v57 = vrot.slane %v3367_v35, 1 }
 0x15a   :  { %v1748_v56 = vsel %vm363_vm4, %v4663_v15, %v1747_v36  ;;  %v4665_v50 = vrot.slane %v3747_v40, 7  ;;  %v1393_v2 = vrot.slane %v1381_v16, 1  ;;  %v1411_v0 = vmul.f32 0.0010283801, %v3780_v19 }
 0x15b   :  { %v1764_v24 = vadd.f32 %v1748_v56, %v1710_v26  ;;  %v2324_v13 = vadd.f32 %v4664_v57, %v2294_v49  ;;  %v4666_v58 = vrot.slane %v3764_v27, 6  ;;  %v1830_v12 = vmul.f32 0.036000773, %v3810_v61 }
 0x15c   :  { %v1347_v5 = vsel %vm425_vm3, %v4665_v50, %v1346_v21  ;;  %v2342_v36 = vrot.slane %v2330_v47, 2  ;;  %v4667_v35 = vrot.slane %v3762_v44, 7  ;;  %v627_v40 = vmul.f32 0.007598758, %v605_v11 }
 0x15d   :  { %v1778_v48 = vsel %vm394_vm5, %v4666_v58, %v1777_v46  ;;  %v1363_v10 = vadd.f32 %v1347_v5, %v1333_v55  ;;  %v2360_v1 = vmul.f32 %v3562_v53, %v3562_v53  ;;  %v2366_v19 = vmul.f32 %v3618_v14, %v3618_v14 }
 0x15e   :  { %v1794_v62 = vadd.f32 %v1778_v48, %v1764_v24  ;;  %v1808_v49 = vsel %vm425_vm3, %v4667_v35, %v1807_v4  ;;  %v1842_v63 = vmul.f32 0.007598758, %v3810_v61  ;;  %v2354_v21 = vadd.f32 %v2342_v36, %v2324_v13 }
 0x15f   :  { %v2372_v38 = vmul.f32 %v3618_v14, %v3562_v53  ;;  %v1872_v17 = vmul.f32 0.0010283801, %v3810_v61  ;;  %v2378_v44 = vsub.f32 %v3411_v9, %v2360_v1  ;;  %v2384_v41 = vsub.f32 %v3441_v3, %v2366_v19  ;;  %v1988_v9 = vpop.f32.mrf.mxu0 }
 0x160   :  { %v1824_v27 = vadd.f32 %v1808_v49, %v1794_v62  ;;  %v2528_v16 = vadd.f32 %v2366_v19, %v2360_v1  ;;  %v1375_v30 = vadd.f32 %v1369_v18, %v1363_v10  ;;  %v621_v46 = vmul.f32 0.0010283801, %v605_v11 }
 0x161   :  { %v657_v55 = vmul.f32 0.036000773, %v605_v11  ;;  %v3886_v26 = vmul.f32 0.10936069, %v605_v11  ;;  %v639_v15 = vrot.slane %v627_v40, 1  ;;  %v2408_v4 = vadd.f32 %v2384_v41, %v2378_v44 }
 0x162   :  { %v3888_v56 = vmul.f32 0.21300554, %v605_v11  ;;  %v3890_v47 = vadd.f32 6.5025, %v2528_v16  ;;  %v1423_v24 = vrot.slane %v1411_v0, 2  ;;  %v1836_v53 = vadd.f32 %v1830_v12, %v1824_v27 }
 0x163   :  { %v3892_v14 = vmul.f32 0.26601171, %v605_v11  ;;  %v2390_v61 = vsub.f32 %v2354_v21, %v2372_v38  ;;  %v1854_v57 = vrot.slane %v1842_v63, 1  ;;  %v3894_v3 = vadd.f32 58.5225, %v2408_v4  ;;  %v1066_v21 = vpop.f32.mrf.mxu2 }
 0x164   :  { %2793 = vrcp.f32 %v3890_v47  ;;  %v2010_v18 = vmul.f32 0.007598758, %v1988_v9  ;;  %v1405_v13 = vadd.f32 %v1393_v2, %v1375_v30  ;;  %v1884_v50 = vrot.slane %v1872_v17, 2 }
 0x165   :  { %v669_v5 = vrot.slane %v657_v55, 2  ;;  %v719_v58 = vrot.slane %v3886_v26, 3  ;;  %v651_v48 = vadd.f32 %v639_v15, %v621_v46  ;;  %v773_v10 = vrot.slane %v3888_v56, 4 }
 0x166   :  { %2795 = vrcp.f32 %v3894_v3  ;;  %v2516_v0 = vmul.f32 2.0, %v2372_v38  ;;  %v1866_v62 = vadd.f32 %v1854_v57, %v1836_v53  ;;  %v2396_v36 = vmul.f32 2.0, %v2390_v61 }
 0x167   :  { %v2004_v49 = vmul.f32 0.0010283801, %v1988_v9  ;;  %v2022_v2 = vrot.slane %v2010_v18, 1  ;;  %v2040_v40 = vmul.f32 0.036000773, %v1988_v9  ;;  %v3903_v1 = vadd.f32 %v1423_v24, %v1405_v13 }
 0x168   :  { %v2549_v19 = vand.u32 2147483647, %v3890_v47  ;;  %v2551_v27 = vand.u32 2147483648, %v3890_v47  ;;  %v3907_v63 = vmul.f32 0.10936069, %v1988_v9  ;;  %v3909_v17 = vadd.f32 %v669_v5, %v651_v48  ;;  %v4676_v5 = vld [vmem:[#allocation11_spill] sm:$0xff] }
 0x169   :  { %v2429_v44 = vand.u32 2147483647, %v3894_v3  ;;  %v2431_v41 = vand.u32 2147483648, %v3894_v3  ;;  %v3913_v16 = vadd.f32 6.5025, %v2516_v0  ;;  %v3915_v30 = vadd.f32 %v1884_v50, %v1866_v62 }
 0x16a   :  { %v2794_v38 = vpop.eup %2793  ;;  %v2402_v46 = vadd.f32 58.5225, %v2396_v36  ;;  %vm2545_vm6 = vweird.f32 %v3890_v47  ;;  %vm2425_vm7 = vweird.f32 %v3894_v3  ;;  %v2034_v4 = vadd.f32 %v2022_v2, %v2004_v49 }
 0x16b   :  { %4668 = vst [vmem:[#allocation47_spill] sm:$0xff] %v3915_v30  ;;  %v2541_v55 = vmul.f32 %v2794_v38, %v3890_v47  ;;  %v2052_v24 = vrot.slane %v2040_v40, 2  ;;  %v1088_v53 = vmul.f32 0.007598758, %v1066_v21  ;;  %vm3921_vm8 = vcmp.eq.f32.partialorder %v2549_v19, 8.507059e+37  ;;  %v3934_v40 = vpop.f32.mrf.mxu1 }
 0x16c   :  { %v2796_v15 = vpop.eup %2795  ;;  %v2552_v13 = vor.u32 1.1754944e-38, %v2551_v27  ;;  %v2102_v50 = vrot.slane %v3907_v63, 3  ;;  %vm3926_vm9 = vcmp.eq.f32.partialorder %v2429_v44, 8.507059e+37  ;;  %v2432_v48 = vor.u32 1.1754944e-38, %v2431_v41 }
 0x16d   :  { %v2421_v61 = vmul.f32 %v2796_v15, %v3894_v3  ;;  %v2542_v57 = vsub.f32 1.0, %v2541_v55  ;;  %v3930_v0 = vmul.f32 0.21300554, %v1988_v9  ;;  %v3932_v62 = vmul.f32 0.26601171, %v1988_v9 }
 0x16e   :  { %vm2546_vm10 = vweird.f32 %v2794_v38  ;;  %v1118_v2 = vmul.f32 0.036000773, %v1066_v21  ;;  %v3936_v19 = vadd.f32 %v2052_v24, %v2034_v4  ;;  %v1100_v27 = vrot.slane %v1088_v53, 1 }
 0x16f   :  { %v2422_v36 = vsub.f32 1.0, %v2421_v61  ;;  %v2543_v49 = vmul.f32 %v2794_v38, %v2542_v57  ;;  %v3938_v55 = vmul.f32 0.10936069, %v1066_v21  ;;  %v3940_v44 = vmul.f32 0.21300554, %v1066_v21  ;;  %vm3946_vm12 = vmor %vm2545_vm6, %vm2546_vm10 }
 0x170   :  { %vm2426_vm11 = vweird.f32 %v2796_v15  ;;  %v3942_v28 = vmul.f32 0.26601171, %v1066_v21  ;;  %v1082_v53 = vmul.f32 0.0010283801, %v1066_v21  ;;  %v3953_v61 = vmul.f32 0.10936069, %v3934_v40 }
 0x171   :  { %v2423_v52 = vmul.f32 %v2796_v15, %v2422_v36  ;;  %v2544_v41 = vadd.f32 %v2794_v38, %v2543_v49  ;;  %vm2427_vm14 = vmor %vm2425_vm7, %vm2426_vm11  ;;  %v1130_v35 = vrot.slane %v1118_v2, 2  ;;  %v4675_v21 = vld [vmem:[#allocation29_spill] sm:$0xff]  ;;  %v1549_v2 = vmul.f32 0.007598758, %v1527_v39  ;;  %v4678_v49 = vld [vmem:[#allocation19_spill] sm:$0xff] }
 0x172   :  { %v1112_v54 = vadd.f32 %v1100_v27, %v1082_v53  ;;  %v3964_v11 = vadd.f32 %v4675_v21, %v3260_v6  ;;  %v746_v27 = vmul.f32 0.21300554, %v3934_v40  ;;  %v1579_v21 = vmul.f32 0.036000773, %v1527_v39 }
 0x173   :  { %v2424_v57 = vadd.f32 %v2796_v15, %v2423_v52  ;;  %v2548_v36 = vsel %vm3946_vm12, %v2794_v38, %v2544_v41  ;;  %v720_v41 = vrot.slane %v3953_v61, 3  ;;  %v3983_v18 = vmul.f32 0.21300554, %v1527_v39 }
 0x174   :  { %v2553_v3 = vsel %vm3921_vm8, %v2552_v13, %v2548_v36  ;;  %v1142_v38 = vadd.f32 %v1130_v35, %v1112_v54  ;;  %v1561_v6 = vrot.slane %v1549_v2, 1  ;;  %v1591_v35 = vrot.slane %v1579_v21, 2 }
 0x175   :  { %v2428_v52 = vsel %vm2427_vm14, %v2796_v15, %v2424_v57  ;;  %v721_v15 = vsel %vm253_vm1, %v719_v58, %v720_v41  ;;  %v3978_v57 = vpop.f32.mrf.mxu0  ;;  %v2554_v36 = vmul.f32 %v2553_v3, %v3913_v16  ;;  %v3991_v41 = vmul.f32 0.26601171, %v1527_v39  ;;  %v4012_v3 = vpop.f32.mrf.mxu2 }
 0x176   :  { %v2433_v47 = vsel %vm3926_vm9, %v2432_v48, %v2428_v52  ;;  %v3981_v48 = vmul.f32 0.10936069, %v1527_v39  ;;  %v1543_v52 = vmul.f32 0.0010283801, %v1527_v39  ;;  %v735_v9 = vadd.f32 %v721_v15, %v3909_v17 }
 0x177   :  { %v2434_v53 = vmul.f32 %v2433_v47, %v2402_v46  ;;  %v774_v46 = vrot.slane %v746_v27, 4  ;;  %v800_v47 = vmul.f32 0.26601171, %v3934_v40  ;;  %v3989_v58 = vmul.f32 0.10936069, %v3978_v57 }
 0x178   :  { %v4677_v24 = vrot.slane %v4676_v5, 7  ;;  %v2129_v17 = vmul.f32 0.21300554, %v3978_v57  ;;  %v2183_v15 = vmul.f32 0.26601171, %v3978_v57  ;;  %v888_v39 = vrot.slane %v3953_v61, 7 }
 0x179   :  { %v2510_v13 = vmax.f32 %v2434_v53, 0.0  ;;  %v4679_v53 = vrot.slane %v4678_v49, 7  ;;  %v2103_v2 = vrot.slane %v3989_v58, 3  ;;  %v775_v21 = vsel %vm308_vm2, %v773_v10, %v774_v46 }
 0x17a   :  { %v828_v49 = vrot.slane %v800_v47, 5  ;;  %v789_v5 = vadd.f32 %v775_v21, %v735_v9  ;;  %v858_v10 = vrot.slane %v746_v27, 6  ;;  %v4019_v46 = vmul.f32 0.007598758, %v3934_v40 }
 0x17b   :  { %v2630_v54 = vmul.f32 %v2554_v36, %v2510_v13  ;;  %v3998_v16 = vsel %vm425_vm3, %v4679_v53, %v4677_v24  ;;  %v1573_v24 = vadd.f32 %v1561_v6, %v1543_v52  ;;  %v2104_v36 = vsel %vm253_vm1, %v2102_v50, %v2103_v2 }
 0x17c   :  { %v2157_v53 = vrot.slane %v2129_v17, 4  ;;  %v2118_v4 = vadd.f32 %v2104_v36, %v3936_v19  ;;  %4680 = vst [vmem:[#allocation29_spill] sm:$0xff] %v4019_v46  ;;  %v4681_v9 = vrot.slane %v3930_v0, 4  ;;  %v2211_v50 = vrot.slane %v2183_v15, 5 }
 0x17d   :  { %v2637_v13 = vsel %vm2636_vm13, %v2630_v54, 0.0  ;;  %v4682_v47 = vrot.slane %v3892_v14, 5  ;;  %v4028_v2 = vmul.f32 0.0010283801, %v3934_v40  ;;  %v1153_v61 = vmul.f32 0.10936069, %v4012_v3 }
 0x17e   :  { %2638 = vadd.xlane.f32.xlu0 %v2637_v13  ;;  %v2158_v6 = vsel %vm308_vm2, %v4681_v9, %v2157_v53  ;;  %v1207_v19 = vmul.f32 0.21300554, %v4012_v3  ;;  %v1603_v27 = vadd.f32 %v1591_v35, %v1573_v24  ;;  %v1809_v13 = vrot.slane %v3981_v48, 7 }
 0x17f   :  { %v829_v52 = vsel %vm363_vm4, %v4682_v47, %v828_v49  ;;  %4683 = vst [vmem:[#allocation11_spill] sm:$0xff] %v4028_v2  ;;  %v1261_v36 = vmul.f32 0.26601171, %v4012_v3  ;;  %v909_v53 = vmul.f32 0.036000773, %v3934_v40  ;;  %v2172_v15 = vadd.f32 %v2158_v6, %v2118_v4 }
 0x180   :  { %v843_v21 = vadd.f32 %v829_v52, %v789_v5  ;;  %v1181_v9 = vrot.slane %v1153_v61, 3  ;;  %v1235_v14 = vrot.slane %v1207_v19, 4  ;;  %v4684_v49 = vrot.slane %v3888_v56, 6  ;;  %v4044_v52 = vpop.f32.mrf.mxu3 }
 0x181   :  { %v4685_v54 = vrot.slane %v3886_v26, 7  ;;  %v4686_v35 = vrot.slane %v3932_v62, 5  ;;  %v2241_v5 = vrot.slane %v2129_v17, 6  ;;  %v4687_v6 = vrot.slane %v3938_v55, 3 }
 0x182   :  { %v859_v47 = vsel %vm394_vm5, %v4684_v49, %v858_v10  ;;  %v1289_v10 = vrot.slane %v1261_v36, 5  ;;  %v2271_v26 = vrot.slane %v3989_v58, 7  ;;  %v4689_v17 = vrot.slane %v3940_v44, 4 }
 0x183   :  { %v889_v12 = vsel %vm425_vm3, %v4685_v54, %v888_v39  ;;  %v2212_v24 = vsel %vm363_vm4, %v4686_v35, %v2211_v50  ;;  %v1182_v56 = vsel %vm253_vm1, %v4687_v6, %v1181_v9  ;;  %v873_v49 = vadd.f32 %v859_v47, %v843_v21 }
 0x184   :  { %v4053_v39 = vmul.f32 0.007598758, %v3978_v57  ;;  %v1196_v62 = vadd.f32 %v1182_v56, %v1142_v38  ;;  %v2226_v54 = vadd.f32 %v2212_v24, %v2172_v15  ;;  %v1236_v50 = vsel %vm308_vm2, %v4689_v17, %v1235_v14 }
 0x185   :  { %v1614_v35 = vmul.f32 0.10936069, %v4044_v52  ;;  %v1668_v4 = vmul.f32 0.21300554, %v4044_v52  ;;  %v4690_v40 = vrot.slane %v3930_v0, 6  ;;  %v1319_v9 = vrot.slane %v1207_v19, 6 }
 0x186   :  { %4688 = vst [vmem:[#allocation19_spill] sm:$0xff] %v4053_v39  ;;  %v1250_v21 = vadd.f32 %v1236_v50, %v1196_v62  ;;  %v1722_v58 = vmul.f32 0.26601171, %v4044_v52  ;;  %v2292_v47 = vmul.f32 0.036000773, %v3978_v57  ;;  %v4691_v38 = vrot.slane %v3942_v28, 5 }
 0x187   :  { %v2242_v36 = vsel %vm394_vm5, %v4690_v40, %v2241_v5  ;;  %v1642_v24 = vrot.slane %v1614_v35, 3  ;;  %v1696_v14 = vrot.slane %v1668_v4, 4  ;;  %v4692_v6 = vrot.slane %v3907_v63, 7 }
 0x188   :  { %v1290_v15 = vsel %vm363_vm4, %v4691_v38, %v1289_v10  ;;  %v1349_v5 = vrot.slane %v1153_v61, 7  ;;  %v2256_v40 = vadd.f32 %v2242_v36, %v2226_v54  ;;  %v4693_v19 = vrot.slane %v3981_v48, 3 }
 0x189   :  { %v2272_v56 = vsel %vm425_vm3, %v4692_v6, %v2271_v26  ;;  %v1304_v17 = vadd.f32 %v1290_v15, %v1250_v21  ;;  %v1750_v50 = vrot.slane %v1722_v58, 5  ;;  %v451_v28 = vadd.f32 %v3998_v16, %v3964_v11  ;;  %v611_v15 = vpop.f32.mrf.mxu1 }
 0x18a   :  { %v1643_v62 = vsel %vm253_vm1, %v4693_v19, %v1642_v24  ;;  %v903_v10 = vadd.f32 %v889_v12, %v873_v49  ;;  %v4078_v38 = vmul.f32 0.0010283801, %v3978_v57  ;;  %v4695_v63 = vrot.slane %v3940_v44, 6 }
 0x18b   :  { %v1657_v6 = vadd.f32 %v1643_v62, %v1603_v27  ;;  %v1370_v61 = vmul.f32 0.036000773, %v4012_v3  ;;  %v1382_v54 = vmul.f32 0.007598758, %v4012_v3  ;;  %v4696_v36 = vrot.slane %v3983_v18, 4 }
 0x18c   :  { %4694 = vst [vmem:[#allocation48_spill] sm:$0xff] %v4078_v38  ;;  %v1320_v26 = vsel %vm394_vm5, %v4695_v63, %v1319_v9  ;;  %v4697_v12 = vrot.slane %v3938_v55, 7  ;;  %v4092_v57 = vmul.f32 0.0010283801, %v4012_v3  ;;  %v628_v16 = vmul.f32 0.007598758, %v611_v15 }
 0x18d   :  { %v1334_v21 = vadd.f32 %v1320_v26, %v1304_v17  ;;  %v1697_v58 = vsel %vm308_vm2, %v4696_v36, %v1696_v14  ;;  %v2286_v27 = vadd.f32 %v2272_v56, %v2256_v40  ;;  %v4698_v49 = vrot.slane %v3991_v41, 5  ;;  %v4699_v17 = vld [vmem:[#allocation14_spill] sm:$0xff] }
 0x18e   :  { %v1350_v11 = vsel %vm425_vm3, %v4697_v12, %v1349_v5  ;;  %v1711_v44 = vadd.f32 %v1697_v58, %v1657_v6  ;;  %v1780_v24 = vrot.slane %v1668_v4, 6  ;;  %v463_v19 = vadd.f32 %v4699_v17, %v451_v28  ;;  %v4702_v58 = vld [vmem:[#allocation12_spill] sm:$0xff] }
 0x18f   :  { %v1751_v9 = vsel %vm363_vm4, %v4698_v49, %v1750_v50  ;;  %v1810_v14 = vrot.slane %v1614_v35, 7  ;;  %v4099_v63 = vmul.f32 0.007598758, %v4044_v52  ;;  %v4102_v55 = vmul.f32 0.0010283801, %v4044_v52 }
 0x190   :  { %v1765_v62 = vadd.f32 %v1751_v9, %v1711_v44  ;;  %v1364_v3 = vadd.f32 %v1350_v11, %v1334_v21  ;;  %v622_v5 = vmul.f32 0.0010283801, %v611_v15  ;;  %v658_v26 = vmul.f32 0.036000773, %v611_v15 }
 0x191   :  { %v4104_v6 = vmul.f32 0.10936069, %v611_v15  ;;  %v4106_v56 = vadd.f32 %v909_v53, %v903_v10  ;;  %v640_v41 = vrot.slane %v628_v16, 1  ;;  %v4108_v40 = vmul.f32 0.21300554, %v611_v15 }
 0x192   :  { %v4110_v4 = vmul.f32 0.26601171, %v611_v15  ;;  %v1394_v50 = vrot.slane %v1382_v54, 1  ;;  %v1424_v35 = vrot.slane %v4092_v57, 2  ;;  %v4701_v28 = vrot.slane %v3983_v18, 6 }
 0x193   :  { %4700 = vst [vmem:[#allocation14_spill] sm:$0xff] %v4106_v56  ;;  %v4703_v21 = vrot.slane %v4702_v58, 1  ;;  %v4118_v11 = vadd.f32 %v2292_v47, %v2286_v27  ;;  %v1831_v53 = vmul.f32 0.036000773, %v4044_v52  ;;  %v1855_v10 = vrot.slane %v4099_v63, 1  ;;  %v1994_v27 = vpop.f32.mrf.mxu0  ;;  %v4705_v52 = vld [vmem:[#allocation13_spill] sm:$0xff] }
 0x194   :  { %v1781_v36 = vsel %vm394_vm5, %v4701_v28, %v1780_v24  ;;  %v1376_v16 = vadd.f32 %v1370_v61, %v1364_v3  ;;  %v1811_v54 = vsel %vm425_vm3, %v1809_v13, %v1810_v14  ;;  %v1885_v15 = vrot.slane %v4102_v55, 2  ;;  %v4709_v63 = vld [vmem:[#allocation34_spill] sm:$0xff] }
 0x195   :  { %v493_v12 = vadd.f32 %v4703_v21, %v463_v19  ;;  %4704 = vst [vmem:[#allocation12_spill] sm:$0xff] %v4118_v11  ;;  %v1795_v44 = vadd.f32 %v1781_v36, %v1765_v62  ;;  %v670_v18 = vrot.slane %v658_v26, 2  ;;  %v652_v57 = vadd.f32 %v640_v41, %v622_v5  ;;  %v4710_v5 = vld [vmem:[#allocation22_spill] sm:$0xff]  ;;  %v4713_v36 = vld [vmem:[#allocation28_spill] sm:$0xff]  ;;  %v1072_v21 = vpop.f32.mrf.mxu2 }
 0x196   :  { %v2011_v24 = vmul.f32 0.007598758, %v1994_v27  ;;  %v4706_v17 = vrot.slane %v4705_v52, 2  ;;  %v4707_v48 = vrot.slane %v3466_v45, 1  ;;  %v4708_v13 = vrot.slane %v3508_v7, 1  ;;  %v4711_v26 = vld [vmem:[#allocation26_spill] sm:$0xff] }
 0x197   :  { %v1825_v14 = vadd.f32 %v1811_v54, %v1795_v44  ;;  %v2343_v3 = vrot.slane %v4709_v63, 2  ;;  %v4712_v41 = vrot.slane %v4711_v26, 1  ;;  %v512_v58 = vrot.slane %v4713_v36, 2 }
 0x198   :  { %v523_v19 = vadd.f32 %v4706_v17, %v493_v12  ;;  %v942_v61 = vadd.f32 %v4707_v48, %v3531_v33  ;;  %v2325_v62 = vadd.f32 %v4708_v13, %v3549_v8  ;;  %v4714_v12 = vld [vmem:[#allocation33_spill] sm:$0xff]  ;;  %v4716_v33 = vld [vmem:[#allocation18_spill] sm:$0xff]  ;;  %v4717_v48 = vld [vmem:[#allocation24_spill] sm:$0xff]  ;;  %v1406_v8 = vadd.f32 %v1394_v50, %v1376_v16 }
 0x199   :  { %v494_v28 = vadd.f32 %v4712_v41, %v4710_v5  ;;  %v4715_v52 = vrot.slane %v4714_v12, 2  ;;  %v4718_v0 = vrot.slane %v4717_v48, 1  ;;  %v2041_v44 = vmul.f32 0.036000773, %v1994_v27  ;;  %v4719_v41 = vld [vmem:[#allocation37_spill] sm:$0xff]  ;;  %v4720_v50 = vld [vmem:[#allocation38_spill] sm:$0xff] }
 0x19a   :  { %v2361_v45 = vmul.f32 %v523_v19, %v523_v19  ;;  %v4148_v54 = vmul.f32 0.10936069, %v1994_v27  ;;  %v2355_v63 = vadd.f32 %v2343_v3, %v2325_v62  ;;  %v1837_v47 = vadd.f32 %v1831_v53, %v1825_v14 }
 0x19b   :  { %v972_v17 = vadd.f32 %v4715_v52, %v942_v61  ;;  %v495_v7 = vadd.f32 %v4718_v0, %v4716_v33  ;;  %v4150_v13 = vadd.f32 %v512_v58, %v494_v28  ;;  %v2005_v12 = vmul.f32 0.0010283801, %v1994_v27  ;;  %v4232_v11 = vpop.f32.mrf.mxu0 }
 0x19c   :  { %v2379_v36 = vsub.f32 %v4719_v41, %v2361_v45  ;;  %v2023_v61 = vrot.slane %v2011_v24, 1  ;;  %v1089_v52 = vmul.f32 0.007598758, %v1072_v21  ;;  %v4153_v9 = vadd.f32 %v670_v18, %v652_v57 }
 0x19d   :  { %v2367_v5 = vmul.f32 %v972_v17, %v972_v17  ;;  %v2373_v26 = vmul.f32 %v972_v17, %v523_v19  ;;  %v4157_v48 = vadd.f32 %v1424_v35, %v1406_v8  ;;  %v2053_v28 = vrot.slane %v2041_v44, 2 }
 0x19e   :  { %v4159_v62 = vmul.f32 0.21300554, %v1994_v27  ;;  %v4161_v19 = vmul.f32 0.26601171, %v1994_v27  ;;  %v1867_v18 = vadd.f32 %v1855_v10, %v1837_v47  ;;  %v2035_v57 = vadd.f32 %v2023_v61, %v2005_v12 }
 0x19f   :  { %v2385_v16 = vsub.f32 %v4720_v50, %v2367_v5  ;;  %v2529_v33 = vadd.f32 %v2367_v5, %v2361_v45  ;;  %4721 = vst [vmem:[#allocation13_spill] sm:$0xff] %v4157_v48  ;;  %v2391_v53 = vsub.f32 %v2355_v63, %v2373_v26  ;;  %v1101_v17 = vrot.slane %v1089_v52, 1  ;;  %v4182_v52 = vpop.f32.mrf.mxu1  ;;  %v4722_v50 = vld [vmem:[#allocation27_spill] sm:$0xff] }
 0x1a0   :  { %v1083_v35 = vmul.f32 0.0010283801, %v1072_v21  ;;  %v1119_v45 = vmul.f32 0.036000773, %v1072_v21  ;;  %v2517_v8 = vmul.f32 2.0, %v2373_v26  ;;  %v513_v26 = vrot.slane %v4722_v50, 2 }
 0x1a1   :  { %v2409_v14 = vadd.f32 %v2385_v16, %v2379_v36  ;;  %v4164_v24 = vadd.f32 6.5025, %v2529_v33  ;;  %v4171_v44 = vmul.f32 0.10936069, %v1072_v21  ;;  %v4173_v63 = vmul.f32 0.21300554, %v1072_v21 }
 0x1a2   :  { %v2397_v47 = vmul.f32 2.0, %v2391_v53  ;;  %v4178_v36 = vadd.f32 %v2053_v28, %v2035_v57  ;;  %v1113_v12 = vadd.f32 %v1101_v17, %v1083_v35  ;;  %v4180_v61 = vmul.f32 0.26601171, %v1072_v21 }
 0x1a3   :  { %v4167_v41 = vadd.f32 58.5225, %v2409_v14  ;;  %2797 = vrcp.f32 %v4164_v24  ;;  %v4187_v16 = vadd.f32 %v1885_v15, %v1867_v18  ;;  %v2564_v33 = vand.u32 2147483647, %v4164_v24 }
 0x1a4   :  { %v2566_v14 = vand.u32 2147483648, %v4164_v24  ;;  %v1131_v53 = vrot.slane %v1119_v45, 2  ;;  %v4191_v58 = vadd.f32 6.5025, %v2517_v8  ;;  %v4195_v57 = vadd.f32 %v513_v26, %v495_v7  ;;  %v1533_v8 = vpop.f32.mrf.mxu3 }
 0x1a5   :  { %2799 = vrcp.f32 %v4167_v41  ;;  %4723 = vst [vmem:[#allocation34_spill] sm:$0xff] %v4187_v16  ;;  %v2403_v35 = vadd.f32 58.5225, %v2397_v47  ;;  %v2444_v50 = vand.u32 2147483647, %v4167_v41  ;;  %v4203_v15 = vmul.f32 %v4150_v13, %v4150_v13 }
 0x1a6   :  { %v4199_v55 = vmul.f32 0.10936069, %v4182_v52  ;;  %vm2560_vm15 = vweird.f32 %v4164_v24  ;;  %v4207_v45 = vadd.f32 %v1131_v53, %v1113_v12  ;;  %vm2440_vm0 = vweird.f32 %v4167_v41 }
 0x1a7   :  { %v2446_v47 = vand.u32 2147483648, %v4167_v41  ;;  %vm4212_vm6 = vcmp.eq.f32.partialorder %v2564_v33, 8.507059e+37  ;;  %v2567_v21 = vor.u32 1.1754944e-38, %v2566_v14  ;;  %vm4219_vm7 = vcmp.eq.f32.partialorder %v2444_v50, 8.507059e+37 }
 0x1a8   :  { %v1550_v7 = vmul.f32 0.007598758, %v1533_v8  ;;  %v723_v27 = vrot.slane %v4199_v55, 3  ;;  %v748_v33 = vmul.f32 0.21300554, %v4182_v52  ;;  %v4731_v53 = vrot.slane %v4148_v54, 3 }
 0x1a9   :  { %v2798_v17 = vpop.eup %2797  ;;  %v1580_v14 = vmul.f32 0.036000773, %v1533_v8  ;;  %v4225_v38 = vmul.f32 0.10936069, %v1533_v8  ;;  %v802_v50 = vmul.f32 0.26601171, %v4182_v52 }
 0x1aa   :  { %v2556_v18 = vmul.f32 %v2798_v17, %v4164_v24  ;;  %vm2561_vm8 = vweird.f32 %v2798_v17  ;;  %v777_v12 = vrot.slane %v748_v33, 4  ;;  %v1562_v2 = vrot.slane %v1550_v7, 1 }
 0x1ab   :  { %v2800_v26 = vpop.eup %2799  ;;  %vm2562_vm10 = vmor %vm2560_vm15, %vm2561_vm8  ;;  %v4236_v46 = vmul.f32 0.21300554, %v1533_v8  ;;  %v4238_v30 = vmul.f32 0.26601171, %v1533_v8  ;;  %v2131_v24 = vmul.f32 0.21300554, %v4232_v11 }
 0x1ac   :  { %v2436_v28 = vmul.f32 %v2800_v26, %v4167_v41  ;;  %v2557_v5 = vsub.f32 1.0, %v2556_v18  ;;  %v4728_v18 = vrot.slane %v4104_v6, 3  ;;  %vm2441_vm9 = vweird.f32 %v2800_v26 }
 0x1ad   :  { %vm2442_vm11 = vmor %vm2440_vm0, %vm2441_vm9 }
 0x1ae   :  { %v2437_v3 = vsub.f32 1.0, %v2436_v28  ;;  %v2558_v49 = vmul.f32 %v2798_v17, %v2557_v5  ;;  %v724_v0 = vsel %vm253_vm1, %v4728_v18, %v723_v27  ;;  %v2447_v28 = vor.u32 1.1754944e-38, %v2446_v47 }
 0x1af   :  { %v736_v39 = vadd.f32 %v724_v0, %v4153_v9  ;;  %v1544_v5 = vmul.f32 0.0010283801, %v1533_v8  ;;  %v1592_v18 = vrot.slane %v1580_v14, 2  ;;  %v831_v0 = vrot.slane %v802_v50, 5 }
 0x1b0   :  { %v2438_v48 = vmul.f32 %v2800_v26, %v2437_v3  ;;  %v2559_v16 = vadd.f32 %v2798_v17, %v2558_v49  ;;  %v4729_v49 = vrot.slane %v4108_v40, 4  ;;  %v4246_v3 = vmul.f32 0.10936069, %v4232_v11 }
 0x1b1   :  { %v2160_v47 = vrot.slane %v2131_v24, 4  ;;  %v1574_v50 = vadd.f32 %v1562_v2, %v1544_v5 }
 0x1b2   :  { %v2439_v56 = vadd.f32 %v2800_v26, %v2438_v48  ;;  %v2563_v27 = vsel %vm2562_vm10, %v2798_v17, %v2559_v16  ;;  %v778_v9 = vsel %vm308_vm2, %v4729_v49, %v777_v12  ;;  %v1644_v16 = vrot.slane %v4225_v38, 3 }
 0x1b3   :  { %v2568_v48 = vsel %vm4212_vm6, %v2567_v21, %v2563_v27  ;;  %v790_v17 = vadd.f32 %v778_v9, %v736_v39  ;;  %v2106_v8 = vrot.slane %v4246_v3, 3  ;;  %v2185_v12 = vmul.f32 0.26601171, %v4232_v11  ;;  %v4265_v27 = vpop.f32.mrf.mxu2 }
 0x1b4   :  { %v2443_v7 = vsel %vm2442_vm11, %v2800_v26, %v2439_v56  ;;  %v1698_v49 = vrot.slane %v4236_v46, 4  ;;  %v1752_v56 = vrot.slane %v4238_v30, 5  ;;  %v4730_v21 = vrot.slane %v4110_v4, 5  ;;  %v4756_v30 = vld [vmem:[#allocation45_spill] sm:$0xff] }
 0x1b5   :  { %v2448_v41 = vsel %vm4219_vm7, %v2447_v28, %v2443_v7  ;;  %v861_v26 = vrot.slane %v748_v33, 6  ;;  %v2107_v28 = vsel %vm253_vm1, %v4731_v53, %v2106_v8  ;;  %v2569_v2 = vmul.f32 %v2568_v48, %v4191_v58 }
 0x1b6   :  { %v2449_v14 = vmul.f32 %v2448_v41, %v2403_v35  ;;  %v832_v39 = vsel %vm363_vm4, %v4730_v21, %v831_v0  ;;  %v2119_v5 = vadd.f32 %v2107_v28, %v4178_v36  ;;  %v1812_v7 = vrot.slane %v4225_v38, 7 }
 0x1b7   :  { %v844_v35 = vadd.f32 %v832_v39, %v790_v17  ;;  %v891_v41 = vrot.slane %v4199_v55, 7  ;;  %v4732_v4 = vrot.slane %v4159_v62, 4  ;;  %v2214_v0 = vrot.slane %v2185_v12, 5 }
 0x1b8   :  { %v2511_v9 = vmax.f32 %v2449_v14, 0.0  ;;  %v1604_v10 = vadd.f32 %v1592_v18, %v1574_v50  ;;  %v4275_v8 = vmul.f32 0.007598758, %v4182_v52  ;;  %v1155_v14 = vmul.f32 0.10936069, %v4265_v27 }
 0x1b9   :  { %v2161_v33 = vsel %vm308_vm2, %v4732_v4, %v2160_v47  ;;  %v4733_v58 = vrot.slane %v4108_v40, 6  ;;  %v4282_v48 = vmul.f32 0.0010283801, %v4182_v52  ;;  %v1209_v55 = vmul.f32 0.21300554, %v4265_v27 }
 0x1ba   :  { %v2631_v21 = vmul.f32 %v2569_v2, %v2511_v9  ;;  %v1263_v17 = vmul.f32 0.26601171, %v4265_v27  ;;  %v2173_v18 = vadd.f32 %v2161_v33, %v2119_v5  ;;  %v1184_v50 = vrot.slane %v1155_v14, 3  ;;  %v4298_v33 = vpop.f32.mrf.mxu3 }
 0x1bb   :  { %v862_v36 = vsel %vm394_vm5, %v4733_v58, %v861_v26  ;;  %v4734_v39 = vrot.slane %v4104_v6, 7  ;;  %v910_v40 = vmul.f32 0.036000773, %v4182_v52  ;;  %v4735_v26 = vrot.slane %v4161_v19, 5 }
 0x1bc   :  { %v2640_v47 = vsel %vm2636_vm13, %v2631_v21, 0.0  ;;  %v874_v12 = vadd.f32 %v862_v36, %v844_v35  ;;  %v1238_v9 = vrot.slane %v1209_v55, 4  ;;  %v2244_v2 = vrot.slane %v2131_v24, 6 }
 0x1bd   :  { %2641 = vadd.xlane.f32.xlu0 %v2640_v47  ;;  %v892_v53 = vsel %vm425_vm3, %v4734_v39, %v891_v41  ;;  %v2215_v28 = vsel %vm363_vm4, %v4735_v26, %v2214_v0  ;;  %v2274_v4 = vrot.slane %v4246_v3, 7  ;;  %v4736_v21 = vrot.slane %v4171_v44, 3 }
 0x1be   :  { %v1292_v5 = vrot.slane %v1263_v17, 5  ;;  %v934_v6 = vrot.slane %v4275_v8, 1  ;;  %v964_v41 = vrot.slane %v4282_v48, 2  ;;  %v4303_v52 = vmul.f32 0.036000773, %v4232_v11 }
 0x1bf   :  { %v1185_v35 = vsel %vm253_vm1, %v4736_v21, %v1184_v50  ;;  %v904_v0 = vadd.f32 %v892_v53, %v874_v12  ;;  %v2227_v24 = vadd.f32 %v2215_v28, %v2173_v18  ;;  %v4737_v3 = vrot.slane %v4173_v63, 4 }
 0x1c0   :  { %v1197_v19 = vadd.f32 %v1185_v35, %v4207_v45  ;;  %v1322_v36 = vrot.slane %v1209_v55, 6  ;;  %v1616_v17 = vmul.f32 0.10936069, %v4298_v33  ;;  %v1670_v50 = vmul.f32 0.21300554, %v4298_v33 }
 0x1c1   :  { %v1239_v58 = vsel %vm308_vm2, %v4737_v3, %v1238_v9  ;;  %v1724_v39 = vmul.f32 0.26601171, %v4298_v33  ;;  %v4738_v26 = vrot.slane %v4159_v62, 6  ;;  %v4739_v45 = vrot.slane %v4148_v54, 7 }
 0x1c2   :  { %v1251_v47 = vadd.f32 %v1239_v58, %v1197_v19  ;;  %v4740_v18 = vrot.slane %v4180_v61, 5  ;;  %v1352_v53 = vrot.slane %v1155_v14, 7  ;;  %v4324_v28 = vmul.f32 0.007598758, %v4232_v11 }
 0x1c3   :  { %v2245_v21 = vsel %vm394_vm5, %v4738_v26, %v2244_v2  ;;  %v4318_v12 = vsel %vm425_vm3, %v4739_v45, %v2274_v4  ;;  %v1645_v35 = vrot.slane %v1616_v17, 3  ;;  %v1699_v19 = vrot.slane %v1670_v50, 4  ;;  %v4746_v45 = vld [vmem:[#allocation36_spill] sm:$0xff] }
 0x1c4   :  { %v1293_v55 = vsel %vm363_vm4, %v4740_v18, %v1292_v5  ;;  %v916_v3 = vadd.f32 %v910_v40, %v904_v0  ;;  %v4327_v62 = vmul.f32 0.0010283801, %v4232_v11  ;;  %v4741_v54 = vrot.slane %v4173_v63, 6 }
 0x1c5   :  { %v1305_v9 = vadd.f32 %v1293_v55, %v1251_v47  ;;  %v1383_v4 = vmul.f32 0.007598758, %v4265_v27  ;;  %v2257_v61 = vadd.f32 %v2245_v21, %v2227_v24  ;;  %v1646_v14 = vsel %vm253_vm1, %v1644_v16, %v1645_v35  ;;  %v4744_v16 = vld [vmem:[#allocation41_spill] sm:$0xff] }
 0x1c6   :  { %v1323_v2 = vsel %vm394_vm5, %v4741_v54, %v1322_v36  ;;  %v1753_v5 = vrot.slane %v1724_v39, 5  ;;  %v4742_v47 = vrot.slane %v4171_v44, 7  ;;  %v1371_v11 = vmul.f32 0.036000773, %v4265_v27  ;;  %v4751_v54 = vld [vmem:[#allocation35_spill] sm:$0xff] }
 0x1c7   :  { %v1335_v58 = vadd.f32 %v1323_v2, %v1305_v9  ;;  %v1658_v0 = vadd.f32 %v1646_v14, %v1604_v10  ;;  %v1783_v26 = vrot.slane %v1670_v50, 6  ;;  %v1700_v63 = vsel %vm308_vm2, %v1698_v49, %v1699_v19  ;;  %v4748_v10 = vld [vmem:[#allocation44_spill] sm:$0xff] }
 0x1c8   :  { %v1353_v40 = vsel %vm425_vm3, %v4742_v47, %v1352_v53  ;;  %v4743_v24 = vrot.slane %v3634_v43, 1  ;;  %v961_v21 = vrot.slane %v3673_v22, 2  ;;  %v4745_v39 = vrot.slane %v4744_v16, 6  ;;  %v4749_v9 = vld [vmem:[#allocation40_spill] sm:$0xff] }
 0x1c9   :  { %v4747_v44 = vrot.slane %v4746_v45, 6  ;;  %v1395_v55 = vrot.slane %v1383_v4, 1  ;;  %v1712_v53 = vadd.f32 %v1700_v63, %v1658_v0  ;;  %v4750_v35 = vrot.slane %v4749_v9, 7 }
 0x1ca   :  { %v943_v36 = vadd.f32 %v4743_v24, %v3699_v37  ;;  %v4752_v49 = vrot.slane %v4751_v54, 7  ;;  %v1365_v43 = vadd.f32 %v1353_v40, %v1335_v58  ;;  %v1413_v37 = vmul.f32 0.0010283801, %v4265_v27 }
 0x1cb   :  { %v2236_v18 = vsel %vm394_vm5, %v4747_v44, %v4745_v39  ;;  %v1754_v22 = vsel %vm363_vm4, %v1752_v56, %v1753_v5  ;;  %v1813_v47 = vrot.slane %v1616_v17, 7  ;;  %v4753_v0 = vrot.slane %v3789_v60, 6  ;;  %v4759_v44 = vld [vmem:[#allocation46_spill] sm:$0xff] }
 0x1cc   :  { %v2254_v50 = vadd.f32 %v2236_v18, %v4748_v10  ;;  %v2266_v19 = vsel %vm425_vm3, %v4752_v49, %v4750_v35  ;;  %v973_v2 = vadd.f32 %v961_v21, %v943_v36  ;;  %v1766_v14 = vadd.f32 %v1754_v22, %v1712_v53  ;;  %v4757_v36 = vld [vmem:[#allocation43_spill] sm:$0xff] }
 0x1cd   :  { %v4754_v63 = vrot.slane %v3724_v51, 6  ;;  %v4755_v16 = vrot.slane %v4236_v46, 6  ;;  %v1832_v27 = vmul.f32 0.036000773, %v4298_v33  ;;  %v2380_v56 = vsub.f32 %v4756_v30, %v4203_v15  ;;  %v4758_v21 = vld [vmem:[#allocation39_spill] sm:$0xff]  ;;  %v4767_v30 = vld [vmem:[#allocation21_spill] sm:$0xff] }
 0x1ce   :  { %v2284_v4 = vadd.f32 %v2266_v19, %v2254_v50  ;;  %v2368_v40 = vmul.f32 %v973_v2, %v973_v2  ;;  %v2332_v39 = vmul.f32 0.0010283801, %v4758_v21  ;;  %v1377_v51 = vadd.f32 %v1371_v11, %v1365_v43 }
 0x1cf   :  { %v2239_v24 = vsel %vm394_vm5, %v4754_v63, %v4753_v0  ;;  %v1784_v58 = vsel %vm394_vm5, %v4755_v16, %v1783_v26  ;;  %v1844_v45 = vmul.f32 0.007598758, %v4298_v33  ;;  %v1814_v18 = vsel %vm425_vm3, %v1812_v7, %v1813_v47  ;;  %v4763_v7 = vld [vmem:[#allocation42_spill] sm:$0xff] }
 0x1d0   :  { %v1796_v5 = vadd.f32 %v1784_v58, %v1766_v14  ;;  %v2296_v17 = vadd.f32 %v4757_v36, %v2284_v4  ;;  %v2255_v60 = vadd.f32 %v2239_v24, %v3861_v32  ;;  %v2386_v46 = vsub.f32 %v4759_v44, %v2368_v40 }
 0x1d1   :  { %v2530_v26 = vadd.f32 %v2368_v40, %v4203_v15  ;;  %v2374_v53 = vmul.f32 %v973_v2, %v4150_v13  ;;  %v4760_v10 = vrot.slane %v3799_v23, 1  ;;  %v4761_v9 = vrot.slane %v3778_v31, 7  ;;  %v4766_v40 = vld [vmem:[#allocation25_spill] sm:$0xff] }
 0x1d2   :  { %v4762_v32 = vrot.slane %v3722_v25, 7  ;;  %v1826_v35 = vadd.f32 %v1814_v18, %v1796_v5  ;;  %v2410_v54 = vadd.f32 %v2386_v46, %v2380_v56  ;;  %v4394_v38 = vmul.f32 0.0010283801, %v4298_v33  ;;  %v4768_v5 = vld [vmem:[#allocation15_spill] sm:$0xff] }
 0x1d3   :  { %v944_v50 = vadd.f32 %v4760_v10, %v3859_v59  ;;  %v4391_v49 = vadd.f32 6.5025, %v2530_v26  ;;  %v4764_v13 = vrot.slane %v4763_v7, 1  ;;  %v2344_v43 = vrot.slane %v2332_v39, 2  ;;  %v4774_v7 = vld [vmem:[#allocation14_spill] sm:$0xff] }
 0x1d4   :  { %v2269_v11 = vsel %vm425_vm3, %v4762_v32, %v4761_v9  ;;  %v962_v23 = vrot.slane %v3833_v34, 2  ;;  %v1407_v59 = vadd.f32 %v1395_v55, %v1377_v51  ;;  %v4399_v31 = vadd.f32 58.5225, %v2410_v54  ;;  %v4773_v54 = vld [vmem:[#allocation23_spill] sm:$0xff] }
 0x1d5   :  { %v2285_v15 = vadd.f32 %v2269_v11, %v2255_v60  ;;  %v2326_v19 = vadd.f32 %v4764_v13, %v2296_v17  ;;  %2801 = vrcp.f32 %v4391_v49  ;;  %v2333_v25 = vmul.f32 0.0010283801, %v3767_v42  ;;  %v4775_v13 = vld [vmem:[#allocation29_spill] sm:$0xff] }
 0x1d6   :  { %v2317_v22 = vrot.slane %v4324_v28, 1  ;;  %v2518_v2 = vmul.f32 2.0, %v2374_v53  ;;  %v974_v14 = vadd.f32 %v962_v23, %v944_v50  ;;  %v4407_v47 = vadd.f32 %v934_v6, %v916_v3 }
 0x1d7   :  { %v2297_v33 = vadd.f32 %v3851_v29, %v2285_v15  ;;  %v1425_v4 = vrot.slane %v1413_v37, 2  ;;  %v1838_v0 = vadd.f32 %v1832_v27, %v1826_v35  ;;  %2803 = vrcp.f32 %v4399_v31 }
 0x1d8   :  { %v4411_v34 = vadd.f32 %v4318_v12, %v2257_v61  ;;  %v1856_v55 = vrot.slane %v1844_v45, 1  ;;  %v2356_v63 = vadd.f32 %v2344_v43, %v2326_v19  ;;  %v2363_v42 = vmul.f32 %v4195_v57, %v4195_v57 }
 0x1d9   :  { %v4415_v24 = vadd.f32 %v1425_v4, %v1407_v59  ;;  %v1886_v29 = vrot.slane %v4394_v38, 2  ;;  %v4765_v8 = vrot.slane %v3837_v20, 1  ;;  %v2345_v3 = vrot.slane %v2333_v25, 2  ;;  %v4770_v20 = vld [vmem:[#allocation20_spill] sm:$0xff]  ;;  %v4794_v4 = vld [vmem:[#allocation31_spill] sm:$0xff] }
 0x1da   :  { %v4420_v37 = vadd.f32 6.5025, %v2518_v2  ;;  %vm2575_vm1 = vweird.f32 %v4391_v49  ;;  %v2369_v16 = vmul.f32 %v974_v14, %v974_v14  ;;  %v2381_v12 = vsub.f32 %v3903_v1, %v2363_v42  ;;  %v4772_v1 = vld [vmem:[#allocation47_spill] sm:$0xff] }
 0x1db   :  { %v2327_v6 = vadd.f32 %v4765_v8, %v2297_v33  ;;  %v2802_v61 = vpop.eup %2801  ;;  %v4424_v58 = vadd.f32 %v1856_v55, %v1838_v0  ;;  %v2579_v27 = vand.u32 2147483647, %v4391_v49  ;;  %v423_v56 = vadd.f32 %v4767_v30, %v4766_v40  ;;  %v4779_v55 = vld [vmem:[#allocation11_spill] sm:$0xff] }
 0x1dc   :  { %v4769_v36 = vrot.slane %v4768_v5, 7  ;;  %v4771_v17 = vrot.slane %v4770_v20, 7  ;;  %v2392_v39 = vsub.f32 %v2356_v63, %v2374_v53  ;;  %v2571_v60 = vmul.f32 %v2802_v61, %v4391_v49 }
 0x1dd   :  { %v2581_v51 = vand.u32 2147483648, %v4391_v49  ;;  %v2387_v45 = vsub.f32 %v4772_v1, %v2369_v16  ;;  %v2804_v44 = vpop.eup %2803  ;;  %v2357_v46 = vadd.f32 %v2345_v3, %v2327_v6  ;;  %v2375_v26 = vmul.f32 %v974_v14, %v4195_v57  ;;  %v4784_v49 = vld [vmem:[#allocation19_spill] sm:$0xff] }
 0x1de   :  { %v440_v21 = vsel %vm425_vm3, %v4771_v17, %v4769_v36  ;;  %v2531_v18 = vadd.f32 %v2369_v16, %v2363_v42  ;;  %v2451_v50 = vmul.f32 %v2804_v44, %v4399_v31  ;;  %v2459_v9 = vand.u32 2147483647, %v4399_v31  ;;  %v4781_v16 = vld [vmem:[#allocation16_spill] sm:$0xff] }
 0x1df   :  { %v454_v10 = vadd.f32 %v440_v21, %v423_v56  ;;  %v2572_v32 = vsub.f32 1.0, %v2571_v60  ;;  %v2411_v11 = vadd.f32 %v2387_v45, %v2381_v12  ;;  %v2461_v53 = vand.u32 2147483648, %v4399_v31  ;;  %v4783_v36 = vld [vmem:[#allocation12_spill] sm:$0xff] }
 0x1e0   :  { %v4441_v35 = vadd.f32 6.5025, %v2531_v18  ;;  %v4776_v19 = vrot.slane %v4775_v13, 1  ;;  %v2452_v23 = vsub.f32 1.0, %v2451_v50  ;;  %vm2576_vm2 = vweird.f32 %v2802_v61 }
 0x1e1   :  { %v466_v15 = vadd.f32 %v4773_v54, %v454_v10  ;;  %v2573_v57 = vmul.f32 %v2802_v61, %v2572_v32  ;;  %v4447_v59 = vadd.f32 58.5225, %v2411_v11  ;;  %v2398_v25 = vmul.f32 2.0, %v2392_v39  ;;  %vm2577_vm12 = vmor %vm2575_vm1, %vm2576_vm2  ;;  %v4786_v39 = vld [vmem:[#allocation17_spill] sm:$0xff] }
 0x1e2   :  { %v945_v43 = vadd.f32 %v4776_v19, %v4774_v7  ;;  %vm2455_vm3 = vweird.f32 %v4399_v31  ;;  %v2393_v2 = vsub.f32 %v2357_v46, %v2375_v26  ;;  %2805 = vrcp.f32 %v4441_v35  ;;  %v4788_v46 = vld [vmem:[#allocation32_spill] sm:$0xff]  ;;  %v4791_v7 = vld [vmem:[#allocation34_spill] sm:$0xff] }
 0x1e3   :  { %v2453_v14 = vmul.f32 %v2804_v44, %v2452_v23  ;;  %vm2456_vm4 = vweird.f32 %v2804_v44  ;;  %v2574_v33 = vadd.f32 %v2802_v61, %v2573_v57  ;;  %2807 = vrcp.f32 %v4447_v59  ;;  %v4792_v23 = vld [vmem:[#allocation13_spill] sm:$0xff] }
 0x1e4   :  { %vm4452_vm5 = vcmp.eq.f32.partialorder %v2459_v9, 8.507059e+37  ;;  %vm2580_vm14 = vcmp.eq.f32.partialorder %v2579_v27, 8.507059e+37  ;;  %v2582_v0 = vor.u32 1.1754944e-38, %v2581_v51  ;;  %v4780_v63 = vrot.slane %v4779_v55, 2  ;;  %vm2457_vm15 = vmor %vm2455_vm3, %vm2456_vm4 }
 0x1e5   :  { %v2454_v8 = vadd.f32 %v2804_v44, %v2453_v14  ;;  %v2462_v6 = vor.u32 1.1754944e-38, %v2461_v53  ;;  %v2578_v3 = vsel %vm2577_vm12, %v2802_v61, %v2574_v33  ;;  %v4782_v12 = vrot.slane %v4781_v16, 1  ;;  %v4793_v14 = vld [vmem:[#allocation48_spill] sm:$0xff] }
 0x1e6   :  { %v975_v42 = vadd.f32 %v4780_v63, %v945_v43  ;;  %v2404_v30 = vadd.f32 58.5225, %v2398_v25  ;;  %v2399_v56 = vmul.f32 2.0, %v2393_v2  ;;  %v2519_v5 = vmul.f32 2.0, %v2375_v26  ;;  %v4789_v26 = vld [vmem:[#allocation30_spill] sm:$0xff] }
 0x1e7   :  { %v496_v40 = vadd.f32 %v4782_v12, %v466_v15  ;;  %v4785_v20 = vrot.slane %v4784_v49, 1  ;;  %v2458_v17 = vsel %vm2457_vm15, %v2804_v44, %v2454_v8  ;;  %v2583_v21 = vsel %vm2580_vm14, %v2582_v0, %v2578_v3 }
 0x1e8   :  { %vm2590_vm0 = vweird.f32 %v4441_v35  ;;  %v4787_v60 = vrot.slane %v4786_v39, 2  ;;  %v2806_v51 = vpop.eup %2805  ;;  %v2463_v1 = vsel %vm4452_vm5, %v2462_v6, %v2458_v17  ;;  %v2594_v31 = vand.u32 2147483647, %v4441_v35 }
 0x1e9   :  { %v2328_v27 = vadd.f32 %v4785_v20, %v4783_v36  ;;  %v2370_v45 = vmul.f32 %v975_v42, %v975_v42  ;;  %v4790_v18 = vrot.slane %v4789_v26, 1  ;;  %v2808_v50 = vpop.eup %2807  ;;  %v2464_v9 = vmul.f32 %v2463_v1, %v2404_v30 }
 0x1ea   :  { %v526_v61 = vadd.f32 %v4787_v60, %v496_v40  ;;  %v2476_v44 = vand.u32 2147483648, %v4447_v59  ;;  %v2586_v32 = vmul.f32 %v2806_v51, %v4441_v35  ;;  %v2584_v53 = vmul.f32 %v2583_v21, %v4420_v37 }
 0x1eb   :  { %v497_v10 = vadd.f32 %v4790_v18, %v4788_v46  ;;  %v2466_v54 = vmul.f32 %v2808_v50, %v4447_v59  ;;  %v2596_v15 = vand.u32 2147483648, %v4441_v35  ;;  %v2388_v13 = vsub.f32 %v4791_v7, %v2370_v45 }
 0x1ec   :  { %v2364_v11 = vmul.f32 %v526_v61, %v526_v61  ;;  %v2512_v19 = vmax.f32 %v2464_v9, 0.0  ;;  %v2587_v43 = vsub.f32 1.0, %v2586_v32  ;;  %vm2591_vm6 = vweird.f32 %v2806_v51 }
 0x1ed   :  { %v2467_v2 = vsub.f32 1.0, %v2466_v54  ;;  %v2346_v33 = vrot.slane %v4793_v14, 2  ;;  %v4795_v0 = vrot.slane %v4794_v4, 2  ;;  %vm2470_vm7 = vweird.f32 %v4447_v59  ;;  %vm4499_vm9 = vmor %vm2590_vm0, %vm2591_vm6 }
 0x1ee   :  { %v2382_v57 = vsub.f32 %v4792_v23, %v2364_v11  ;;  %v2532_v25 = vadd.f32 %v2370_v45, %v2364_v11  ;;  %v2632_v37 = vmul.f32 %v2584_v53, %v2512_v19  ;;  %v2588_v63 = vmul.f32 %v2806_v51, %v2587_v43 }
 0x1ef   :  { %v4486_v55 = vadd.f32 %v4795_v0, %v497_v10  ;;  %v2468_v3 = vmul.f32 %v2808_v50, %v2467_v2  ;;  %vm2471_vm8 = vweird.f32 %v2808_v50  ;;  %v2474_v16 = vand.u32 2147483647, %v4447_v59 }
 0x1f0   :  { %v2412_v8 = vadd.f32 %v2388_v13, %v2382_v57  ;;  %v4488_v6 = vadd.f32 6.5025, %v2532_v25  ;;  %v2643_v12 = vsel %vm2636_vm13, %v2632_v37, 0.0  ;;  %v2589_v40 = vadd.f32 %v2806_v51, %v2588_v63  ;;  %vm2472_vm10 = vmor %vm2470_vm7, %vm2471_vm8 }
 0x1f1   :  { %2644 = vadd.xlane.f32.xlu2 %v2643_v12  ;;  %v2469_v36 = vadd.f32 %v2808_v50, %v2468_v3  ;;  %v2477_v49 = vor.u32 1.1754944e-38, %v2476_v44  ;;  %v2358_v17 = vadd.f32 %v2346_v33, %v2328_v27  ;;  %v2376_v21 = vmul.f32 %v975_v42, %v526_v61 }
 0x1f2   :  { %v4493_v30 = vadd.f32 58.5225, %v2412_v8  ;;  %2809 = vrcp.f32 %v4488_v6  ;;  %v2593_v59 = vsel %vm4499_vm9, %v2806_v51, %v2589_v40  ;;  %v2597_v39 = vor.u32 1.1754944e-38, %v2596_v15 }
 0x1f3   :  { %v976_v60 = vadd.f32 %v964_v41, %v4407_v47  ;;  %v2405_v1 = vadd.f32 58.5225, %v2399_v56  ;;  %v2473_v45 = vsel %vm2472_vm10, %v2808_v50, %v2469_v36  ;;  %vm2475_vm11 = vcmp.eq.f32.partialorder %v2474_v16, 8.507059e+37 }
 0x1f4   :  { %2811 = vrcp.f32 %v4493_v30  ;;  %vm2595_vm1 = vcmp.eq.f32.partialorder %v2594_v31, 8.507059e+37  ;;  %v2299_v35 = vadd.f32 %v4303_v52, %v4411_v34  ;;  %v1898_v42 = vadd.f32 %v1886_v29, %v4424_v58 }
 0x1f5   :  { %v2478_v27 = vsel %vm2475_vm11, %v2477_v49, %v2473_v45  ;;  %v2598_v61 = vsel %vm2595_vm1, %v2597_v39, %v2593_v59  ;;  %v2525_v46 = vadd.f32 6.5025, %v2519_v5  ;;  %v2394_v26 = vsub.f32 %v2358_v17, %v2376_v21 }
 0x1f6   :  { %v2479_v51 = vmul.f32 %v2478_v27, %v2405_v1  ;;  %v2365_v48 = vmul.f32 %v4486_v55, %v4486_v55  ;;  %v2371_v47 = vmul.f32 %v976_v60, %v976_v60  ;;  %v2329_v38 = vadd.f32 %v2317_v22, %v2299_v35 }
 0x1f7   :  { %v2599_v18 = vmul.f32 %v2598_v61, %v2525_v46  ;;  %v2347_v29 = vrot.slane %v4327_v62, 2  ;;  %v2400_v50 = vmul.f32 2.0, %v2394_v26  ;;  %vm2605_vm2 = vweird.f32 %v4488_v6 }
 0x1f8   :  { %v2810_v41 = vpop.eup %2809  ;;  %v2513_v56 = vmax.f32 %v2479_v51, 0.0  ;;  %v2383_v52 = vsub.f32 %v4415_v24, %v2365_v48  ;;  %v2389_v58 = vsub.f32 %v1898_v42, %v2371_v47  ;;  %v2533_v5 = vadd.f32 %v2371_v47, %v2365_v48 }
 0x1f9   :  { %v2601_v31 = vmul.f32 %v2810_v41, %v4488_v6  ;;  %v2609_v32 = vand.u32 2147483647, %v4488_v6  ;;  %vm2606_vm3 = vweird.f32 %v2810_v41  ;;  %v2491_v62 = vand.u32 2147483648, %v4493_v30 }
 0x1fa   :  { %v2812_v34 = vpop.eup %2811  ;;  %v2633_v10 = vmul.f32 %v2599_v18, %v2513_v56  ;;  %v2413_v11 = vadd.f32 %v2389_v58, %v2383_v52  ;;  %v4524_v53 = vadd.f32 6.5025, %v2533_v5  ;;  %v2611_v54 = vand.u32 2147483648, %v4488_v6  ;;  %vm4533_vm5 = vmor %vm2605_vm2, %vm2606_vm3 }
 0x1fb   :  { %v2481_v9 = vmul.f32 %v2812_v34, %v4493_v30  ;;  %v2602_v44 = vsub.f32 1.0, %v2601_v31  ;;  %vm2486_vm4 = vweird.f32 %v2812_v34  ;;  %v2489_v13 = vand.u32 2147483647, %v4493_v30 }
 0x1fc   :  { %v2646_v24 = vsel %vm2636_vm13, %v2633_v10, 0.0  ;;  %v2419_v15 = vadd.f32 58.5225, %v2413_v11  ;;  %2813 = vrcp.f32 %v4524_v53  ;;  %v2359_v23 = vadd.f32 %v2347_v29, %v2329_v38  ;;  %v2639_v10 = vpop.xlane.xlu0 %2638 }
 0x1fd   :  { %v2482_v28 = vsub.f32 1.0, %v2481_v9  ;;  %v2603_v22 = vmul.f32 %v2810_v41, %v2602_v44  ;;  %2647 = vadd.xlane.f32.xlu1 %v2646_v24  ;;  %v2377_v57 = vmul.f32 %v976_v60, %v4486_v55  ;;  %vm2485_vm12 = vweird.f32 %v4493_v30 }
 0x1fe   :  { %2815 = vrcp.f32 %v2419_v15  ;;  %v2520_v2 = vmul.f32 2.0, %v2376_v21  ;;  %vm2487_vm14 = vmor %vm2485_vm12, %vm2486_vm4  ;;  %v2492_v33 = vor.u32 1.1754944e-38, %v2491_v62  ;;  %v2612_v4 = vor.u32 1.1754944e-38, %v2611_v54 }
 0x1ff   :  { %v2483_v7 = vmul.f32 %v2812_v34, %v2482_v28  ;;  %v2604_v19 = vadd.f32 %v2810_v41, %v2603_v22  ;;  %v2406_v0 = vadd.f32 58.5225, %v2400_v50  ;;  %vm2490_vm15 = vcmp.eq.f32.partialorder %v2489_v13, 8.507059e+37 }
 0x200   :  { %vm2610_vm0 = vcmp.eq.f32.partialorder %v2609_v32, 8.507059e+37  ;;  %v2395_v3 = vsub.f32 %v2359_v23, %v2377_v57  ;;  %v2526_v16 = vadd.f32 6.5025, %v2520_v2  ;;  %vm2620_vm6 = vweird.f32 %v4524_v53 }
 0x201   :  { %v2484_v25 = vadd.f32 %v2812_v34, %v2483_v7  ;;  %v2608_v14 = vsel %vm4533_vm5, %v2810_v41, %v2604_v19  ;;  %v2504_v60 = vand.u32 2147483647, %v2419_v15  ;;  %v2506_v1 = vand.u32 2147483648, %v2419_v15 }
 0x202   :  { %v2814_v63 = vpop.eup %2813  ;;  %v2613_v6 = vsel %vm2610_vm0, %v2612_v4, %v2608_v14  ;;  %v2401_v17 = vmul.f32 2.0, %v2395_v3  ;;  %v2624_v45 = vand.u32 2147483647, %v4524_v53  ;;  %v2626_v35 = vand.u32 2147483648, %v4524_v53 }
 0x203   :  { %v2488_v37 = vsel %vm2487_vm14, %v2812_v34, %v2484_v25  ;;  %v2616_v12 = vmul.f32 %v2814_v63, %v4524_v53  ;;  %v2614_v36 = vmul.f32 %v2613_v6, %v2526_v16  ;;  %vm2621_vm7 = vweird.f32 %v2814_v63 }
 0x204   :  { %v2493_v8 = vsel %vm2490_vm15, %v2492_v33, %v2488_v37  ;;  %v2816_v40 = vpop.eup %2815  ;;  %vm2622_vm9 = vmor %vm2620_vm6, %vm2621_vm7  ;;  %vm2500_vm10 = vweird.f32 %v2419_v15  ;;  %v2521_v46 = vmul.f32 2.0, %v2377_v57  ;;  %v2507_v48 = vor.u32 1.1754944e-38, %v2506_v1 }
 0x205   :  { %v2494_v55 = vmul.f32 %v2493_v8, %v2406_v0  ;;  %v2496_v49 = vmul.f32 %v2816_v40, %v2419_v15  ;;  %v2617_v20 = vsub.f32 1.0, %v2616_v12  ;;  %vm2501_vm8 = vweird.f32 %v2816_v40 }
 0x206   :  { %vm2502_vm11 = vmor %vm2500_vm10, %vm2501_vm8  ;;  %v2627_v41 = vor.u32 1.1754944e-38, %v2626_v35  ;;  %v2407_v47 = vadd.f32 58.5225, %v2401_v17  ;;  %vm2505_vm1 = vcmp.eq.f32.partialorder %v2504_v60, 8.507059e+37  ;;  %vm2625_vm2 = vcmp.eq.f32.partialorder %v2624_v45, 8.507059e+37 }
 0x207   :  { %v2514_v30 = vmax.f32 %v2494_v55, 0.0  ;;  %v2497_v59 = vsub.f32 1.0, %v2496_v49  ;;  %v2618_v39 = vmul.f32 %v2814_v63, %v2617_v20  ;;  %v2527_v34 = vadd.f32 6.5025, %v2521_v46 }
 0x208   :  { %v2661_v50 = vlaneseq  ;;  %vm2669_vm3 = vcmask 1041409   ;;  %vm2671_vm4 = vcmask 1042434   ;;  %vm2677_vm5 = vcmask 43008  }
 0x209   :  { %v2634_v21 = vmul.f32 %v2614_v36, %v2514_v30  ;;  %v2498_v27 = vmul.f32 %v2816_v40, %v2497_v59  ;;  %v2619_v61 = vadd.f32 %v2814_v63, %v2618_v39 }
 0x20a   :  { %v2662_v44 = vand.u32 127, %v2661_v50 }
 0x20b   :  { %v2649_v42 = vsel %vm2636_vm13, %v2634_v21, 0.0  ;;  %v2499_v51 = vadd.f32 %v2816_v40, %v2498_v27  ;;  %v2623_v26 = vsel %vm2622_vm9, %v2814_v63, %v2619_v61 }
 0x20c   :  { %2650 = vadd.xlane.f32.xlu1 %v2649_v42  ;;  %v2628_v31 = vsel %vm2625_vm2, %v2627_v41, %v2623_v26  ;;  %v2663_v11 = vperm.slane %v2639_v10, %v2662_v44 }
 0x20d   :  { %v2503_v56 = vsel %vm2502_vm11, %v2816_v40, %v2499_v51  ;;  %v2629_v29 = vmul.f32 %v2628_v31, %v2527_v34 }
 0x20e   :  { %v2508_v18 = vsel %vm2505_vm1, %v2507_v48, %v2503_v56 }
 0x20f   :  { %v2509_v52 = vmul.f32 %v2508_v18, %v2407_v47 }
 0x211   :  { %v2515_v38 = vmax.f32 %v2509_v52, 0.0 }
 0x213   :  { %v2635_v58 = vmul.f32 %v2629_v29, %v2515_v38 }
 0x215   :  { %v2652_v5 = vsel %vm2636_vm13, %v2635_v58, 0.0  ;;  %vm2690_vm13 = vcmask 17408  }
 0x216   :  { %2653 = vadd.xlane.f32.xlu2 %v2652_v5 }
 0x230   :  { %v2642_v9 = vpop.xlane.xlu0 %2641 }
 0x231   :  { %v2664_v32 = vperm.slane %v2642_v9, %v2662_v44 }
 0x233   :  { %v2670_v28 = vsel %vm2669_vm3, %v2664_v32, %v2663_v11 }
 0x264   :  { %v2645_v53 = vpop.xlane.xlu2 %2644 }
 0x265   :  { %v2665_v24 = vperm.slane %v2645_v53, %v2662_v44 }
 0x267   :  { %v2672_v22 = vsel %vm2671_vm4, %v2665_v24, %v2670_v28 }
 0x268   :  { %v2678_v62 = vsel %vm2677_vm5, %v2672_v22, 0.0 }
 0x269   :  { %2679 = vadd.xlane.f32.xlu0 %v2678_v62 }
 0x270   :  { %v2648_v54 = vpop.xlane.xlu1 %2647 }
 0x271   :  { %v2666_v13 = vperm.slane %v2648_v54, %v2662_v44 }
 0x27f   :  { %v2651_v15 = vpop.xlane.xlu1 %2650 }
 0x280   :  { %v2667_v7 = vperm.slane %v2651_v15, %v2662_v44 }
 0x282   :  { %v2673_v23 = vsel %vm2669_vm3, %v2667_v7, %v2666_v13 }
 0x289   :  { %v2654_v19 = vpop.xlane.xlu2 %2653 }
 0x28a   :  { %v2668_v43 = vperm.slane %v2654_v19, %v2662_v44 }
 0x28c   :  { %v2674_v57 = vsel %vm2671_vm4, %v2668_v43, %v2673_v23 }
 0x28d   :  { %v2681_v25 = vsel %vm2677_vm5, %v2674_v57, 0.0 }
 0x28e   :  { %2682 = vadd.xlane.f32.xlu1 %v2681_v25 }
 0x2dc   :  { %v2680_v2 = vpop.xlane.xlu0 %2679 }
 0x2dd   :  { %v2686_v33 = vperm.slane %v2680_v2, %v2662_v44 }
 0x301   :  { %v2683_v14 = vpop.xlane.xlu1 %2682 }
 0x302   :  { %v2687_v4 = vperm.slane %v2683_v14, %v2662_v44 }
 0x304   :  { %v2688_v0 = vsel %vm2669_vm3, %v2687_v4, %v2686_v33 }
 0x305   :  { %v2691_v37 = vsel %vm2690_vm13, %v2688_v0, 0.0 }
 0x306   :  { %2692 = vadd.xlane.f32.xlu2 %v2691_v37 }
 0x379   :  { %v2693_v63 = vpop.xlane.xlu2 %2692 }
 0x37a   :  { %v2694_v8 = vmul.f32 0.009259259, %v2693_v63 }
 0x37c   :  { %v2696_v6 = vperm.slane %v2694_v8, 0  ;;  %v2697_v3 = vperm.slane %v2694_v8, 1 }
 0x37e   :  { %2700 = vst [vmem:[#allocation7] sm:$0xff] %v2696_v6 }
 0x37f   :  { %2701 = vst [vmem:[#allocation7 + $0x8] sm:$0xff] %v2697_v3 }
 0x380   :  { %2714 = dma.vmem_to_hbm [thread:$0]  %s2707_s26, 256, %s2709_s29, [#allocation4], %s2896_s20, %s2896_s20, %s2897_s21  }
 0x381   :  { %2893 = dma.done.wait [#allocation4], 256  }
 0x382   :  { %2894 = vsyncadd [#allocation4], 4294967040 }
 0x383   :  { %2719 = vsyncpa [#allocation3], 1 }
 0x384   :  { %2720 = vsyncpa [#allocation6], 1 }
 0x385   :  { %2721 = vsyncpa [#allocation4], 1 }

</bundles_post_ra>
